<compile_context>
chip_gen: v6e
topology: v6e:2x2x1
jax: 0.10.0
libtpu: 0.0.40
codegen_flags: <defaults>
</compile_context>

<pallas_src>
import numpy as np
import jax
import jax.numpy as jnp
from jax import lax
from jax.experimental import pallas as pl
from jax.experimental.pallas import tpu as pltpu

NEG_SLOPE = 0.1  # LeakyReLU(0.1)


def _leaky(x):
    return jnp.where(x > 0, x, NEG_SLOPE * x)


# --------------------------- fused forward kernel ---------------------------
def _make_fused_kernel(N, F, Din, C, num_stages):
    """N = num_samples*B, F = num_frames, Din = in_dim, C = feat_dim."""

    def keep_mask(NL, L, Cin):
        # (NL, 3*Cin) boolean: drop the prev-tap lane block on each sample's
        # first frame and the next-tap lane block on each sample's last frame.
        # Built ONCE per stage (JAX does not CSE broadcast_in_dim) and shared
        # by both convs of the stage.
        row = lax.broadcasted_iota(jnp.int32, (NL, 3 * Cin), 0)
        lane = lax.broadcasted_iota(jnp.int32, (NL, 3 * Cin), 1)
        lpos = row & (L - 1)                       # frame index inside sample
        drop_prev = (lane < Cin) & (lpos == 0)
        drop_next = (lane >= 2 * Cin) & (lpos == L - 1)
        return jnp.logical_not(drop_prev | drop_next)

    def kernel(x_ref, w0_ref, b0_ref, ws_ref, bs_ref, o_ref, col_ref, pool_ref):
        def conv3(v, w, b, keep, NL, Cin):
            # Conv1d(k=3, stride=1, pad=1) as ONE MXU matmul via in-kernel
            # im2col: write v at three (sublane, lane-block) offsets so one
            # contiguous (NL, 3*Cin) scratch window is [prev | cur | next].
            # The two never-written corner rows (and all sample-boundary rows)
            # may hold stale garbage; jnp.where replaces them with 0.0, so
            # even stale NaNs cannot reach the matmul.
            col_ref[pl.ds(2, NL), 0:Cin] = v                # prev tap (k=0)
            col_ref[pl.ds(1, NL), Cin:2 * Cin] = v          # center tap (k=1)
            col_ref[pl.ds(0, NL), 2 * Cin:3 * Cin] = v      # next tap (k=2)
            col = col_ref[pl.ds(1, NL), 0:3 * Cin]
            col = jnp.where(keep, col, 0.0)
            return jnp.dot(col, w, preferred_element_type=jnp.float32) + b

        # ---- init conv (no activation after it, matching the PyTorch module)
        NL = N * F
        act = conv3(x_ref[...], w0_ref[...], b0_ref[...],
                    keep_mask(NL, F, Din), NL, Din)

        L = F
        for s in range(num_stages):        # static unroll; shapes halve/stage
            NL = N * L
            keep = keep_mask(NL, L, C)     # hoisted: shared by conv1 & conv2
            x = act
            h = _leaky(conv3(x, ws_ref[2 * s], bs_ref[2 * s], keep, NL, C))
            y = conv3(h, ws_ref[2 * s + 1], bs_ref[2 * s + 1], keep, NL, C)
            z = _leaky(x + y)              # residual + LeakyReLU(0.1)

            # MaxPool1d(2, 2): pairs (2l, 2l+1) never cross a sample boundary
            # (L is a power of two).  One store + two stride-2 sublane loads.
            NLh = NL // 2
            pool_ref[pl.ds(0, NL), :] = z
            even = pool_ref[pl.ds(0, NLh, stride=2), :]
            odd = pool_ref[pl.ds(1, NLh, stride=2), :]
            act = jnp.maximum(even, odd)
            L //= 2

        # act: (N, C) with L == 1.  Mean over the (num_samples*B) axis, exactly
        # like torch.mean(out, dim=0) on the (S*B, C, 1) tensor.
        o_ref[...] = jnp.mean(act, axis=0, keepdims=True).astype(o_ref.dtype)

    return kernel


def _fused_forward(x_flat, w_init, b_init, w_stages, b_stages):
    """x_flat: (N*F, in_dim) sampled frames, N = num_samples * B."""
    NF, Din = x_flat.shape
    C = b_init.shape[-1]
    num_stages = b_stages.shape[0] // 2
    F = 2 ** num_stages
    N = NF // F

    # Advisory cost estimate (the kernel is tiny and latency-bound).
    flops = 2 * NF * (3 * Din) * C
    nl = NF
    for _ in range(num_stages):
        flops += 2 * (2 * nl * (3 * C) * C)
        nl //= 2
    bytes_accessed = 4 * (x_flat.size + w_init.size + b_init.size
                          + w_stages.size + b_stages.size + C)

    lanes = 3 * max(C, Din)
    # No grid: the whole problem (tens of KB) lives in VMEM for one invocation.
    return pl.pallas_call(
        _make_fused_kernel(N, F, Din, C, num_stages),
        out_shape=jax.ShapeDtypeStruct((1, C), jnp.float32),
        scratch_shapes=[pltpu.VMEM((NF + 2, lanes), jnp.float32),  # im2col
                        pltpu.VMEM((NF, C), jnp.float32)],         # maxpool
        cost_estimate=pl.CostEstimate(flops=flops, transcendentals=0,
                                      bytes_accessed=bytes_accessed),
    )(x_flat, w_init, b_init, w_stages, b_stages)


@jax.jit
def _embed(inp, idx, w_init, b_init, w_stages, b_stages):
    """Whole path under one jit: gather -> reshape -> fused kernel -> view."""
    B = inp.shape[0]
    S, F = idx.shape
    x = inp[:, idx, :]                                    # (B, S, F, D) gather
    x = jnp.transpose(x, (1, 0, 2, 3)).reshape(S * B * F, -1)
    pooled = _fused_forward(x, w_init, b_init, w_stages, b_stages)
    return pooled.reshape(B, -1)                 # matches torch .view(B, -1)


# ---------------- parameter construction (deterministic, synthetic) ----------
def make_params(key, in_dim, feat_dim, num_stages):
    def conv_init(k, cin, cout):
        kw, kb = jax.random.split(k)
        bound = 1.0 / np.sqrt(cin * 3)
        w = jax.random.uniform(kw, (3, cin, cout), jnp.float32, -bound, bound)
        b = jax.random.uniform(kb, (1, cout), jnp.float32, -bound, bound)
        # im2col contraction order [prev | cur | next]  ->  (3*cin, cout)
        return w.reshape(3 * cin, cout), b

    keys = jax.random.split(key, 1 + 2 * num_stages)
    w0, b0 = conv_init(keys[0], in_dim, feat_dim)
    ws, bs = [], []
    for i in range(2 * num_stages):            # stage0-conv1, stage0-conv2, ...
        w, b = conv_init(keys[1 + i], feat_dim, feat_dim)
        ws.append(w)
        bs.append(b)
    # NOTE: feat_dim=32 only fills 32/128 lanes of each vreg/MXU column; 128
    # would be the sweet spot if the hyperparameter were tunable.
    return {
        "w_init": w0,                              # (3*in_dim, feat_dim)
        "b_init": b0,                              # (1, feat_dim)
        "w_stages": jnp.stack(ws, axis=0),         # (num_stages*2, 3C, C)
        "b_stages": jnp.stack(bs, axis=0),         # (num_stages*2, 1, C)
    }


# ---------------- forward pass (host RNG sampling mirrors random.sample) -----
def sparse_sample_embedder(inp, params, num_frames, num_samples, rng):
    B, L, _ = inp.shape
    assert num_frames & (num_frames - 1) == 0, "num_frames must be a power of 2"

    # TODO(synk): host-side RNG frame sampling (like random.sample in the
    # reference) -- not expressible in-kernel; indices are passed into the jit.
    if L >= num_frames:
        idx = np.stack([np.sort(rng.choice(L, size=num_frames, replace=False))
                        for _ in range(num_samples)])
    else:
        idx = np.stack([np.sort(rng.randint(0, L, size=num_frames))
                        for _ in range(num_samples)])
    idx = jnp.asarray(idx, jnp.int32)

    return _embed(inp, idx, params["w_init"], params["b_init"],
                  params["w_stages"], params["b_stages"])


if __name__ == "__main__":
    B, L, in_dim = 2, 20, 4
    feat_dim, num_frames, num_samples = 32, 16, 3

    key = jax.random.PRNGKey(0)
    k_inp, k_par = jax.random.split(key)
    inp = jax.random.normal(k_inp, (B, L, in_dim), jnp.float32)

    num_stages = int(np.log2(num_frames))
    params = make_params(k_par, in_dim, feat_dim, num_stages)

    rng = np.random.RandomState(0)  # deterministic frame sampling
    out = sparse_sample_embedder(inp, params, num_frames, num_samples, rng)
    out = jax.block_until_ready(out)

    assert out.shape == (B, feat_dim // B), out.shape
    assert bool(jnp.all(jnp.isfinite(out)))
    print("KERNEL_OK")
</pallas_src>

<mosaic_0001>
module attributes {stable_mosaic.version = 11 : i64} {
  func.func @kernel(%arg0: memref<96x4xf32, #tpu.memory_space<vmem>>, %arg1: memref<12x32xf32, #tpu.memory_space<vmem>>, %arg2: memref<1x32xf32, #tpu.memory_space<vmem>>, %arg3: memref<8x96x32xf32, #tpu.memory_space<vmem>>, %arg4: memref<8x1x32xf32, #tpu.memory_space<vmem>>, %arg5: memref<1x32xf32, #tpu.memory_space<vmem>>, %arg6: memref<98x96xf32, #tpu.memory_space<vmem>>, %arg7: memref<96x32xf32, #tpu.memory_space<vmem>>) attributes {dimension_semantics = [], scalar_prefetch = 0 : i64, scratch_operands = 2 : i64, tpu.core_type = #tpu.core_type<tc>} {
    %c0 = arith.constant 0 : index
    %c0_0 = arith.constant 0 : index
    %0 = vector.load %arg0[%c0, %c0_0] : memref<96x4xf32, #tpu.memory_space<vmem>>, vector<96x4xf32>
    %c0_1 = arith.constant 0 : index
    %c0_2 = arith.constant 0 : index
    %1 = vector.load %arg1[%c0_1, %c0_2] : memref<12x32xf32, #tpu.memory_space<vmem>>, vector<12x32xf32>
    %c0_3 = arith.constant 0 : index
    %c0_4 = arith.constant 0 : index
    %2 = vector.load %arg2[%c0_3, %c0_4] : memref<1x32xf32, #tpu.memory_space<vmem>>, vector<1x32xf32>
    %3 = tpu.iota {dimensions = array<i32: 0>} : vector<96x12xi32>
    %4 = tpu.iota {dimensions = array<i32: 1>} : vector<96x12xi32>
    %c15_i32 = arith.constant 15 : i32
    %5 = vector.broadcast %c15_i32 : i32 to vector<96x12xi32>
    %6 = arith.andi %3, %5 : vector<96x12xi32>
    %c4_i32 = arith.constant 4 : i32
    %7 = vector.broadcast %c4_i32 : i32 to vector<96x12xi32>
    %8 = arith.cmpi slt, %4, %7 : vector<96x12xi32>
    %c0_i32 = arith.constant 0 : i32
    %9 = vector.broadcast %c0_i32 : i32 to vector<96x12xi32>
    %10 = arith.cmpi eq, %6, %9 : vector<96x12xi32>
    %11 = arith.andi %8, %10 : vector<96x12xi1>
    %c8_i32 = arith.constant 8 : i32
    %12 = vector.broadcast %c8_i32 : i32 to vector<96x12xi32>
    %13 = arith.cmpi sge, %4, %12 : vector<96x12xi32>
    %c15_i32_5 = arith.constant 15 : i32
    %14 = vector.broadcast %c15_i32_5 : i32 to vector<96x12xi32>
    %15 = arith.cmpi eq, %6, %14 : vector<96x12xi32>
    %16 = arith.andi %13, %15 : vector<96x12xi1>
    %17 = arith.ori %11, %16 : vector<96x12xi1>
    %cst = arith.constant dense<true> : vector<96x12xi1>
    %18 = arith.xori %17, %cst : vector<96x12xi1>
    %c2 = arith.constant 2 : index
    %c0_6 = arith.constant 0 : index
    %19 = vector.load %arg6[%c2, %c0_6] : memref<98x96xf32, #tpu.memory_space<vmem>>, vector<96x4xf32>
    tpu.vector_store %arg6[%c2, %c0_6], %0 {strides = array<i32>} : memref<98x96xf32, #tpu.memory_space<vmem>>, vector<96x4xf32>,
    %c1 = arith.constant 1 : index
    %c4 = arith.constant 4 : index
    %20 = vector.load %arg6[%c1, %c4] : memref<98x96xf32, #tpu.memory_space<vmem>>, vector<96x4xf32>
    tpu.vector_store %arg6[%c1, %c4], %0 {strides = array<i32>} : memref<98x96xf32, #tpu.memory_space<vmem>>, vector<96x4xf32>,
    %c0_7 = arith.constant 0 : index
    %c8 = arith.constant 8 : index
    %21 = vector.load %arg6[%c0_7, %c8] : memref<98x96xf32, #tpu.memory_space<vmem>>, vector<96x4xf32>
    tpu.vector_store %arg6[%c0_7, %c8], %0 {strides = array<i32>} : memref<98x96xf32, #tpu.memory_space<vmem>>, vector<96x4xf32>,
    %c1_8 = arith.constant 1 : index
    %c0_9 = arith.constant 0 : index
    %22 = vector.load %arg6[%c1_8, %c0_9] : memref<98x96xf32, #tpu.memory_space<vmem>>, vector<96x12xf32>
    %cst_10 = arith.constant 0.000000e+00 : f32
    %23 = vector.broadcast %cst_10 : f32 to vector<96x12xf32>
    %24 = arith.select %18, %22, %23 : vector<96x12xi1>, vector<96x12xf32>
    %cst_11 = arith.constant dense<0.000000e+00> : vector<96x32xf32>
    %25 = tpu.matmul %24, %1, %cst_11 {dimension_numbers = #tpu.dot_dimension_numbers<[1], [0], [0], [1], [0, 0, 1, 1], [], []>} : vector<96x12xf32>, vector<12x32xf32>, vector<96x32xf32> -> vector<96x32xf32>
    %26 = vector.broadcast %2 : vector<1x32xf32> to vector<96x32xf32>
    %27 = arith.addf %25, %26 : vector<96x32xf32>
    %28 = tpu.iota {dimensions = array<i32: 0>} : vector<96x96xi32>
    %29 = tpu.iota {dimensions = array<i32: 1>} : vector<96x96xi32>
    %c15_i32_12 = arith.constant 15 : i32
    %30 = vector.broadcast %c15_i32_12 : i32 to vector<96x96xi32>
    %31 = arith.andi %28, %30 : vector<96x96xi32>
    %c32_i32 = arith.constant 32 : i32
    %32 = vector.broadcast %c32_i32 : i32 to vector<96x96xi32>
    %33 = arith.cmpi slt, %29, %32 : vector<96x96xi32>
    %c0_i32_13 = arith.constant 0 : i32
    %34 = vector.broadcast %c0_i32_13 : i32 to vector<96x96xi32>
    %35 = arith.cmpi eq, %31, %34 : vector<96x96xi32>
    %36 = arith.andi %33, %35 : vector<96x96xi1>
    %c64_i32 = arith.constant 64 : i32
    %37 = vector.broadcast %c64_i32 : i32 to vector<96x96xi32>
    %38 = arith.cmpi sge, %29, %37 : vector<96x96xi32>
    %c15_i32_14 = arith.constant 15 : i32
    %39 = vector.broadcast %c15_i32_14 : i32 to vector<96x96xi32>
    %40 = arith.cmpi eq, %31, %39 : vector<96x96xi32>
    %41 = arith.andi %38, %40 : vector<96x96xi1>
    %42 = arith.ori %36, %41 : vector<96x96xi1>
    %cst_15 = arith.constant dense<true> : vector<96x96xi1>
    %43 = arith.xori %42, %cst_15 : vector<96x96xi1>
    %c0_16 = arith.constant 0 : index
    %c0_17 = arith.constant 0 : index
    %c0_18 = arith.constant 0 : index
    %44 = vector.load %arg3[%c0_16, %c0_17, %c0_18] : memref<8x96x32xf32, #tpu.memory_space<vmem>>, vector<1x96x32xf32>
    %45 = vector.shape_cast %44 : vector<1x96x32xf32> to vector<96x32xf32>
    %c0_19 = arith.constant 0 : index
    %c0_20 = arith.constant 0 : index
    %c0_21 = arith.constant 0 : index
    %46 = vector.load %arg4[%c0_19, %c0_20, %c0_21] : memref<8x1x32xf32, #tpu.memory_space<vmem>>, vector<1x1x32xf32>
    %47 = vector.shape_cast %46 : vector<1x1x32xf32> to vector<1x32xf32>
    %c2_22 = arith.constant 2 : index
    %c0_23 = arith.constant 0 : index
    %48 = vector.load %arg6[%c2_22, %c0_23] : memref<98x96xf32, #tpu.memory_space<vmem>>, vector<96x32xf32>
    tpu.vector_store %arg6[%c2_22, %c0_23], %27 {strides = array<i32>} : memref<98x96xf32, #tpu.memory_space<vmem>>, vector<96x32xf32>,
    %c1_24 = arith.constant 1 : index
    %c32 = arith.constant 32 : index
    %49 = vector.load %arg6[%c1_24, %c32] : memref<98x96xf32, #tpu.memory_space<vmem>>, vector<96x32xf32>
    tpu.vector_store %arg6[%c1_24, %c32], %27 {strides = array<i32>} : memref<98x96xf32, #tpu.memory_space<vmem>>, vector<96x32xf32>,
    %c0_25 = arith.constant 0 : index
    %c64 = arith.constant 64 : index
    %50 = vector.load %arg6[%c0_25, %c64] : memref<98x96xf32, #tpu.memory_space<vmem>>, vector<96x32xf32>
    tpu.vector_store %arg6[%c0_25, %c64], %27 {strides = array<i32>} : memref<98x96xf32, #tpu.memory_space<vmem>>, vector<96x32xf32>,
    %c1_26 = arith.constant 1 : index
    %c0_27 = arith.constant 0 : index
    %51 = vector.load %arg6[%c1_26, %c0_27] : memref<98x96xf32, #tpu.memory_space<vmem>>, vector<96x96xf32>
    %cst_28 = arith.constant 0.000000e+00 : f32
    %52 = vector.broadcast %cst_28 : f32 to vector<96x96xf32>
    %53 = arith.select %43, %51, %52 : vector<96x96xi1>, vector<96x96xf32>
    %cst_29 = arith.constant dense<0.000000e+00> : vector<96x32xf32>
    %54 = tpu.matmul %53, %45, %cst_29 {dimension_numbers = #tpu.dot_dimension_numbers<[1], [0], [0], [1], [0, 0, 1, 1], [], []>} : vector<96x96xf32>, vector<96x32xf32>, vector<96x32xf32> -> vector<96x32xf32>
    %55 = vector.broadcast %47 : vector<1x32xf32> to vector<96x32xf32>
    %56 = arith.addf %54, %55 : vector<96x32xf32>
    %cst_30 = arith.constant 0.000000e+00 : f32
    %57 = vector.broadcast %cst_30 : f32 to vector<96x32xf32>
    %58 = arith.cmpf ogt, %56, %57 : vector<96x32xf32>
    %cst_31 = arith.constant 1.000000e-01 : f32
    %59 = vector.broadcast %cst_31 : f32 to vector<96x32xf32>
    %60 = arith.mulf %59, %56 : vector<96x32xf32>
    %61 = arith.select %58, %56, %60 : vector<96x32xi1>, vector<96x32xf32>
    %c1_32 = arith.constant 1 : index
    %c0_33 = arith.constant 0 : index
    %c0_34 = arith.constant 0 : index
    %62 = vector.load %arg3[%c1_32, %c0_33, %c0_34] : memref<8x96x32xf32, #tpu.memory_space<vmem>>, vector<1x96x32xf32>
    %63 = vector.shape_cast %62 : vector<1x96x32xf32> to vector<96x32xf32>
    %c1_35 = arith.constant 1 : index
    %c0_36 = arith.constant 0 : index
    %c0_37 = arith.constant 0 : index
    %64 = vector.load %arg4[%c1_35, %c0_36, %c0_37] : memref<8x1x32xf32, #tpu.memory_space<vmem>>, vector<1x1x32xf32>
    %65 = vector.shape_cast %64 : vector<1x1x32xf32> to vector<1x32xf32>
    %c2_38 = arith.constant 2 : index
    %c0_39 = arith.constant 0 : index
    %66 = vector.load %arg6[%c2_38, %c0_39] : memref<98x96xf32, #tpu.memory_space<vmem>>, vector<96x32xf32>
    tpu.vector_store %arg6[%c2_38, %c0_39], %61 {strides = array<i32>} : memref<98x96xf32, #tpu.memory_space<vmem>>, vector<96x32xf32>,
    %c1_40 = arith.constant 1 : index
    %c32_41 = arith.constant 32 : index
    %67 = vector.load %arg6[%c1_40, %c32_41] : memref<98x96xf32, #tpu.memory_space<vmem>>, vector<96x32xf32>
    tpu.vector_store %arg6[%c1_40, %c32_41], %61 {strides = array<i32>} : memref<98x96xf32, #tpu.memory_space<vmem>>, vector<96x32xf32>,
    %c0_42 = arith.constant 0 : index
    %c64_43 = arith.constant 64 : index
    %68 = vector.load %arg6[%c0_42, %c64_43] : memref<98x96xf32, #tpu.memory_space<vmem>>, vector<96x32xf32>
    tpu.vector_store %arg6[%c0_42, %c64_43], %61 {strides = array<i32>} : memref<98x96xf32, #tpu.memory_space<vmem>>, vector<96x32xf32>,
    %c1_44 = arith.constant 1 : index
    %c0_45 = arith.constant 0 : index
    %69 = vector.load %arg6[%c1_44, %c0_45] : memref<98x96xf32, #tpu.memory_space<vmem>>, vector<96x96xf32>
    %cst_46 = arith.constant 0.000000e+00 : f32
    %70 = vector.broadcast %cst_46 : f32 to vector<96x96xf32>
    %71 = arith.select %43, %69, %70 : vector<96x96xi1>, vector<96x96xf32>
    %cst_47 = arith.constant dense<0.000000e+00> : vector<96x32xf32>
    %72 = tpu.matmul %71, %63, %cst_47 {dimension_numbers = #tpu.dot_dimension_numbers<[1], [0], [0], [1], [0, 0, 1, 1], [], []>} : vector<96x96xf32>, vector<96x32xf32>, vector<96x32xf32> -> vector<96x32xf32>
    %73 = vector.broadcast %65 : vector<1x32xf32> to vector<96x32xf32>
    %74 = arith.addf %72, %73 : vector<96x32xf32>
    %75 = arith.addf %27, %74 : vector<96x32xf32>
    %cst_48 = arith.constant 0.000000e+00 : f32
    %76 = vector.broadcast %cst_48 : f32 to vector<96x32xf32>
    %77 = arith.cmpf ogt, %75, %76 : vector<96x32xf32>
    %cst_49 = arith.constant 1.000000e-01 : f32
    %78 = vector.broadcast %cst_49 : f32 to vector<96x32xf32>
    %79 = arith.mulf %78, %75 : vector<96x32xf32>
    %80 = arith.select %77, %75, %79 : vector<96x32xi1>, vector<96x32xf32>
    %c0_50 = arith.constant 0 : index
    %c0_51 = arith.constant 0 : index
    %81 = vector.load %arg7[%c0_50, %c0_51] : memref<96x32xf32, #tpu.memory_space<vmem>>, vector<96x32xf32>
    tpu.vector_store %arg7[%c0_50, %c0_51], %80 {strides = array<i32>} : memref<96x32xf32, #tpu.memory_space<vmem>>, vector<96x32xf32>,
    %c0_52 = arith.constant 0 : index
    %c0_53 = arith.constant 0 : index
    %82 = tpu.strided_load %arg7[%c0_52, %c0_53] {strides = array<i32: 2, 1>} : memref<96x32xf32, #tpu.memory_space<vmem>>, vector<48x32xf32>
    %c1_54 = arith.constant 1 : index
    %c0_55 = arith.constant 0 : index
    %83 = tpu.strided_load %arg7[%c1_54, %c0_55] {strides = array<i32: 2, 1>} : memref<96x32xf32, #tpu.memory_space<vmem>>, vector<48x32xf32>
    %84 = arith.maximumf %82, %83 : vector<48x32xf32>
    %85 = tpu.iota {dimensions = array<i32: 0>} : vector<48x96xi32>
    %86 = tpu.iota {dimensions = array<i32: 1>} : vector<48x96xi32>
    %c7_i32 = arith.constant 7 : i32
    %87 = vector.broadcast %c7_i32 : i32 to vector<48x96xi32>
    %88 = arith.andi %85, %87 : vector<48x96xi32>
    %c32_i32_56 = arith.constant 32 : i32
    %89 = vector.broadcast %c32_i32_56 : i32 to vector<48x96xi32>
    %90 = arith.cmpi slt, %86, %89 : vector<48x96xi32>
    %c0_i32_57 = arith.constant 0 : i32
    %91 = vector.broadcast %c0_i32_57 : i32 to vector<48x96xi32>
    %92 = arith.cmpi eq, %88, %91 : vector<48x96xi32>
    %93 = arith.andi %90, %92 : vector<48x96xi1>
    %c64_i32_58 = arith.constant 64 : i32
    %94 = vector.broadcast %c64_i32_58 : i32 to vector<48x96xi32>
    %95 = arith.cmpi sge, %86, %94 : vector<48x96xi32>
    %c7_i32_59 = arith.constant 7 : i32
    %96 = vector.broadcast %c7_i32_59 : i32 to vector<48x96xi32>
    %97 = arith.cmpi eq, %88, %96 : vector<48x96xi32>
    %98 = arith.andi %95, %97 : vector<48x96xi1>
    %99 = arith.ori %93, %98 : vector<48x96xi1>
    %cst_60 = arith.constant dense<true> : vector<48x96xi1>
    %100 = arith.xori %99, %cst_60 : vector<48x96xi1>
    %c2_61 = arith.constant 2 : index
    %c0_62 = arith.constant 0 : index
    %c0_63 = arith.constant 0 : index
    %101 = vector.load %arg3[%c2_61, %c0_62, %c0_63] : memref<8x96x32xf32, #tpu.memory_space<vmem>>, vector<1x96x32xf32>
    %102 = vector.shape_cast %101 : vector<1x96x32xf32> to vector<96x32xf32>
    %c2_64 = arith.constant 2 : index
    %c0_65 = arith.constant 0 : index
    %c0_66 = arith.constant 0 : index
    %103 = vector.load %arg4[%c2_64, %c0_65, %c0_66] : memref<8x1x32xf32, #tpu.memory_space<vmem>>, vector<1x1x32xf32>
    %104 = vector.shape_cast %103 : vector<1x1x32xf32> to vector<1x32xf32>
    %c2_67 = arith.constant 2 : index
    %c0_68 = arith.constant 0 : index
    %105 = vector.load %arg6[%c2_67, %c0_68] : memref<98x96xf32, #tpu.memory_space<vmem>>, vector<48x32xf32>
    tpu.vector_store %arg6[%c2_67, %c0_68], %84 {strides = array<i32>} : memref<98x96xf32, #tpu.memory_space<vmem>>, vector<48x32xf32>,
    %c1_69 = arith.constant 1 : index
    %c32_70 = arith.constant 32 : index
    %106 = vector.load %arg6[%c1_69, %c32_70] : memref<98x96xf32, #tpu.memory_space<vmem>>, vector<48x32xf32>
    tpu.vector_store %arg6[%c1_69, %c32_70], %84 {strides = array<i32>} : memref<98x96xf32, #tpu.memory_space<vmem>>, vector<48x32xf32>,
    %c0_71 = arith.constant 0 : index
    %c64_72 = arith.constant 64 : index
    %107 = vector.load %arg6[%c0_71, %c64_72] : memref<98x96xf32, #tpu.memory_space<vmem>>, vector<48x32xf32>
    tpu.vector_store %arg6[%c0_71, %c64_72], %84 {strides = array<i32>} : memref<98x96xf32, #tpu.memory_space<vmem>>, vector<48x32xf32>,
    %c1_73 = arith.constant 1 : index
    %c0_74 = arith.constant 0 : index
    %108 = vector.load %arg6[%c1_73, %c0_74] : memref<98x96xf32, #tpu.memory_space<vmem>>, vector<48x96xf32>
    %cst_75 = arith.constant 0.000000e+00 : f32
    %109 = vector.broadcast %cst_75 : f32 to vector<48x96xf32>
    %110 = arith.select %100, %108, %109 : vector<48x96xi1>, vector<48x96xf32>
    %cst_76 = arith.constant dense<0.000000e+00> : vector<48x32xf32>
    %111 = tpu.matmul %110, %102, %cst_76 {dimension_numbers = #tpu.dot_dimension_numbers<[1], [0], [0], [1], [0, 0, 1, 1], [], []>} : vector<48x96xf32>, vector<96x32xf32>, vector<48x32xf32> -> vector<48x32xf32>
    %112 = vector.broadcast %104 : vector<1x32xf32> to vector<48x32xf32>
    %113 = arith.addf %111, %112 : vector<48x32xf32>
    %cst_77 = arith.constant 0.000000e+00 : f32
    %114 = vector.broadcast %cst_77 : f32 to vector<48x32xf32>
    %115 = arith.cmpf ogt, %113, %114 : vector<48x32xf32>
    %cst_78 = arith.constant 1.000000e-01 : f32
    %116 = vector.broadcast %cst_78 : f32 to vector<48x32xf32>
    %117 = arith.mulf %116, %113 : vector<48x32xf32>
    %118 = arith.select %115, %113, %117 : vector<48x32xi1>, vector<48x32xf32>
    %c3 = arith.constant 3 : index
    %c0_79 = arith.constant 0 : index
    %c0_80 = arith.constant 0 : index
    %119 = vector.load %arg3[%c3, %c0_79, %c0_80] : memref<8x96x32xf32, #tpu.memory_space<vmem>>, vector<1x96x32xf32>
    %120 = vector.shape_cast %119 : vector<1x96x32xf32> to vector<96x32xf32>
    %c3_81 = arith.constant 3 : index
    %c0_82 = arith.constant 0 : index
    %c0_83 = arith.constant 0 : index
    %121 = vector.load %arg4[%c3_81, %c0_82, %c0_83] : memref<8x1x32xf32, #tpu.memory_space<vmem>>, vector<1x1x32xf32>
    %122 = vector.shape_cast %121 : vector<1x1x32xf32> to vector<1x32xf32>
    %c2_84 = arith.constant 2 : index
    %c0_85 = arith.constant 0 : index
    %123 = vector.load %arg6[%c2_84, %c0_85] : memref<98x96xf32, #tpu.memory_space<vmem>>, vector<48x32xf32>
    tpu.vector_store %arg6[%c2_84, %c0_85], %118 {strides = array<i32>} : memref<98x96xf32, #tpu.memory_space<vmem>>, vector<48x32xf32>,
    %c1_86 = arith.constant 1 : index
    %c32_87 = arith.constant 32 : index
    %124 = vector.load %arg6[%c1_86, %c32_87] : memref<98x96xf32, #tpu.memory_space<vmem>>, vector<48x32xf32>
    tpu.vector_store %arg6[%c1_86, %c32_87], %118 {strides = array<i32>} : memref<98x96xf32, #tpu.memory_space<vmem>>, vector<48x32xf32>,
    %c0_88 = arith.constant 0 : index
    %c64_89 = arith.constant 64 : index
    %125 = vector.load %arg6[%c0_88, %c64_89] : memref<98x96xf32, #tpu.memory_space<vmem>>, vector<48x32xf32>
    tpu.vector_store %arg6[%c0_88, %c64_89], %118 {strides = array<i32>} : memref<98x96xf32, #tpu.memory_space<vmem>>, vector<48x32xf32>,
    %c1_90 = arith.constant 1 : index
    %c0_91 = arith.constant 0 : index
    %126 = vector.load %arg6[%c1_90, %c0_91] : memref<98x96xf32, #tpu.memory_space<vmem>>, vector<48x96xf32>
    %cst_92 = arith.constant 0.000000e+00 : f32
    %127 = vector.broadcast %cst_92 : f32 to vector<48x96xf32>
    %128 = arith.select %100, %126, %127 : vector<48x96xi1>, vector<48x96xf32>
    %cst_93 = arith.constant dense<0.000000e+00> : vector<48x32xf32>
    %129 = tpu.matmul %128, %120, %cst_93 {dimension_numbers = #tpu.dot_dimension_numbers<[1], [0], [0], [1], [0, 0, 1, 1], [], []>} : vector<48x96xf32>, vector<96x32xf32>, vector<48x32xf32> -> vector<48x32xf32>
    %130 = vector.broadcast %122 : vector<1x32xf32> to vector<48x32xf32>
    %131 = arith.addf %129, %130 : vector<48x32xf32>
    %132 = arith.addf %84, %131 : vector<48x32xf32>
    %cst_94 = arith.constant 0.000000e+00 : f32
    %133 = vector.broadcast %cst_94 : f32 to vector<48x32xf32>
    %134 = arith.cmpf ogt, %132, %133 : vector<48x32xf32>
    %cst_95 = arith.constant 1.000000e-01 : f32
    %135 = vector.broadcast %cst_95 : f32 to vector<48x32xf32>
    %136 = arith.mulf %135, %132 : vector<48x32xf32>
    %137 = arith.select %134, %132, %136 : vector<48x32xi1>, vector<48x32xf32>
    %c0_96 = arith.constant 0 : index
    %c0_97 = arith.constant 0 : index
    %138 = vector.load %arg7[%c0_96, %c0_97] : memref<96x32xf32, #tpu.memory_space<vmem>>, vector<48x32xf32>
    tpu.vector_store %arg7[%c0_96, %c0_97], %137 {strides = array<i32>} : memref<96x32xf32, #tpu.memory_space<vmem>>, vector<48x32xf32>,
    %c0_98 = arith.constant 0 : index
    %c0_99 = arith.constant 0 : index
    %139 = tpu.strided_load %arg7[%c0_98, %c0_99] {strides = array<i32: 2, 1>} : memref<96x32xf32, #tpu.memory_space<vmem>>, vector<24x32xf32>
    %c1_100 = arith.constant 1 : index
    %c0_101 = arith.constant 0 : index
    %140 = tpu.strided_load %arg7[%c1_100, %c0_101] {strides = array<i32: 2, 1>} : memref<96x32xf32, #tpu.memory_space<vmem>>, vector<24x32xf32>
    %141 = arith.maximumf %139, %140 : vector<24x32xf32>
    %142 = tpu.iota {dimensions = array<i32: 0>} : vector<24x96xi32>
    %143 = tpu.iota {dimensions = array<i32: 1>} : vector<24x96xi32>
    %c3_i32 = arith.constant 3 : i32
    %144 = vector.broadcast %c3_i32 : i32 to vector<24x96xi32>
    %145 = arith.andi %142, %144 : vector<24x96xi32>
    %c32_i32_102 = arith.constant 32 : i32
    %146 = vector.broadcast %c32_i32_102 : i32 to vector<24x96xi32>
    %147 = arith.cmpi slt, %143, %146 : vector<24x96xi32>
    %c0_i32_103 = arith.constant 0 : i32
    %148 = vector.broadcast %c0_i32_103 : i32 to vector<24x96xi32>
    %149 = arith.cmpi eq, %145, %148 : vector<24x96xi32>
    %150 = arith.andi %147, %149 : vector<24x96xi1>
    %c64_i32_104 = arith.constant 64 : i32
    %151 = vector.broadcast %c64_i32_104 : i32 to vector<24x96xi32>
    %152 = arith.cmpi sge, %143, %151 : vector<24x96xi32>
    %c3_i32_105 = arith.constant 3 : i32
    %153 = vector.broadcast %c3_i32_105 : i32 to vector<24x96xi32>
    %154 = arith.cmpi eq, %145, %153 : vector<24x96xi32>
    %155 = arith.andi %152, %154 : vector<24x96xi1>
    %156 = arith.ori %150, %155 : vector<24x96xi1>
    %cst_106 = arith.constant dense<true> : vector<24x96xi1>
    %157 = arith.xori %156, %cst_106 : vector<24x96xi1>
    %c4_107 = arith.constant 4 : index
    %c0_108 = arith.constant 0 : index
    %c0_109 = arith.constant 0 : index
    %158 = vector.load %arg3[%c4_107, %c0_108, %c0_109] : memref<8x96x32xf32, #tpu.memory_space<vmem>>, vector<1x96x32xf32>
    %159 = vector.shape_cast %158 : vector<1x96x32xf32> to vector<96x32xf32>
    %c4_110 = arith.constant 4 : index
    %c0_111 = arith.constant 0 : index
    %c0_112 = arith.constant 0 : index
    %160 = vector.load %arg4[%c4_110, %c0_111, %c0_112] : memref<8x1x32xf32, #tpu.memory_space<vmem>>, vector<1x1x32xf32>
    %161 = vector.shape_cast %160 : vector<1x1x32xf32> to vector<1x32xf32>
    %c2_113 = arith.constant 2 : index
    %c0_114 = arith.constant 0 : index
    %162 = vector.load %arg6[%c2_113, %c0_114] : memref<98x96xf32, #tpu.memory_space<vmem>>, vector<24x32xf32>
    tpu.vector_store %arg6[%c2_113, %c0_114], %141 {strides = array<i32>} : memref<98x96xf32, #tpu.memory_space<vmem>>, vector<24x32xf32>,
    %c1_115 = arith.constant 1 : index
    %c32_116 = arith.constant 32 : index
    %163 = vector.load %arg6[%c1_115, %c32_116] : memref<98x96xf32, #tpu.memory_space<vmem>>, vector<24x32xf32>
    tpu.vector_store %arg6[%c1_115, %c32_116], %141 {strides = array<i32>} : memref<98x96xf32, #tpu.memory_space<vmem>>, vector<24x32xf32>,
    %c0_117 = arith.constant 0 : index
    %c64_118 = arith.constant 64 : index
    %164 = vector.load %arg6[%c0_117, %c64_118] : memref<98x96xf32, #tpu.memory_space<vmem>>, vector<24x32xf32>
    tpu.vector_store %arg6[%c0_117, %c64_118], %141 {strides = array<i32>} : memref<98x96xf32, #tpu.memory_space<vmem>>, vector<24x32xf32>,
    %c1_119 = arith.constant 1 : index
    %c0_120 = arith.constant 0 : index
    %165 = vector.load %arg6[%c1_119, %c0_120] : memref<98x96xf32, #tpu.memory_space<vmem>>, vector<24x96xf32>
    %cst_121 = arith.constant 0.000000e+00 : f32
    %166 = vector.broadcast %cst_121 : f32 to vector<24x96xf32>
    %167 = arith.select %157, %165, %166 : vector<24x96xi1>, vector<24x96xf32>
    %cst_122 = arith.constant dense<0.000000e+00> : vector<24x32xf32>
    %168 = tpu.matmul %167, %159, %cst_122 {dimension_numbers = #tpu.dot_dimension_numbers<[1], [0], [0], [1], [0, 0, 1, 1], [], []>} : vector<24x96xf32>, vector<96x32xf32>, vector<24x32xf32> -> vector<24x32xf32>
    %169 = vector.broadcast %161 : vector<1x32xf32> to vector<24x32xf32>
    %170 = arith.addf %168, %169 : vector<24x32xf32>
    %cst_123 = arith.constant 0.000000e+00 : f32
    %171 = vector.broadcast %cst_123 : f32 to vector<24x32xf32>
    %172 = arith.cmpf ogt, %170, %171 : vector<24x32xf32>
    %cst_124 = arith.constant 1.000000e-01 : f32
    %173 = vector.broadcast %cst_124 : f32 to vector<24x32xf32>
    %174 = arith.mulf %173, %170 : vector<24x32xf32>
    %175 = arith.select %172, %170, %174 : vector<24x32xi1>, vector<24x32xf32>
    %c5 = arith.constant 5 : index
    %c0_125 = arith.constant 0 : index
    %c0_126 = arith.constant 0 : index
    %176 = vector.load %arg3[%c5, %c0_125, %c0_126] : memref<8x96x32xf32, #tpu.memory_space<vmem>>, vector<1x96x32xf32>
    %177 = vector.shape_cast %176 : vector<1x96x32xf32> to vector<96x32xf32>
    %c5_127 = arith.constant 5 : index
    %c0_128 = arith.constant 0 : index
    %c0_129 = arith.constant 0 : index
    %178 = vector.load %arg4[%c5_127, %c0_128, %c0_129] : memref<8x1x32xf32, #tpu.memory_space<vmem>>, vector<1x1x32xf32>
    %179 = vector.shape_cast %178 : vector<1x1x32xf32> to vector<1x32xf32>
    %c2_130 = arith.constant 2 : index
    %c0_131 = arith.constant 0 : index
    %180 = vector.load %arg6[%c2_130, %c0_131] : memref<98x96xf32, #tpu.memory_space<vmem>>, vector<24x32xf32>
    tpu.vector_store %arg6[%c2_130, %c0_131], %175 {strides = array<i32>} : memref<98x96xf32, #tpu.memory_space<vmem>>, vector<24x32xf32>,
    %c1_132 = arith.constant 1 : index
    %c32_133 = arith.constant 32 : index
    %181 = vector.load %arg6[%c1_132, %c32_133] : memref<98x96xf32, #tpu.memory_space<vmem>>, vector<24x32xf32>
    tpu.vector_store %arg6[%c1_132, %c32_133], %175 {strides = array<i32>} : memref<98x96xf32, #tpu.memory_space<vmem>>, vector<24x32xf32>,
    %c0_134 = arith.constant 0 : index
    %c64_135 = arith.constant 64 : index
    %182 = vector.load %arg6[%c0_134, %c64_135] : memref<98x96xf32, #tpu.memory_space<vmem>>, vector<24x32xf32>
    tpu.vector_store %arg6[%c0_134, %c64_135], %175 {strides = array<i32>} : memref<98x96xf32, #tpu.memory_space<vmem>>, vector<24x32xf32>,
    %c1_136 = arith.constant 1 : index
    %c0_137 = arith.constant 0 : index
    %183 = vector.load %arg6[%c1_136, %c0_137] : memref<98x96xf32, #tpu.memory_space<vmem>>, vector<24x96xf32>
    %cst_138 = arith.constant 0.000000e+00 : f32
    %184 = vector.broadcast %cst_138 : f32 to vector<24x96xf32>
    %185 = arith.select %157, %183, %184 : vector<24x96xi1>, vector<24x96xf32>
    %cst_139 = arith.constant dense<0.000000e+00> : vector<24x32xf32>
    %186 = tpu.matmul %185, %177, %cst_139 {dimension_numbers = #tpu.dot_dimension_numbers<[1], [0], [0], [1], [0, 0, 1, 1], [], []>} : vector<24x96xf32>, vector<96x32xf32>, vector<24x32xf32> -> vector<24x32xf32>
    %187 = vector.broadcast %179 : vector<1x32xf32> to vector<24x32xf32>
    %188 = arith.addf %186, %187 : vector<24x32xf32>
    %189 = arith.addf %141, %188 : vector<24x32xf32>
    %cst_140 = arith.constant 0.000000e+00 : f32
    %190 = vector.broadcast %cst_140 : f32 to vector<24x32xf32>
    %191 = arith.cmpf ogt, %189, %190 : vector<24x32xf32>
    %cst_141 = arith.constant 1.000000e-01 : f32
    %192 = vector.broadcast %cst_141 : f32 to vector<24x32xf32>
    %193 = arith.mulf %192, %189 : vector<24x32xf32>
    %194 = arith.select %191, %189, %193 : vector<24x32xi1>, vector<24x32xf32>
    %c0_142 = arith.constant 0 : index
    %c0_143 = arith.constant 0 : index
    %195 = vector.load %arg7[%c0_142, %c0_143] : memref<96x32xf32, #tpu.memory_space<vmem>>, vector<24x32xf32>
    tpu.vector_store %arg7[%c0_142, %c0_143], %194 {strides = array<i32>} : memref<96x32xf32, #tpu.memory_space<vmem>>, vector<24x32xf32>,
    %c0_144 = arith.constant 0 : index
    %c0_145 = arith.constant 0 : index
    %196 = tpu.strided_load %arg7[%c0_144, %c0_145] {strides = array<i32: 2, 1>} : memref<96x32xf32, #tpu.memory_space<vmem>>, vector<12x32xf32>
    %c1_146 = arith.constant 1 : index
    %c0_147 = arith.constant 0 : index
    %197 = tpu.strided_load %arg7[%c1_146, %c0_147] {strides = array<i32: 2, 1>} : memref<96x32xf32, #tpu.memory_space<vmem>>, vector<12x32xf32>
    %198 = arith.maximumf %196, %197 : vector<12x32xf32>
    %199 = tpu.iota {dimensions = array<i32: 0>} : vector<12x96xi32>
    %200 = tpu.iota {dimensions = array<i32: 1>} : vector<12x96xi32>
    %c1_i32 = arith.constant 1 : i32
    %201 = vector.broadcast %c1_i32 : i32 to vector<12x96xi32>
    %202 = arith.andi %199, %201 : vector<12x96xi32>
    %c32_i32_148 = arith.constant 32 : i32
    %203 = vector.broadcast %c32_i32_148 : i32 to vector<12x96xi32>
    %204 = arith.cmpi slt, %200, %203 : vector<12x96xi32>
    %c0_i32_149 = arith.constant 0 : i32
    %205 = vector.broadcast %c0_i32_149 : i32 to vector<12x96xi32>
    %206 = arith.cmpi eq, %202, %205 : vector<12x96xi32>
    %207 = arith.andi %204, %206 : vector<12x96xi1>
    %c64_i32_150 = arith.constant 64 : i32
    %208 = vector.broadcast %c64_i32_150 : i32 to vector<12x96xi32>
    %209 = arith.cmpi sge, %200, %208 : vector<12x96xi32>
    %c1_i32_151 = arith.constant 1 : i32
    %210 = vector.broadcast %c1_i32_151 : i32 to vector<12x96xi32>
    %211 = arith.cmpi eq, %202, %210 : vector<12x96xi32>
    %212 = arith.andi %209, %211 : vector<12x96xi1>
    %213 = arith.ori %207, %212 : vector<12x96xi1>
    %cst_152 = arith.constant dense<true> : vector<12x96xi1>
    %214 = arith.xori %213, %cst_152 : vector<12x96xi1>
    %c6 = arith.constant 6 : index
    %c0_153 = arith.constant 0 : index
    %c0_154 = arith.constant 0 : index
    %215 = vector.load %arg3[%c6, %c0_153, %c0_154] : memref<8x96x32xf32, #tpu.memory_space<vmem>>, vector<1x96x32xf32>
    %216 = vector.shape_cast %215 : vector<1x96x32xf32> to vector<96x32xf32>
    %c6_155 = arith.constant 6 : index
    %c0_156 = arith.constant 0 : index
    %c0_157 = arith.constant 0 : index
    %217 = vector.load %arg4[%c6_155, %c0_156, %c0_157] : memref<8x1x32xf32, #tpu.memory_space<vmem>>, vector<1x1x32xf32>
    %218 = vector.shape_cast %217 : vector<1x1x32xf32> to vector<1x32xf32>
    %c2_158 = arith.constant 2 : index
    %c0_159 = arith.constant 0 : index
    %219 = vector.load %arg6[%c2_158, %c0_159] : memref<98x96xf32, #tpu.memory_space<vmem>>, vector<12x32xf32>
    tpu.vector_store %arg6[%c2_158, %c0_159], %198 {strides = array<i32>} : memref<98x96xf32, #tpu.memory_space<vmem>>, vector<12x32xf32>,
    %c1_160 = arith.constant 1 : index
    %c32_161 = arith.constant 32 : index
    %220 = vector.load %arg6[%c1_160, %c32_161] : memref<98x96xf32, #tpu.memory_space<vmem>>, vector<12x32xf32>
    tpu.vector_store %arg6[%c1_160, %c32_161], %198 {strides = array<i32>} : memref<98x96xf32, #tpu.memory_space<vmem>>, vector<12x32xf32>,
    %c0_162 = arith.constant 0 : index
    %c64_163 = arith.constant 64 : index
    %221 = vector.load %arg6[%c0_162, %c64_163] : memref<98x96xf32, #tpu.memory_space<vmem>>, vector<12x32xf32>
    tpu.vector_store %arg6[%c0_162, %c64_163], %198 {strides = array<i32>} : memref<98x96xf32, #tpu.memory_space<vmem>>, vector<12x32xf32>,
    %c1_164 = arith.constant 1 : index
    %c0_165 = arith.constant 0 : index
    %222 = vector.load %arg6[%c1_164, %c0_165] : memref<98x96xf32, #tpu.memory_space<vmem>>, vector<12x96xf32>
    %cst_166 = arith.constant 0.000000e+00 : f32
    %223 = vector.broadcast %cst_166 : f32 to vector<12x96xf32>
    %224 = arith.select %214, %222, %223 : vector<12x96xi1>, vector<12x96xf32>
    %cst_167 = arith.constant dense<0.000000e+00> : vector<12x32xf32>
    %225 = tpu.matmul %224, %216, %cst_167 {dimension_numbers = #tpu.dot_dimension_numbers<[1], [0], [0], [1], [0, 0, 1, 1], [], []>} : vector<12x96xf32>, vector<96x32xf32>, vector<12x32xf32> -> vector<12x32xf32>
    %226 = vector.broadcast %218 : vector<1x32xf32> to vector<12x32xf32>
    %227 = arith.addf %225, %226 : vector<12x32xf32>
    %cst_168 = arith.constant 0.000000e+00 : f32
    %228 = vector.broadcast %cst_168 : f32 to vector<12x32xf32>
    %229 = arith.cmpf ogt, %227, %228 : vector<12x32xf32>
    %cst_169 = arith.constant 1.000000e-01 : f32
    %230 = vector.broadcast %cst_169 : f32 to vector<12x32xf32>
    %231 = arith.mulf %230, %227 : vector<12x32xf32>
    %232 = arith.select %229, %227, %231 : vector<12x32xi1>, vector<12x32xf32>
    %c7 = arith.constant 7 : index
    %c0_170 = arith.constant 0 : index
    %c0_171 = arith.constant 0 : index
    %233 = vector.load %arg3[%c7, %c0_170, %c0_171] : memref<8x96x32xf32, #tpu.memory_space<vmem>>, vector<1x96x32xf32>
    %234 = vector.shape_cast %233 : vector<1x96x32xf32> to vector<96x32xf32>
    %c7_172 = arith.constant 7 : index
    %c0_173 = arith.constant 0 : index
    %c0_174 = arith.constant 0 : index
    %235 = vector.load %arg4[%c7_172, %c0_173, %c0_174] : memref<8x1x32xf32, #tpu.memory_space<vmem>>, vector<1x1x32xf32>
    %236 = vector.shape_cast %235 : vector<1x1x32xf32> to vector<1x32xf32>
    %c2_175 = arith.constant 2 : index
    %c0_176 = arith.constant 0 : index
    %237 = vector.load %arg6[%c2_175, %c0_176] : memref<98x96xf32, #tpu.memory_space<vmem>>, vector<12x32xf32>
    tpu.vector_store %arg6[%c2_175, %c0_176], %232 {strides = array<i32>} : memref<98x96xf32, #tpu.memory_space<vmem>>, vector<12x32xf32>,
    %c1_177 = arith.constant 1 : index
    %c32_178 = arith.constant 32 : index
    %238 = vector.load %arg6[%c1_177, %c32_178] : memref<98x96xf32, #tpu.memory_space<vmem>>, vector<12x32xf32>
    tpu.vector_store %arg6[%c1_177, %c32_178], %232 {strides = array<i32>} : memref<98x96xf32, #tpu.memory_space<vmem>>, vector<12x32xf32>,
    %c0_179 = arith.constant 0 : index
    %c64_180 = arith.constant 64 : index
    %239 = vector.load %arg6[%c0_179, %c64_180] : memref<98x96xf32, #tpu.memory_space<vmem>>, vector<12x32xf32>
    tpu.vector_store %arg6[%c0_179, %c64_180], %232 {strides = array<i32>} : memref<98x96xf32, #tpu.memory_space<vmem>>, vector<12x32xf32>,
    %c1_181 = arith.constant 1 : index
    %c0_182 = arith.constant 0 : index
    %240 = vector.load %arg6[%c1_181, %c0_182] : memref<98x96xf32, #tpu.memory_space<vmem>>, vector<12x96xf32>
    %cst_183 = arith.constant 0.000000e+00 : f32
    %241 = vector.broadcast %cst_183 : f32 to vector<12x96xf32>
    %242 = arith.select %214, %240, %241 : vector<12x96xi1>, vector<12x96xf32>
    %cst_184 = arith.constant dense<0.000000e+00> : vector<12x32xf32>
    %243 = tpu.matmul %242, %234, %cst_184 {dimension_numbers = #tpu.dot_dimension_numbers<[1], [0], [0], [1], [0, 0, 1, 1], [], []>} : vector<12x96xf32>, vector<96x32xf32>, vector<12x32xf32> -> vector<12x32xf32>
    %244 = vector.broadcast %236 : vector<1x32xf32> to vector<12x32xf32>
    %245 = arith.addf %243, %244 : vector<12x32xf32>
    %246 = arith.addf %198, %245 : vector<12x32xf32>
    %cst_185 = arith.constant 0.000000e+00 : f32
    %247 = vector.broadcast %cst_185 : f32 to vector<12x32xf32>
    %248 = arith.cmpf ogt, %246, %247 : vector<12x32xf32>
    %cst_186 = arith.constant 1.000000e-01 : f32
    %249 = vector.broadcast %cst_186 : f32 to vector<12x32xf32>
    %250 = arith.mulf %249, %246 : vector<12x32xf32>
    %251 = arith.select %248, %246, %250 : vector<12x32xi1>, vector<12x32xf32>
    %c0_187 = arith.constant 0 : index
    %c0_188 = arith.constant 0 : index
    %252 = vector.load %arg7[%c0_187, %c0_188] : memref<96x32xf32, #tpu.memory_space<vmem>>, vector<12x32xf32>
    tpu.vector_store %arg7[%c0_187, %c0_188], %251 {strides = array<i32>} : memref<96x32xf32, #tpu.memory_space<vmem>>, vector<12x32xf32>,
    %c0_189 = arith.constant 0 : index
    %c0_190 = arith.constant 0 : index
    %253 = tpu.strided_load %arg7[%c0_189, %c0_190] {strides = array<i32: 2, 1>} : memref<96x32xf32, #tpu.memory_space<vmem>>, vector<6x32xf32>
    %c1_191 = arith.constant 1 : index
    %c0_192 = arith.constant 0 : index
    %254 = tpu.strided_load %arg7[%c1_191, %c0_192] {strides = array<i32: 2, 1>} : memref<96x32xf32, #tpu.memory_space<vmem>>, vector<6x32xf32>
    %255 = arith.maximumf %253, %254 : vector<6x32xf32>
    %cst_193 = arith.constant dense<0.000000e+00> : vector<32xf32>
    %256 = vector.multi_reduction <add>, %255, %cst_193 [0] : vector<6x32xf32> to vector<32xf32>
    %257 = vector.shape_cast %256 : vector<32xf32> to vector<1x32xf32>
    %cst_194 = arith.constant 6.000000e+00 : f32
    %258 = vector.broadcast %cst_194 : f32 to vector<1x32xf32>
    %259 = arith.divf %257, %258 : vector<1x32xf32>
    %c0_195 = arith.constant 0 : index
    %c0_196 = arith.constant 0 : index
    %260 = vector.load %arg5[%c0_195, %c0_196] : memref<1x32xf32, #tpu.memory_space<vmem>>, vector<1x32xf32>
    tpu.vector_store %arg5[%c0_195, %c0_196], %259 {strides = array<i32>} : memref<1x32xf32, #tpu.memory_space<vmem>>, vector<1x32xf32>,
    return
  }
}

</mosaic_0001>

<bundles_post_ra>
// kernel: _embed.1
= control target key start
LH: loop header
LB: loop body
LE: loop exit
PB: predicated region body
PF: predicated region fallthrough
CT: control target
= control target key end

     0   :  { %vm136_vm0 = vcmask 31744   ;;  %s3056_s24 = smov 4   ;;  %vm326_vm1 = vcmask 1043456   ;;  %s3057_s20 = smov 8   ;;  %v35_v14 = vlaneseq  ;;  %vm4565_vm2 = vcmask 64544   ;;  %s4555_s0 = inlined_call_operand.vmem [shape: f32[96,4], index: 0, kind: input, shape index: {}]   ;;  %s4556_s1 = inlined_call_operand.vmem [shape: f32[12,32], index: 1, kind: input, shape index: {}]   ;;  %s4557_s3 = inlined_call_operand.vmem [shape: f32[8,96,32], index: 3, kind: input, shape index: {}]   ;;  %s4558_s2 = inlined_call_operand.vmem [shape: f32[1,32], index: 2, kind: input, shape index: {}]   ;;  %s4559_s4 = inlined_call_operand.vmem [shape: f32[8,1,32], index: 4, kind: input, shape index: {}]   ;;  %s4560_s5 = inlined_call_operand.vmem [shape: f32[1,32], index: 5, kind: output, shape index: {}]  }
   0x1   :  { %v22_v0 = vld [vmem:[%s4555_s0 + $0x10] sm:$0xff]  ;;  %v20_v1 = vld [vmem:[%s4555_s0] sm:$0xff]  ;;  %v21_v2 = vld [vmem:[%s4555_s0 + $0x8] sm:$0xff]  ;;  %vm4566_vm3 = vcmask 97344   ;;  %vm4563_vm10 = vmmov 1   ;;  %vm4571_vm13 = vcmask 97280  }
   0x2   :  { %165 = vrot.lane.b32.xlu1 %v22_v0, %s3056_s24  ;;  %139 = vst.msk [vmem:[#allocation2 + $0x12] sm:$0xff] %vm136_vm0, %v22_v0  ;;  %161 = vrot.lane.b32.xlu0 %v20_v1, %s3056_s24  ;;  %137 = vst.msk [vmem:[#allocation2 + $0x2] sm:$0xff] %vm136_vm0, %v20_v1  ;;  %v24_v3 = vld [vmem:[%s4555_s0 + $0x20] sm:$0xff]  ;;  %v23_v4 = vld [vmem:[%s4555_s0 + $0x18] sm:$0xff]  ;;  %v3159_v15 = vshrl.u32 %v35_v14, 7  ;;  %v3166_v19 = vand.u32 127, %v35_v14 }
   0x3   :  { %138 = vst.msk [vmem:[#allocation2 + $0xa] sm:$0xff] %vm136_vm0, %v21_v2  ;;  %141 = vst.msk [vmem:[#allocation2 + $0x22] sm:$0xff] %vm136_vm0, %v24_v3  ;;  %v26_v5 = vld [vmem:[%s4555_s0 + $0x30] sm:$0xff]  ;;  %v25_v6 = vld [vmem:[%s4555_s0 + $0x28] sm:$0xff]  ;;  %v4605_v42 = vmov 0  ;;  %v4609_v51 = vmov 0 }
   0x4   :  { %140 = vst.msk [vmem:[#allocation2 + $0x1a] sm:$0xff] %vm136_vm0, %v23_v4  ;;  %v28_v7 = vld [vmem:[%s4555_s0 + $0x40] sm:$0xff]  ;;  %143 = vst.msk [vmem:[#allocation2 + $0x32] sm:$0xff] %vm136_vm0, %v26_v5  ;;  %v27_v8 = vld [vmem:[%s4555_s0 + $0x38] sm:$0xff]  ;;  %v3162_v18 = vadd.s32 8, %v3159_v15  ;;  %v50_v20 = vand.u32 15, %v3159_v15 }
   0x5   :  { %142 = vst.msk [vmem:[#allocation2 + $0x2a] sm:$0xff] %vm136_vm0, %v25_v6  ;;  %145 = vst.msk [vmem:[#allocation2 + $0x42] sm:$0xff] %vm136_vm0, %v28_v7  ;;  %v30_v9 = vld [vmem:[%s4555_s0 + $0x50] sm:$0xff]  ;;  %v29_v10 = vld [vmem:[%s4555_s0 + $0x48] sm:$0xff]  ;;  %vm4561_vm4 = vcmp.lt.s32.totalorder %v3166_v19, 4  ;;  %v3178_v25 = vadd.s32 16, %v3159_v15 }
   0x6   :  { %144 = vst.msk [vmem:[#allocation2 + $0x3a] sm:$0xff] %vm136_vm0, %v27_v8  ;;  %147 = vst.msk [vmem:[#allocation2 + $0x52] sm:$0xff] %vm136_vm0, %v30_v9  ;;  %v31_v11 = vld [vmem:[%s4555_s0 + $0x58] sm:$0xff]  ;;  %v33_v12 = vld [vmem:[%s4556_s1 + $0x8] sm:$0xf]  ;;  %210 = vrot.lane.b32.xlu1 %v20_v1, %s3057_s20  ;;  %163 = vrot.lane.b32.xlu0 %v21_v2, %s3056_s24  ;;  %v51_v23 = vand.u32 15, %v3162_v18 }
   0x7   :  { %146 = vst.msk [vmem:[#allocation2 + $0x4a] sm:$0xff] %vm136_vm0, %v29_v10  ;;  %148 = vst.msk [vmem:[#allocation2 + $0x5a] sm:$0xff] %vm136_vm0, %v31_v11  ;;  %v32_v13 = vld [vmem:[%s4556_s1] sm:$0xff]  ;;  %2757 = vmatprep.subr.msk.mxu0 %vm326_vm1, %v33_v12  ;;  %vm3173_vm5 = vcmp.eq.s32.totalorder %v50_v20, 0  ;;  %vm4562_vm6 = vcmp.ge.s32.totalorder %v3166_v19, 8  ;;  %v3186_v29 = vadd.s32 24, %v3159_v15 }
   0x8   :  { %2758 = vmatpush3.msk.msra.mxu0 %vm326_vm1, %v33_v12  ;;  %vm3181_vm7 = vcmp.eq.s32.totalorder %v51_v23, 15  ;;  %vm75_vm8 = vmand %vm4561_vm4, %vm3173_vm5  ;;  %v52_v30 = vand.u32 15, %v3178_v25  ;;  %v3217_v37 = vadd.s32 32, %v3159_v15  ;;  %v3224_v43 = vadd.s32 40, %v3159_v15  ;;  %v510_v1 = vld [vmem:[%s4557_s3 + $0x28] sm:$0xff]  ;;  %s3059_s11 = smov 64  }
   0x9   :  { %2759 = vmatprep.subr.mxu0 %v32_v13  ;;  %vm101_vm9 = vmand %vm4562_vm6, %vm3181_vm7  ;;  %v53_v33 = vand.u32 15, %v3186_v29  ;;  %v42_v52 = vadd.s32 48, %v3159_v15  ;;  %v4611_v57 = vmov 0  ;;  %v43_v58 = vadd.s32 56, %v3159_v15  ;;  %s3060_s12 = smov 32  }
   0xa   :  { %214 = vrot.lane.b32.xlu1 %v22_v0, %s3057_s20  ;;  %212 = vrot.lane.b32.xlu0 %v21_v2, %s3057_s20  ;;  %vm3203_vm11 = vmxor %vm75_vm8, %vm4563_vm10  ;;  %vm3212_vm14 = vcmp.eq.s32.totalorder %v52_v30, 0  ;;  %v54_v46 = vand.u32 15, %v3217_v37  ;;  %v55_v49 = vand.u32 15, %v3224_v43  ;;  %v4615_v2 = vmov 0 }
   0xb   :  { %2760 = vmatpush3.msra.mxu0 %v32_v13  ;;  %vm3208_vm12 = vmxor %vm101_vm9, %vm4563_vm10  ;;  %vm3219_vm15 = vcmp.eq.s32.totalorder %v53_v33, 15  ;;  %v56_v61 = vand.u32 15, %v42_v52  ;;  %v57_v0 = vand.u32 15, %v43_v58  ;;  %v4628_v23 = vmov 0  ;;  %v513_v58 = vld [vmem:[%s4557_s3 + $0x40] sm:$0xff] }
   0xc   :  { %v4606_v42 = vsel %vm3219_vm15, 4294967295, %v4605_v42  ;;  %vm77_vm0 = vmand %vm4561_vm4, %vm3212_vm14 }
   0xd   :  { %vm103_vm1 = vmand %vm4562_vm6, %vm3219_vm15 }
   0xe   :  { %169 = vrot.lane.b32.xlu1 %v24_v3, %s3056_s24  ;;  %167 = vrot.lane.b32.xlu0 %v23_v4, %s3056_s24  ;;  %vm126_vm8 = vmxor %vm77_vm0, %vm4563_vm10 }
   0xf   :  { %vm3248_vm9 = vmxor %vm103_vm1, %vm4563_vm10 }
  0x12   :  { %218 = vrot.lane.b32.xlu1 %v24_v3, %s3057_s20  ;;  %216 = vrot.lane.b32.xlu0 %v23_v4, %s3057_s20  ;;  %v44_v3 = vadd.s32 64, %v3159_v15 }
  0x14   :  { %v58_v12 = vand.u32 15, %v44_v3 }
  0x16   :  { %173 = vrot.lane.b32.xlu1 %v26_v5, %s3056_s24  ;;  %171 = vrot.lane.b32.xlu0 %v25_v6, %s3056_s24 }
  0x1a   :  { %222 = vrot.lane.b32.xlu1 %v26_v5, %s3057_s20  ;;  %220 = vrot.lane.b32.xlu0 %v25_v6, %s3057_s20 }
  0x1e   :  { %177 = vrot.lane.b32.xlu1 %v28_v7, %s3056_s24  ;;  %175 = vrot.lane.b32.xlu0 %v27_v8, %s3056_s24 }
  0x22   :  { %226 = vrot.lane.b32.xlu1 %v28_v7, %s3057_s20  ;;  %224 = vrot.lane.b32.xlu0 %v27_v8, %s3057_s20  ;;  %v4617_v8 = vmov 0 }
  0x26   :  { %181 = vrot.lane.b32.xlu1 %v30_v9, %s3056_s24  ;;  %179 = vrot.lane.b32.xlu0 %v29_v10, %s3056_s24 }
  0x2a   :  { %230 = vrot.lane.b32.xlu1 %v30_v9, %s3057_s20  ;;  %228 = vrot.lane.b32.xlu0 %v29_v10, %s3057_s20  ;;  %v45_v9 = vadd.s32 72, %v3159_v15 }
  0x2e   :  { %183 = vrot.lane.b32.xlu0 %v31_v11, %s3056_s24  ;;  %232 = vrot.lane.b32.xlu1 %v31_v11, %s3057_s20 }
  0x74   :  { %v166_v16 = vpop.permute.xlu1 %165  ;;  %v162_v17 = vpop.permute.xlu0 %161 }
  0x75   :  { %200 = vst.msk [vmem:[#allocation2 + $0x11] sm:$0xff] %vm4565_vm2, %v166_v16  ;;  %198 = vst.msk [vmem:[#allocation2 + $0x1] sm:$0xff] %vm4565_vm2, %v162_v17  ;;  %v59_v16 = vand.u32 15, %v45_v9  ;;  %v46_v17 = vadd.s32 80, %v3159_v15  ;;  %v507_v9 = vld [vmem:[%s4557_s3 + $0x10] sm:$0xff] }
  0x77   :  { %v60_v33 = vand.u32 15, %v46_v17 }
  0x78   :  { %v211_v21 = vpop.permute.xlu1 %210  ;;  %v164_v22 = vpop.permute.xlu0 %163 }
  0x79   :  { %247 = vst.msk [vmem:[#allocation2] sm:$0xff] %vm4566_vm3, %v211_v21  ;;  %v47_v21 = vadd.s32 88, %v3159_v15 }
  0x7a   :  { %199 = vst.msk [vmem:[#allocation2 + $0x9] sm:$0xff] %vm4565_vm2, %v164_v22 }
  0x7c   :  { %v215_v26 = vpop.permute.xlu1 %214  ;;  %v213_v27 = vpop.permute.xlu0 %212 }
  0x7d   :  { %249 = vst.msk [vmem:[#allocation2 + $0x10] sm:$0xff] %vm4566_vm3, %v215_v26  ;;  %248 = vst.msk [vmem:[#allocation2 + $0x8] sm:$0xff] %vm4566_vm3, %v213_v27 }
  0x80   :  { %v170_v31 = vpop.permute.xlu1 %169  ;;  %v168_v32 = vpop.permute.xlu0 %167 }
  0x81   :  { %202 = vst.msk [vmem:[#allocation2 + $0x21] sm:$0xff] %vm4565_vm2, %v170_v31  ;;  %201 = vst.msk [vmem:[#allocation2 + $0x19] sm:$0xff] %vm4565_vm2, %v168_v32  ;;  %v4630_v32 = vmov 0 }
  0x84   :  { %v219_v38 = vpop.permute.xlu1 %218  ;;  %v217_v39 = vpop.permute.xlu0 %216  ;;  %v259_v40 = vld [vmem:[#allocation2 + $0x1] sm:$0xff]  ;;  %v260_v41 = vld [vmem:[#allocation2 + $0x9] sm:$0xff] }
  0x85   :  { %251 = vst.msk [vmem:[#allocation2 + $0x20] sm:$0xff] %vm4566_vm3, %v219_v38  ;;  %250 = vst.msk [vmem:[#allocation2 + $0x18] sm:$0xff] %vm4566_vm3, %v217_v39  ;;  %v271_v44 = vsel %vm3203_vm11, %v259_v40, 0.0  ;;  %v272_v45 = vsel %vm3208_vm12, %v260_v41, 0.0  ;;  %vm3252_vm11 = vcmp.eq.s32.totalorder %v54_v46, 0  ;;  %vm3257_vm12 = vcmp.eq.s32.totalorder %v55_v49, 15 }
  0x86   :  { %2761 = vmatprep.mubr.msk.f32.mxu0 %vm4571_vm13, %v271_v44  ;;  %v4610_v51 = vsel %vm3252_vm11, 4294967295, %v4609_v51  ;;  %v4612_v57 = vsel %vm3257_vm12, 4294967295, %v4611_v57  ;;  %vm79_vm0 = vmand %vm4561_vm4, %vm3252_vm11  ;;  %vm3284_vm4 = vcmp.eq.s32.totalorder %v56_v61, 0  ;;  %v61_v38 = vand.u32 15, %v47_v21 }
  0x87   :  { %2762 = vmatmul.mubr.msk.f32.vlgmr.msra.gmra.mxu0 %vm4571_vm13, %v272_v45  ;;  %vm105_vm1 = vmand %vm4562_vm6, %vm3257_vm12  ;;  %v4616_v2 = vsel %vm3284_vm4, 4294967295, %v4615_v2  ;;  %vm3289_vm6 = vcmp.eq.s32.totalorder %v57_v0, 15  ;;  %v4636_v41 = vmov 0 }
  0x88   :  { %v174_v47 = vpop.permute.xlu1 %173  ;;  %v172_v48 = vpop.permute.xlu0 %171  ;;  %v4618_v8 = vsel %vm3289_vm6, 4294967295, %v4617_v8  ;;  %vm3352_vm11 = vcmp.eq.s32.totalorder %v61_v38, 15 }
  0x89   :  { %204 = vst.msk [vmem:[#allocation2 + $0x31] sm:$0xff] %vm4565_vm2, %v174_v47  ;;  %203 = vst.msk [vmem:[#allocation2 + $0x29] sm:$0xff] %vm4565_vm2, %v172_v48 }
  0x8c   :  { %v223_v53 = vpop.permute.xlu1 %222  ;;  %v221_v54 = vpop.permute.xlu0 %220  ;;  %v261_v55 = vld [vmem:[#allocation2 + $0x11] sm:$0xff]  ;;  %v262_v56 = vld [vmem:[#allocation2 + $0x19] sm:$0xff] }
  0x8d   :  { %253 = vst.msk [vmem:[#allocation2 + $0x30] sm:$0xff] %vm4566_vm3, %v223_v53  ;;  %252 = vst.msk [vmem:[#allocation2 + $0x28] sm:$0xff] %vm4566_vm3, %v221_v54  ;;  %v273_v59 = vsel %vm126_vm8, %v261_v55, 0.0  ;;  %v274_v60 = vsel %vm3248_vm9, %v262_v56, 0.0  ;;  %v516_v54 = vld [vmem:[%s4557_s3 + $0x58] sm:$0xff]  ;;  %v515_v55 = vld [vmem:[%s4557_s3 + $0x50] sm:$0xff] }
  0x8e   :  { %2764 = vmatprep.mubr.msk.f32.mxu0 %vm4571_vm13, %v273_v59  ;;  %vm128_vm8 = vmxor %vm79_vm0, %vm4563_vm10  ;;  %vm4619_vm0 = vcmp.lt.s32.totalorder %v3166_v19, 4  ;;  %2779 = vmatprep.subr.mxu1 %v516_v54  ;;  %v514_v56 = vld [vmem:[%s4557_s3 + $0x48] sm:$0xff]  ;;  %v3387_v59 = vld [vmem:[%s4558_s2] ss:$0 sm:$0xff] }
  0x8f   :  { %2765 = vmatmul.mubr.msk.f32.gmra.mxu0 %vm4571_vm13, %v274_v60  ;;  %vm3280_vm9 = vmxor %vm105_vm1, %vm4563_vm10  ;;  %vm4620_vm10 = vcmp.ge.s32.totalorder %v3166_v19, 8  ;;  %2780 = vmatpush3.msra.mxu1 %v516_v54  ;;  %v512_v60 = vld [vmem:[%s4557_s3 + $0x38] sm:$0xff] }
  0x90   :  { %v178_v62 = vpop.permute.xlu1 %177  ;;  %v176_v63 = vpop.permute.xlu0 %175  ;;  %vm81_vm1 = vmand %vm4619_vm0, %vm3284_vm4  ;;  %2781 = vmatprep.subr.mxu1 %v515_v55 }
  0x91   :  { %206 = vst.msk [vmem:[#allocation2 + $0x41] sm:$0xff] %vm4565_vm2, %v178_v62  ;;  %205 = vst.msk [vmem:[#allocation2 + $0x39] sm:$0xff] %vm4565_vm2, %v176_v63  ;;  %2782 = vmatpush3.msra.mxu1 %v515_v55  ;;  %v511_v63 = vld [vmem:[%s4557_s3 + $0x30] sm:$0xff] }
  0x92   :  { %vm107_vm2 = vmand %vm4620_vm10, %vm3289_vm6  ;;  %vm3322_vm10 = vcmp.eq.s32.totalorder %v58_v12, 0  ;;  %2783 = vmatprep.subr.mxu1 %v514_v56  ;;  %v506_v12 = vld [vmem:[%s4557_s3 + $0x8] sm:$0xff] }
  0x93   :  { %v4629_v23 = vsel %vm3322_vm10, 4294967295, %v4628_v23  ;;  %2784 = vmatpush3.msra.mxu1 %v514_v56 }
  0x94   :  { %v227_v4 = vpop.permute.xlu1 %226  ;;  %v225_v5 = vpop.permute.xlu0 %224  ;;  %v263_v6 = vld [vmem:[#allocation2 + $0x21] sm:$0xff]  ;;  %v264_v7 = vld [vmem:[#allocation2 + $0x29] sm:$0xff]  ;;  %2785 = vmatprep.subr.mxu1 %v513_v58 }
  0x95   :  { %255 = vst.msk [vmem:[#allocation2 + $0x40] sm:$0xff] %vm4566_vm3, %v227_v4  ;;  %254 = vst.msk [vmem:[#allocation2 + $0x38] sm:$0xff] %vm4566_vm3, %v225_v5  ;;  %v275_v10 = vsel %vm128_vm8, %v263_v6, 0.0  ;;  %v276_v11 = vsel %vm3280_vm9, %v264_v7, 0.0  ;;  %vm4621_vm8 = vcmask 64544   ;;  %vm4623_vm3 = vmmov 1   ;;  %2786 = vmatpush3.msra.mxu1 %v513_v58 }
  0x96   :  { %2767 = vmatprep.mubr.msk.f32.mxu0 %vm4571_vm13, %v275_v10  ;;  %vm4622_vm9 = vmmov %vm4621_vm8  ;;  %2787 = vmatprep.subr.mxu1 %v512_v60  ;;  %v509_v4 = vld [vmem:[%s4557_s3 + $0x20] sm:$0xff]  ;;  %v508_v5 = vld [vmem:[%s4557_s3 + $0x18] sm:$0xff] }
  0x97   :  { %2768 = vmatmul.mubr.msk.f32.gmra.mxu0 %vm4571_vm13, %v276_v11  ;;  %vm3312_vm12 = vmxor %vm81_vm1, %vm4623_vm3  ;;  %vm4632_vm1 = vcmask 97344   ;;  %2788 = vmatpush3.msra.mxu1 %v512_v60 }
  0x98   :  { %v182_v13 = vpop.permute.xlu1 %181  ;;  %v180_v14 = vpop.permute.xlu0 %179  ;;  %vm3318_vm0 = vmxor %vm107_vm2, %vm4623_vm3  ;;  %vm4634_vm2 = vcmp.lt.s32.totalorder %v3166_v19, 4  ;;  %2789 = vmatprep.subr.mxu1 %v511_v63 }
  0x99   :  { %208 = vst.msk [vmem:[#allocation2 + $0x51] sm:$0xff] %vm4621_vm8, %v182_v13  ;;  %vm3326_vm8 = vcmp.eq.s32.totalorder %v59_v16, 15  ;;  %vm83_vm6 = vmand %vm4634_vm2, %vm3322_vm10  ;;  %vm4641_vm2 = vcmask 97344   ;;  %vm4644_vm10 = vcmask 97280   ;;  %2790 = vmatpush3.msra.mxu1 %v511_v63  ;;  %v505_v13 = vld [vmem:[%s4557_s3] sm:$0xff] }
  0x9a   :  { %207 = vst.msk [vmem:[#allocation2 + $0x49] sm:$0xff] %vm4622_vm9, %v180_v14  ;;  %v4631_v32 = vsel %vm3326_vm8, 4294967295, %v4630_v32  ;;  %vm4633_vm9 = vmmov %vm4632_vm1  ;;  %2791 = vmatprep.subr.mxu1 %v510_v1 }
  0x9b   :  { %vm132_vm4 = vmxor %vm83_vm6, %vm4623_vm3  ;;  %2792 = vmatpush3.msra.mxu1 %v510_v1 }
  0x9c   :  { %v231_v26 = vpop.permute.xlu1 %230  ;;  %v229_v27 = vpop.permute.xlu0 %228  ;;  %v265_v30 = vld [vmem:[#allocation2 + $0x31] sm:$0xff]  ;;  %v266_v31 = vld [vmem:[#allocation2 + $0x39] sm:$0xff]  ;;  %vm4645_vm15 = vmmov %vm4644_vm10  ;;  %2793 = vmatprep.subr.mxu1 %v509_v4 }
  0x9d   :  { %257 = vst.msk [vmem:[#allocation2 + $0x50] sm:$0xff] %vm4632_vm1, %v231_v26  ;;  %v277_v34 = vsel %vm3312_vm12, %v265_v30, 0.0  ;;  %v278_v35 = vsel %vm3318_vm0, %v266_v31, 0.0  ;;  %vm4635_vm1 = vcmp.ge.s32.totalorder %v3166_v19, 8  ;;  %vm3346_vm12 = vcmp.eq.s32.totalorder %v60_v33, 0  ;;  %2794 = vmatpush3.msra.mxu1 %v509_v4 }
  0x9e   :  { %256 = vst.msk [vmem:[#allocation2 + $0x48] sm:$0xff] %vm4633_vm9, %v229_v27  ;;  %2770 = vmatprep.mubr.msk.f32.mxu0 %vm4571_vm13, %v277_v34  ;;  %vm109_vm9 = vmand %vm4635_vm1, %vm3326_vm8  ;;  %v4637_v41 = vsel %vm3346_vm12, 4294967295, %v4636_v41  ;;  %vm4638_vm0 = vcmask 64544   ;;  %vm4642_vm1 = vcmp.lt.s32.totalorder %v3166_v19, 4  ;;  %2795 = vmatprep.subr.mxu1 %v508_v5 }
  0x9f   :  { %2771 = vmatmul.mubr.msk.f32.gmra.mxu0 %vm4571_vm13, %v278_v35  ;;  %vm133_vm13 = vmxor %vm109_vm9, %vm4623_vm3  ;;  %2796 = vmatpush3.msra.mxu1 %v508_v5 }
  0xa0   :  { %v184_v39 = vpop.permute.xlu0 %183  ;;  %v233_v40 = vpop.permute.xlu1 %232  ;;  %vm85_vm8 = vmand %vm4642_vm1, %vm3346_vm12  ;;  %2797 = vmatprep.subr.mxu1 %v507_v9 }
  0xa1   :  { %209 = vst.msk [vmem:[#allocation2 + $0x59] sm:$0xff] %vm4638_vm0, %v184_v39  ;;  %vm4643_vm0 = vcmp.ge.s32.totalorder %v3166_v19, 8  ;;  %vm4646_vm1 = vmmov %vm4644_vm10  ;;  %2798 = vmatpush3.msra.mxu1 %v507_v9 }
  0xa2   :  { %258 = vst.msk [vmem:[#allocation2 + $0x58] sm:$0xff] %vm4641_vm2, %v233_v40  ;;  %vm111_vm6 = vmand %vm4643_vm0, %vm3352_vm11  ;;  %2799 = vmatprep.subr.mxu1 %v506_v12  ;;  %vm4585_vm0 = vcmask 785408  }
  0xa3   :  { %vm134_vm2 = vmxor %vm85_vm8, %vm4623_vm3  ;;  %2800 = vmatpush3.msra.mxu1 %v506_v12 }
  0xa4   :  { %vm135_vm9 = vmxor %vm111_vm6, %vm4623_vm3  ;;  %2801 = vmatprep.subr.mxu1 %v505_v13  ;;  %vm4578_vm6 = vcmp.ge.s32.totalorder %v3166_v19, 64 }
  0xa5   :  { %v267_v45 = vld [vmem:[#allocation2 + $0x41] sm:$0xff]  ;;  %v268_v46 = vld [vmem:[#allocation2 + $0x49] sm:$0xff]  ;;  %vm4647_vm12 = vmmov %vm4646_vm1  ;;  %2802 = vmatpush3.msra.mxu1 %v505_v13 }
  0xa6   :  { %v279_v47 = vsel %vm132_vm4, %v267_v45, 0.0  ;;  %v280_v48 = vsel %vm133_vm13, %v268_v46, 0.0  ;;  %vm4576_vm4 = vcmask 261120   ;;  %vm4582_vm13 = vcmask 523520  }
  0xa7   :  { %2773 = vmatprep.mubr.msk.f32.mxu0 %vm4644_vm10, %v279_v47  ;;  %vm4579_vm10 = vcmp.lt.s32.totalorder %v3166_v19, 32 }
  0xa8   :  { %2774 = vmatmul.mubr.msk.f32.gmra.mxu0 %vm4645_vm15, %v280_v48  ;;  %vm4577_vm15 = vcmask 785920   ;;  %vm456_vm8 = vmand %vm4579_vm10, %vm3173_vm5 }
  0xa9   :  { %v269_v49 = vld [vmem:[#allocation2 + $0x51] sm:$0xff]  ;;  %v270_v50 = vld [vmem:[#allocation2 + $0x59] sm:$0xff]  ;;  %vm470_vm5 = vmand %vm4578_vm6, %vm3181_vm7  ;;  %vm4654_vm7 = vnez %v4606_v42 }
  0xaa   :  { %v281_v52 = vsel %vm134_vm2, %v269_v49, 0.0  ;;  %v282_v53 = vsel %vm135_vm9, %v270_v50, 0.0  ;;  %vm458_vm2 = vmand %vm4579_vm10, %vm3212_vm14 }
  0xab   :  { %2776 = vmatprep.mubr.msk.f32.mxu0 %vm4646_vm1, %v281_v52  ;;  %vm3554_vm9 = vmxor %vm470_vm5, %vm4623_vm3 }
  0xac   :  { %2777 = vmatmul.mubr.msk.f32.gmra.mxu0 %vm4647_vm12, %v282_v53  ;;  %vm3532_vm12 = vmxor %vm456_vm8, %vm4623_vm3  ;;  %vm4655_vm8 = vnez %v4610_v51 }
  0xad   :  { %vm3560_vm1 = vmxor %vm458_vm2, %vm4623_vm3 }
  0xae   :  { %vm472_vm14 = vmand %vm4578_vm6, %vm4654_vm7 }
  0xaf   :  { %vm460_vm5 = vmand %vm4579_vm10, %vm4655_vm8 }
  0xb0   :  { %vm3581_vm2 = vmxor %vm472_vm14, %vm4623_vm3  ;;  %vm4660_vm14 = vnez %v4612_v57 }
  0xb1   :  { %vm3587_vm7 = vmxor %vm460_vm5, %vm4623_vm3  ;;  %vm4661_vm5 = vnez %v4616_v2 }
  0xb2   :  { %vm474_vm8 = vmand %vm4578_vm6, %vm4660_vm14  ;;  %vm4666_vm6 = vcmask 785920  }
 0x147   :  { %v2763_v61 = vpop.f32.mrf.mxu0 }
 0x148   :  { %v3393_v62 = vadd.f32 %v2763_v61, %v3387_v59 }
 0x149   :  { %v396_v0 = vpop.f32.mrf.mxu0 }
 0x14a   :  { %v3402_v3 = vadd.f32 %v3387_v59, %v396_v0  ;;  %594 = vrot.lane.b32.xlu0 %v3393_v62, %s3059_s11  ;;  %545 = vrot.lane.b32.xlu1 %v3393_v62, %s3060_s12  ;;  %520 = vst.msk [vmem:[#allocation2 + $0xa] sm:$0xff] %vm4576_vm4, %v3393_v62 }
 0x14c   :  { %519 = vst.msk [vmem:[#allocation2 + $0x2] sm:$0xff] %vm4576_vm4, %v3402_v3 }
 0x14e   :  { %592 = vrot.lane.b32.xlu1 %v3402_v3, %s3059_s11  ;;  %543 = vrot.lane.b32.xlu0 %v3402_v3, %s3060_s12 }
 0x14f   :  { %v2766_v6 = vpop.f32.mrf.mxu0 }
 0x150   :  { %v3423_v7 = vadd.f32 %v2766_v6, %v3387_v59 }
 0x151   :  { %v406_v10 = vpop.f32.mrf.mxu0 }
 0x152   :  { %v3429_v11 = vadd.f32 %v3387_v59, %v406_v10  ;;  %549 = vrot.lane.b32.xlu0 %v3423_v7, %s3060_s12  ;;  %522 = vst.msk [vmem:[#allocation2 + $0x1a] sm:$0xff] %vm4576_vm4, %v3423_v7  ;;  %v4658_v10 = vmov 0 }
 0x153   :  { %v4659_v10 = vsel %vm3587_vm7, 4294967295, %v4658_v10 }
 0x154   :  { %596 = vrot.lane.b32.xlu1 %v3429_v11, %s3059_s11  ;;  %521 = vst.msk [vmem:[#allocation2 + $0x12] sm:$0xff] %vm4576_vm4, %v3429_v11 }
 0x156   :  { %598 = vrot.lane.b32.xlu0 %v3423_v7, %s3059_s11 }
 0x157   :  { %v2769_v14 = vpop.f32.mrf.mxu0 }
 0x158   :  { %v3448_v16 = vadd.f32 %v2769_v14, %v3387_v59 }
 0x159   :  { %v416_v17 = vpop.f32.mrf.mxu0 }
 0x15a   :  { %v3451_v20 = vadd.f32 %v3387_v59, %v416_v17  ;;  %547 = vrot.lane.b32.xlu0 %v3429_v11, %s3060_s12  ;;  %524 = vst.msk [vmem:[#allocation2 + $0x2a] sm:$0xff] %vm4576_vm4, %v3448_v16 }
 0x15c   :  { %551 = vrot.lane.b32.xlu1 %v3451_v20, %s3060_s12  ;;  %523 = vst.msk [vmem:[#allocation2 + $0x22] sm:$0xff] %vm4576_vm4, %v3451_v20 }
 0x15e   :  { %553 = vrot.lane.b32.xlu0 %v3448_v16, %s3060_s12 }
 0x15f   :  { %v2772_v21 = vpop.f32.mrf.mxu0 }
 0x160   :  { %v3464_v22 = vadd.f32 %v2772_v21, %v3387_v59  ;;  %600 = vrot.lane.b32.xlu1 %v3451_v20, %s3059_s11 }
 0x161   :  { %v426_v26 = vpop.f32.mrf.mxu0 }
 0x162   :  { %v3469_v27 = vadd.f32 %v3387_v59, %v426_v26  ;;  %602 = vrot.lane.b32.xlu0 %v3448_v16, %s3059_s11  ;;  %526 = vst.msk [vmem:[#allocation2 + $0x3a] sm:$0xff] %vm4576_vm4, %v3464_v22  ;;  %v4662_v26 = vmov 0 }
 0x164   :  { %555 = vrot.lane.b32.xlu1 %v3469_v27, %s3060_s12  ;;  %525 = vst.msk [vmem:[#allocation2 + $0x32] sm:$0xff] %vm4576_vm4, %v3469_v27 }
 0x166   :  { %557 = vrot.lane.b32.xlu0 %v3464_v22, %s3060_s12 }
 0x168   :  { %v2775_v30 = vpop.f32.mrf.mxu0  ;;  %604 = vrot.lane.b32.xlu1 %v3469_v27, %s3059_s11 }
 0x169   :  { %v3482_v31 = vadd.f32 %v2775_v30, %v3387_v59 }
 0x16a   :  { %v436_v33 = vpop.f32.mrf.mxu0  ;;  %606 = vrot.lane.b32.xlu0 %v3464_v22, %s3059_s11 }
 0x16b   :  { %v3487_v34 = vadd.f32 %v3387_v59, %v436_v33  ;;  %528 = vst.msk [vmem:[#allocation2 + $0x4a] sm:$0xff] %vm4576_vm4, %v3482_v31  ;;  %v4664_v33 = vmov 0 }
 0x16c   :  { %v2778_v35 = vpop.f32.mrf.mxu0 }
 0x16d   :  { %559 = vrot.lane.b32.xlu1 %v3487_v34, %s3060_s12  ;;  %527 = vst.msk [vmem:[#allocation2 + $0x42] sm:$0xff] %vm4576_vm4, %v3487_v34  ;;  %v3498_v38 = vadd.f32 %v2778_v35, %v3387_v59 }
 0x16e   :  { %v446_v39 = vpop.f32.mrf.mxu0  ;;  %561 = vrot.lane.b32.xlu0 %v3482_v31, %s3060_s12 }
 0x16f   :  { %v3503_v40 = vadd.f32 %v3387_v59, %v446_v39  ;;  %530 = vst.msk [vmem:[#allocation2 + $0x5a] sm:$0xff] %vm4576_vm4, %v3498_v38 }
 0x171   :  { %608 = vrot.lane.b32.xlu1 %v3487_v34, %s3059_s11  ;;  %529 = vst.msk [vmem:[#allocation2 + $0x52] sm:$0xff] %vm4576_vm4, %v3503_v40  ;;  %vm462_vm4 = vmand %vm4579_vm10, %vm4661_vm5  ;;  %vm4668_vm5 = vnez %v4618_v8 }
 0x172   :  { %610 = vrot.lane.b32.xlu0 %v3482_v31, %s3059_s11  ;;  %vm3615_vm14 = vmxor %vm462_vm4, %vm4623_vm3  ;;  %vm4669_vm4 = vcmp.ge.s32.totalorder %v3166_v19, 64 }
 0x173   :  { %v4665_v33 = vsel %vm3615_vm14, 4294967295, %v4664_v33  ;;  %vm476_vm10 = vmand %vm4669_vm4, %vm4668_vm5  ;;  %vm4676_vm4 = vcmask 785920  }
 0x175   :  { %563 = vrot.lane.b32.xlu1 %v3503_v40, %s3060_s12 }
 0x176   :  { %565 = vrot.lane.b32.xlu0 %v3498_v38, %s3060_s12 }
 0x179   :  { %612 = vrot.lane.b32.xlu1 %v3503_v40, %s3059_s11 }
 0x17d   :  { %614 = vrot.lane.b32.xlu1 %v3498_v38, %s3059_s11 }
 0x1bc   :  { %v595_v45 = vpop.permute.xlu0 %594  ;;  %v546_v46 = vpop.permute.xlu1 %545 }
 0x1bd   :  { %581 = vst.msk [vmem:[#allocation2 + $0x9] sm:$0xff] %vm4582_vm13, %v546_v46 }
 0x1c0   :  { %v593_v47 = vpop.permute.xlu1 %592  ;;  %v544_v48 = vpop.permute.xlu0 %543 }
 0x1c1   :  { %580 = vst.msk [vmem:[#allocation2 + $0x1] sm:$0xff] %vm4582_vm13, %v544_v48  ;;  %v4672_v48 = vmov 0 }
 0x1c2   :  { %629 = vst.msk [vmem:[#allocation2] sm:$0xff] %vm4577_vm15, %v593_v47  ;;  %630 = vst.msk [vmem:[#allocation2 + $0x8] sm:$0xff] %vm4577_vm15, %v595_v45 }
 0x1c4   :  { %v550_v49 = vpop.permute.xlu0 %549 }
 0x1c5   :  { %583 = vst.msk [vmem:[#allocation2 + $0x19] sm:$0xff] %vm4582_vm13, %v550_v49 }
 0x1c6   :  { %v597_v54 = vpop.permute.xlu1 %596 }
 0x1c8   :  { %v599_v52 = vpop.permute.xlu0 %598 }
 0x1c9   :  { %v641_v53 = vld [vmem:[#allocation2 + $0x1] sm:$0xff] }
 0x1ca   :  { %v653_v55 = vsel %vm3532_vm12, %v641_v53, 0.0 }
 0x1cb   :  { %2803 = vmatprep.mubr.msk.f32.mxu1 %vm4585_vm0, %v653_v55 }
 0x1cc   :  { %v548_v24 = vpop.permute.xlu0 %547 }
 0x1cd   :  { %582 = vst.msk [vmem:[#allocation2 + $0x11] sm:$0xff] %vm4582_vm13, %v548_v24  ;;  %v2505_v24 = vld [vmem:[%s4557_s3 + $0x110] sm:$0xff] }
 0x1ce   :  { %631 = vst.msk [vmem:[#allocation2 + $0x10] sm:$0xff] %vm4577_vm15, %v597_v54  ;;  %632 = vst.msk [vmem:[#allocation2 + $0x18] sm:$0xff] %vm4577_vm15, %v599_v52  ;;  %v552_v56 = vpop.permute.xlu1 %551  ;;  %v2506_v52 = vld [vmem:[%s4557_s3 + $0x118] sm:$0xff] }
 0x1cf   :  { %584 = vst.msk [vmem:[#allocation2 + $0x21] sm:$0xff] %vm4582_vm13, %v552_v56  ;;  %2863 = vmatprep.subr.mxu1 %v2506_v52 }
 0x1d0   :  { %v554_v58 = vpop.permute.xlu0 %553 }
 0x1d1   :  { %585 = vst.msk [vmem:[#allocation2 + $0x29] sm:$0xff] %vm4582_vm13, %v554_v58  ;;  %v3849_v58 = vld [vmem:[%s4559_s4 + $0x1] ss:$0 sm:$0xff] }
 0x1d2   :  { %v601_v59 = vpop.permute.xlu1 %600 }
 0x1d3   :  { %633 = vst.msk [vmem:[#allocation2 + $0x20] sm:$0xff] %vm4577_vm15, %v601_v59 }
 0x1d4   :  { %v603_v61 = vpop.permute.xlu0 %602 }
 0x1d5   :  { %634 = vst.msk [vmem:[#allocation2 + $0x28] sm:$0xff] %vm4577_vm15, %v603_v61  ;;  %v642_v36 = vld [vmem:[#allocation2 + $0x9] sm:$0xff]  ;;  %v643_v63 = vld [vmem:[#allocation2 + $0x11] sm:$0xff] }
 0x1d6   :  { %v556_v0 = vpop.permute.xlu1 %555  ;;  %v654_v1 = vsel %vm3554_vm9, %v642_v36, 0.0  ;;  %v655_v4 = vsel %vm3560_vm1, %v643_v63, 0.0  ;;  %v2480_v63 = vld [vmem:[%s4557_s3 + $0xb8] sm:$0xff] }
 0x1d7   :  { %586 = vst.msk [vmem:[#allocation2 + $0x31] sm:$0xff] %vm4582_vm13, %v556_v0  ;;  %2804 = vmatmul.mubr.msk.f32.vlgmr.msra.gmra.mxu1 %vm4585_vm0, %v654_v1  ;;  %2821 = vmatprep.subr.mxu0 %v2480_v63  ;;  %v2479_v0 = vld [vmem:[%s4557_s3 + $0xb0] sm:$0xff]  ;;  %v3700_v1 = vld [vmem:[%s4559_s4] ss:$0 sm:$0xff] }
 0x1d8   :  { %v558_v42 = vpop.permute.xlu0 %557  ;;  %2806 = vmatprep.mubr.msk.f32.mxu1 %vm4585_vm0, %v655_v4  ;;  %2822 = vmatpush3.msra.mxu0 %v2480_v63  ;;  %v2478_v4 = vld [vmem:[%s4557_s3 + $0xa8] sm:$0xff]  ;;  %v2469_v63 = vld [vmem:[%s4557_s3 + $0x60] sm:$0xff] }
 0x1d9   :  { %587 = vst.msk [vmem:[#allocation2 + $0x39] sm:$0xff] %vm4582_vm13, %v558_v42  ;;  %2823 = vmatprep.subr.mxu0 %v2479_v0  ;;  %2864 = vmatpush3.msra.mxu1 %v2506_v52 }
 0x1da   :  { %v605_v6 = vpop.permute.xlu1 %604  ;;  %v644_v9 = vld [vmem:[#allocation2 + $0x19] sm:$0xff]  ;;  %2824 = vmatpush3.msra.mxu0 %v2479_v0  ;;  %2865 = vmatprep.subr.mxu1 %v2505_v24 }
 0x1db   :  { %635 = vst.msk [vmem:[#allocation2 + $0x30] sm:$0xff] %vm4577_vm15, %v605_v6  ;;  %v656_v51 = vsel %vm3581_vm2, %v644_v9, 0.0  ;;  %2825 = vmatprep.subr.mxu0 %v2478_v4  ;;  %v2477_v6 = vld [vmem:[%s4557_s3 + $0xa0] sm:$0xff]  ;;  %2866 = vmatpush3.msra.mxu1 %v2505_v24 }
 0x1dc   :  { %v607_v12 = vpop.permute.xlu0 %606  ;;  %2807 = vmatmul.mubr.msk.f32.gmra.mxu1 %vm4585_vm0, %v656_v51  ;;  %v645_v13 = vld [vmem:[#allocation2 + $0x21] sm:$0xff]  ;;  %2826 = vmatpush3.msra.mxu0 %v2478_v4  ;;  %v2476_v51 = vld [vmem:[%s4557_s3 + $0x98] sm:$0xff] }
 0x1dd   :  { %636 = vst.msk [vmem:[#allocation2 + $0x38] sm:$0xff] %vm4577_vm15, %v607_v12  ;;  %v657_v14 = vsel %vm3587_vm7, %v645_v13, 0.0  ;;  %vm3609_vm15 = vmxor %vm474_vm8, %vm4623_vm3  ;;  %2827 = vmatprep.subr.mxu0 %v2477_v6 }
 0x1de   :  { %2809 = vmatprep.mubr.msk.f32.mxu1 %vm4585_vm0, %v657_v14  ;;  %v4663_v26 = vsel %vm3609_vm15, 4294967295, %v4662_v26  ;;  %vm4667_vm8 = vmmov %vm4666_vm6  ;;  %2828 = vmatpush3.msra.mxu0 %v2477_v6 }
 0x1df   :  { %v560_v17 = vpop.permute.xlu1 %559  ;;  %2829 = vmatprep.subr.mxu0 %v2476_v51 }
 0x1e0   :  { %588 = vst.msk [vmem:[#allocation2 + $0x41] sm:$0xff] %vm4582_vm13, %v560_v17  ;;  %v562_v21 = vpop.permute.xlu0 %561  ;;  %2830 = vmatpush3.msra.mxu0 %v2476_v51  ;;  %v2475_v17 = vld [vmem:[%s4557_s3 + $0x90] sm:$0xff] }
 0x1e1   :  { %589 = vst.msk [vmem:[#allocation2 + $0x49] sm:$0xff] %vm4582_vm13, %v562_v21  ;;  %2831 = vmatprep.subr.mxu0 %v2475_v17 }
 0x1e2   :  { %v646_v30 = vld [vmem:[#allocation2 + $0x29] sm:$0xff]  ;;  %2832 = vmatpush3.msra.mxu0 %v2475_v17 }
 0x1e3   :  { %v609_v57 = vpop.permute.xlu1 %608  ;;  %v658_v2 = vsel %vm3609_vm15, %v646_v30, 0.0  ;;  %vm4671_vm15 = vcmp.lt.s32.totalorder %v3166_v19, 32 }
 0x1e4   :  { %637 = vst.msk [vmem:[#allocation2 + $0x40] sm:$0xff] %vm4666_vm6, %v609_v57  ;;  %v611_v35 = vpop.permute.xlu0 %610  ;;  %2810 = vmatmul.mubr.msk.f32.gmra.mxu1 %vm4585_vm0, %v658_v2  ;;  %v647_v39 = vld [vmem:[#allocation2 + $0x31] sm:$0xff]  ;;  %vm4670_vm6 = vnez %v4629_v23  ;;  %v2474_v2 = vld [vmem:[%s4557_s3 + $0x88] sm:$0xff] }
 0x1e5   :  { %638 = vst.msk [vmem:[#allocation2 + $0x48] sm:$0xff] %vm4667_vm8, %v611_v35  ;;  %v659_v45 = vsel %vm3615_vm14, %v647_v39, 0.0  ;;  %vm464_vm7 = vmand %vm4671_vm15, %vm4670_vm6  ;;  %vm4677_vm15 = vnez %v4631_v32  ;;  %2833 = vmatprep.subr.mxu0 %v2474_v2 }
 0x1e6   :  { %2812 = vmatprep.mubr.msk.f32.mxu1 %vm4585_vm0, %v659_v45  ;;  %vm3637_vm8 = vmxor %vm476_vm10, %vm4623_vm3  ;;  %vm4678_vm10 = vcmp.ge.s32.totalorder %v3166_v19, 64  ;;  %2834 = vmatpush3.msra.mxu0 %v2474_v2 }
 0x1e7   :  { %v564_v46 = vpop.permute.xlu1 %563  ;;  %v4673_v48 = vsel %vm3637_vm8, 4294967295, %v4672_v48  ;;  %vm3643_vm5 = vmxor %vm464_vm7, %vm4623_vm3 }
 0x1e8   :  { %590 = vst.msk [vmem:[#allocation2 + $0x51] sm:$0xff] %vm4582_vm13, %v564_v46  ;;  %v566_v47 = vpop.permute.xlu0 %565  ;;  %vm478_vm6 = vmand %vm4678_vm10, %vm4677_vm15 }
 0x1e9   :  { %591 = vst.msk [vmem:[#allocation2 + $0x59] sm:$0xff] %vm4582_vm13, %v566_v47  ;;  %vm4679_vm7 = vmmov %vm4676_vm4  ;;  %vm4682_vm13 = vnez %v4637_v41 }
 0x1ea   :  { %vm4684_vm15 = vmmov %vm4678_vm10 }
 0x1eb   :  { %v613_v8 = vpop.permute.xlu1 %612  ;;  %v648_v49 = vld [vmem:[#allocation2 + $0x39] sm:$0xff]  ;;  %vm480_vm10 = vmand %vm4684_vm15, %vm3352_vm11 }
 0x1ec   :  { %639 = vst.msk [vmem:[#allocation2 + $0x50] sm:$0xff] %vm4676_vm4, %v613_v8  ;;  %v660_v23 = vsel %vm3637_vm8, %v648_v49, 0.0  ;;  %v649_v53 = vld [vmem:[#allocation2 + $0x41] sm:$0xff]  ;;  %vm3660_vm4 = vmxor %vm478_vm6, %vm4623_vm3  ;;  %vm4683_vm8 = vcmp.lt.s32.totalorder %v3166_v19, 32 }
 0x1ed   :  { %2813 = vmatmul.mubr.msk.f32.gmra.mxu1 %vm4585_vm0, %v660_v23  ;;  %v661_v54 = vsel %vm3643_vm5, %v649_v53, 0.0  ;;  %vm466_vm14 = vmand %vm4683_vm8, %vm4682_vm13  ;;  %v2473_v8 = vld [vmem:[%s4557_s3 + $0x80] sm:$0xff]  ;;  %v2472_v53 = vld [vmem:[%s4557_s3 + $0x78] sm:$0xff] }
 0x1ee   :  { %2815 = vmatprep.mubr.msk.f32.mxu1 %vm4585_vm0, %v661_v54  ;;  %vm3681_vm6 = vmxor %vm480_vm10, %vm4623_vm3  ;;  %2835 = vmatprep.subr.mxu0 %v2473_v8 }
 0x1ef   :  { %v615_v55 = vpop.permute.xlu1 %614  ;;  %2836 = vmatpush3.msra.mxu0 %v2473_v8 }
 0x1f0   :  { %640 = vst.msk [vmem:[#allocation2 + $0x58] sm:$0xff] %vm4679_vm7, %v615_v55  ;;  %vm3675_vm7 = vmxor %vm466_vm14, %vm4623_vm3  ;;  %vm4689_vm14 = vcmask 261120   ;;  %2837 = vmatprep.subr.mxu0 %v2472_v53 }
 0x1f1   :  { %vm4690_vm8 = vmmov %vm4689_vm14  ;;  %2838 = vmatpush3.msra.mxu0 %v2472_v53 }
 0x1f3   :  { %v650_v32 = vld [vmem:[#allocation2 + $0x49] sm:$0xff] }
 0x1f4   :  { %v662_v56 = vsel %vm3660_vm4, %v650_v32, 0.0  ;;  %v2471_v32 = vld [vmem:[%s4557_s3 + $0x70] sm:$0xff] }
 0x1f5   :  { %2816 = vmatmul.mubr.msk.f32.gmra.mxu1 %vm4585_vm0, %v662_v56  ;;  %2839 = vmatprep.subr.mxu0 %v2471_v32 }
 0x1f6   :  { %2840 = vmatpush3.msra.mxu0 %v2471_v32 }
 0x1f7   :  { %v651_v44 = vld [vmem:[#allocation2 + $0x51] sm:$0xff]  ;;  %v652_v59 = vld [vmem:[#allocation2 + $0x59] sm:$0xff] }
 0x1f8   :  { %v663_v61 = vsel %vm3675_vm7, %v651_v44, 0.0  ;;  %v664_v36 = vsel %vm3681_vm6, %v652_v59, 0.0  ;;  %v2470_v59 = vld [vmem:[%s4557_s3 + $0x68] sm:$0xff] }
 0x1f9   :  { %2818 = vmatprep.mubr.msk.f32.mxu1 %vm4585_vm0, %v663_v61  ;;  %2841 = vmatprep.subr.mxu0 %v2470_v59 }
 0x1fa   :  { %2819 = vmatmul.mubr.msk.f32.gmra.mxu1 %vm4585_vm0, %v664_v36  ;;  %2842 = vmatpush3.msra.mxu0 %v2470_v59 }
 0x1fb   :  { %2843 = vmatprep.subr.mxu0 %v2469_v63 }
 0x1fc   :  { %2844 = vmatpush3.msra.mxu0 %v2469_v63 }
 0x297   :  { %v2805_v42 = vpop.f32.mrf.mxu1 }
 0x298   :  { %v780_v9 = vadd.f32 %v2805_v42, %v3700_v1 }
 0x299   :  { %v774_v12 = vpop.f32.mrf.mxu1 }
 0x29a   :  { %v846_v13 = vmul.f32 0.1, %v780_v9  ;;  %v775_v14 = vadd.f32 %v3700_v1, %v774_v12  ;;  %vm834_vm11 = vcmp.gt.f32.partialorder %v780_v9, 0.0 }
 0x29c   :  { %v845_v21 = vmul.f32 0.1, %v775_v14  ;;  %v2808_v57 = vpop.f32.mrf.mxu1  ;;  %v858_v30 = vsel %vm834_vm11, %v780_v9, %v846_v13  ;;  %vm833_vm13 = vcmp.gt.f32.partialorder %v775_v14, 0.0  ;;  %vm4691_vm11 = vmmov %vm4690_vm8 }
 0x29d   :  { %v790_v35 = vadd.f32 %v2808_v57, %v3700_v1  ;;  %958 = vrot.lane.b32.xlu0 %v858_v30, %s3059_s11  ;;  %885 = vst.msk [vmem:[#allocation2 + $0xa] sm:$0xff] %vm4689_vm14, %v858_v30  ;;  %910 = vrot.lane.b32.xlu1 %v858_v30, %s3060_s12 }
 0x29e   :  { %v784_v39 = vpop.f32.mrf.mxu1  ;;  %v857_v45 = vsel %vm833_vm13, %v775_v14, %v845_v21  ;;  %vm4692_vm13 = vmmov %vm4690_vm8 }
 0x29f   :  { %v848_v46 = vmul.f32 0.1, %v790_v35  ;;  %v785_v47 = vadd.f32 %v3700_v1, %v784_v39  ;;  %884 = vst.msk [vmem:[#allocation2 + $0x2] sm:$0xff] %vm4690_vm8, %v857_v45  ;;  %vm836_vm15 = vcmp.gt.f32.partialorder %v790_v35, 0.0 }
 0x2a1   :  { %v847_v49 = vmul.f32 0.1, %v785_v47  ;;  %956 = vrot.lane.b32.xlu1 %v857_v45, %s3059_s11  ;;  %908 = vrot.lane.b32.xlu0 %v857_v45, %s3060_s12  ;;  %vm835_vm10 = vcmp.gt.f32.partialorder %v785_v47, 0.0  ;;  %v860_v23 = vsel %vm836_vm15, %v790_v35, %v848_v46  ;;  %vm4693_vm15 = vmmov %vm4691_vm11 }
 0x2a2   :  { %887 = vst.msk [vmem:[#allocation2 + $0x1a] sm:$0xff] %vm4691_vm11, %v860_v23 }
 0x2a3   :  { %v859_v54 = vsel %vm835_vm10, %v785_v47, %v847_v49  ;;  %vm4694_vm10 = vmmov %vm4691_vm11 }
 0x2a4   :  { %v2811_v55 = vpop.f32.mrf.mxu1  ;;  %886 = vst.msk [vmem:[#allocation2 + $0x12] sm:$0xff] %vm4692_vm13, %v859_v54 }
 0x2a5   :  { %v800_v56 = vadd.f32 %v2811_v55, %v3700_v1  ;;  %960 = vrot.lane.b32.xlu1 %v859_v54, %s3059_s11  ;;  %914 = vrot.lane.b32.xlu0 %v860_v23, %s3060_s12 }
 0x2a6   :  { %v794_v44 = vpop.f32.mrf.mxu1 }
 0x2a7   :  { %v850_v61 = vmul.f32 0.1, %v800_v56  ;;  %v795_v36 = vadd.f32 %v3700_v1, %v794_v44  ;;  %vm838_vm14 = vcmp.gt.f32.partialorder %v800_v56, 0.0 }
 0x2a9   :  { %v849_v0 = vmul.f32 0.1, %v795_v36  ;;  %962 = vrot.lane.b32.xlu0 %v860_v23, %s3059_s11  ;;  %vm837_vm8 = vcmp.gt.f32.partialorder %v795_v36, 0.0  ;;  %v862_v4 = vsel %vm838_vm14, %v800_v56, %v850_v61  ;;  %vm4695_vm14 = vmmov %vm4694_vm10 }
 0x2aa   :  { %889 = vst.msk [vmem:[#allocation2 + $0x2a] sm:$0xff] %vm4693_vm15, %v862_v4 }
 0x2ab   :  { %v861_v42 = vsel %vm837_vm8, %v795_v36, %v849_v0  ;;  %vm4696_vm8 = vmmov %vm4694_vm10 }
 0x2ac   :  { %888 = vst.msk [vmem:[#allocation2 + $0x22] sm:$0xff] %vm4694_vm10, %v861_v42  ;;  %916 = vrot.lane.b32.xlu1 %v861_v42, %s3060_s12 }
 0x2ad   :  { %v2814_v6 = vpop.f32.mrf.mxu1  ;;  %912 = vrot.lane.b32.xlu0 %v859_v54, %s3060_s12 }
 0x2ae   :  { %v810_v9 = vadd.f32 %v2814_v6, %v3700_v1 }
 0x2af   :  { %v804_v51 = vpop.f32.mrf.mxu1 }
 0x2b0   :  { %v852_v12 = vmul.f32 0.1, %v810_v9  ;;  %v805_v13 = vadd.f32 %v3700_v1, %v804_v51  ;;  %vm840_vm11 = vcmp.gt.f32.partialorder %v810_v9, 0.0  ;;  %964 = vrot.lane.b32.xlu1 %v861_v42, %s3059_s11 }
 0x2b1   :  { %918 = vrot.lane.b32.xlu0 %v862_v4, %s3060_s12 }
 0x2b2   :  { %v851_v14 = vmul.f32 0.1, %v805_v13  ;;  %vm839_vm13 = vcmp.gt.f32.partialorder %v805_v13, 0.0  ;;  %v864_v17 = vsel %vm840_vm11, %v810_v9, %v852_v12  ;;  %vm4697_vm11 = vmmov %vm4696_vm8 }
 0x2b3   :  { %891 = vst.msk [vmem:[#allocation2 + $0x3a] sm:$0xff] %vm4695_vm14, %v864_v17 }
 0x2b4   :  { %v863_v21 = vsel %vm839_vm13, %v805_v13, %v851_v14  ;;  %vm4698_vm13 = vmmov %vm4696_vm8 }
 0x2b5   :  { %v2817_v57 = vpop.f32.mrf.mxu1  ;;  %890 = vst.msk [vmem:[#allocation2 + $0x32] sm:$0xff] %vm4696_vm8, %v863_v21  ;;  %920 = vrot.lane.b32.xlu1 %v863_v21, %s3060_s12  ;;  %966 = vrot.lane.b32.xlu0 %v862_v4, %s3059_s11 }
 0x2b6   :  { %v820_v30 = vadd.f32 %v2817_v57, %v3700_v1 }
 0x2b7   :  { %v814_v2 = vpop.f32.mrf.mxu1 }
 0x2b8   :  { %v854_v35 = vmul.f32 0.1, %v820_v30  ;;  %v815_v39 = vadd.f32 %v3700_v1, %v814_v2  ;;  %vm842_vm15 = vcmp.gt.f32.partialorder %v820_v30, 0.0 }
 0x2b9   :  { %968 = vrot.lane.b32.xlu1 %v863_v21, %s3059_s11  ;;  %922 = vrot.lane.b32.xlu0 %v864_v17, %s3060_s12 }
 0x2ba   :  { %v853_v45 = vmul.f32 0.1, %v815_v39  ;;  %v2820_v46 = vpop.f32.mrf.mxu1  ;;  %vm841_vm10 = vcmp.gt.f32.partialorder %v815_v39, 0.0  ;;  %v866_v47 = vsel %vm842_vm15, %v820_v30, %v854_v35  ;;  %vm4699_vm15 = vmmov %vm4697_vm11 }
 0x2bb   :  { %v830_v8 = vadd.f32 %v2820_v46, %v3700_v1  ;;  %893 = vst.msk [vmem:[#allocation2 + $0x4a] sm:$0xff] %vm4697_vm11, %v866_v47 }
 0x2bc   :  { %v824_v49 = vpop.f32.mrf.mxu1  ;;  %v865_v23 = vsel %vm841_vm10, %v815_v39, %v853_v45  ;;  %vm4700_vm10 = vmmov %vm4697_vm11  ;;  %vm4701_vm11 = vcmask 523520  }
 0x2bd   :  { %v856_v53 = vmul.f32 0.1, %v830_v8  ;;  %v825_v54 = vadd.f32 %v3700_v1, %v824_v49  ;;  %892 = vst.msk [vmem:[#allocation2 + $0x42] sm:$0xff] %vm4698_vm13, %v865_v23  ;;  %924 = vrot.lane.b32.xlu1 %v865_v23, %s3060_s12  ;;  %vm844_vm14 = vcmp.gt.f32.partialorder %v830_v8, 0.0  ;;  %970 = vrot.lane.b32.xlu0 %v864_v17, %s3059_s11  ;;  %vm4702_vm13 = vmmov %vm4701_vm11 }
 0x2bf   :  { %v855_v55 = vmul.f32 0.1, %v825_v54  ;;  %vm843_vm8 = vcmp.gt.f32.partialorder %v825_v54, 0.0  ;;  %v868_v32 = vsel %vm844_vm14, %v830_v8, %v856_v53  ;;  %vm4703_vm14 = vcmask 785920  }
 0x2c0   :  { %895 = vst.msk [vmem:[#allocation2 + $0x5a] sm:$0xff] %vm4699_vm15, %v868_v32  ;;  %vm4705_vm15 = vmmov %vm4701_vm11 }
 0x2c1   :  { %972 = vrot.lane.b32.xlu1 %v865_v23, %s3059_s11  ;;  %v867_v56 = vsel %vm843_vm8, %v825_v54, %v855_v55  ;;  %926 = vrot.lane.b32.xlu0 %v866_v47, %s3060_s12  ;;  %vm4704_vm8 = vmmov %vm4703_vm14 }
 0x2c2   :  { %894 = vst.msk [vmem:[#allocation2 + $0x52] sm:$0xff] %vm4700_vm10, %v867_v56  ;;  %vm4706_vm10 = vmmov %vm4701_vm11 }
 0x2c5   :  { %928 = vrot.lane.b32.xlu1 %v867_v56, %s3060_s12  ;;  %974 = vrot.lane.b32.xlu0 %v866_v47, %s3059_s11 }
 0x2c9   :  { %976 = vrot.lane.b32.xlu1 %v867_v56, %s3059_s11  ;;  %930 = vrot.lane.b32.xlu0 %v868_v32, %s3060_s12 }
 0x2cd   :  { %978 = vrot.lane.b32.xlu1 %v868_v32, %s3059_s11 }
 0x30f   :  { %v959_v1 = vpop.permute.xlu0 %958  ;;  %v911_v44 = vpop.permute.xlu1 %910 }
 0x310   :  { %945 = vst.msk [vmem:[#allocation2 + $0x9] sm:$0xff] %vm4701_vm11, %v911_v44  ;;  %vm4707_vm11 = vmmov %vm4706_vm10 }
 0x313   :  { %v957_v59 = vpop.permute.xlu1 %956  ;;  %v909_v61 = vpop.permute.xlu0 %908 }
 0x314   :  { %944 = vst.msk [vmem:[#allocation2 + $0x1] sm:$0xff] %vm4702_vm13, %v909_v61  ;;  %vm4708_vm13 = vmmov %vm4704_vm8 }
 0x315   :  { %992 = vst.msk [vmem:[#allocation2] sm:$0xff] %vm4703_vm14, %v957_v59  ;;  %vm4709_vm14 = vmmov %vm4704_vm8 }
 0x316   :  { %993 = vst.msk [vmem:[#allocation2 + $0x8] sm:$0xff] %vm4704_vm8, %v959_v1 }
 0x317   :  { %v915_v36 = vpop.permute.xlu0 %914  ;;  %v961_v63 = vpop.permute.xlu1 %960 }
 0x318   :  { %947 = vst.msk [vmem:[#allocation2 + $0x19] sm:$0xff] %vm4705_vm15, %v915_v36  ;;  %vm4710_vm15 = vmmov %vm4706_vm10 }
 0x31b   :  { %v963_v0 = vpop.permute.xlu0 %962 }
 0x31d   :  { %v1004_v4 = vld [vmem:[#allocation2 + $0x1] sm:$0xff] }
 0x31e   :  { %v1016_v42 = vsel %vm3532_vm12, %v1004_v4, 0.0  ;;  %v917_v6 = vpop.permute.xlu1 %916  ;;  %vm4711_vm12 = vmmov %vm4706_vm10 }
 0x31f   :  { %2845 = vmatprep.mubr.msk.f32.mxu0 %vm4585_vm0, %v1016_v42  ;;  %948 = vst.msk [vmem:[#allocation2 + $0x21] sm:$0xff] %vm4706_vm10, %v917_v6  ;;  %v913_v9 = vpop.permute.xlu0 %912  ;;  %vm4712_vm0 = vmmov %vm4704_vm8  ;;  %vm4713_vm10 = vcmask 785408  }
 0x320   :  { %946 = vst.msk [vmem:[#allocation2 + $0x11] sm:$0xff] %vm4707_vm11, %v913_v9  ;;  %vm4714_vm11 = vmmov %vm4712_vm0 }
 0x321   :  { %994 = vst.msk [vmem:[#allocation2 + $0x10] sm:$0xff] %vm4708_vm13, %v961_v63  ;;  %vm4715_vm13 = vmmov %vm4713_vm10 }
 0x322   :  { %995 = vst.msk [vmem:[#allocation2 + $0x18] sm:$0xff] %vm4709_vm14, %v963_v0  ;;  %v965_v51 = vpop.permute.xlu1 %964  ;;  %vm4716_vm14 = vmmov %vm4711_vm12 }
 0x323   :  { %996 = vst.msk [vmem:[#allocation2 + $0x20] sm:$0xff] %vm4704_vm8, %v965_v51  ;;  %v919_v12 = vpop.permute.xlu0 %918 }
 0x324   :  { %949 = vst.msk [vmem:[#allocation2 + $0x29] sm:$0xff] %vm4710_vm15, %v919_v12 }
 0x327   :  { %v921_v50 = vpop.permute.xlu1 %920  ;;  %v967_v13 = vpop.permute.xlu0 %966 }
 0x328   :  { %950 = vst.msk [vmem:[#allocation2 + $0x31] sm:$0xff] %vm4711_vm12, %v921_v50  ;;  %v1005_v14 = vld [vmem:[#allocation2 + $0x9] sm:$0xff] }
 0x329   :  { %997 = vst.msk [vmem:[#allocation2 + $0x28] sm:$0xff] %vm4712_vm0, %v967_v13  ;;  %v1006_v17 = vld [vmem:[#allocation2 + $0x11] sm:$0xff]  ;;  %v1017_v21 = vsel %vm3554_vm9, %v1005_v14, 0.0  ;;  %vm4717_vm0 = vmmov %vm4713_vm10 }
 0x32a   :  { %v1018_v57 = vsel %vm3560_vm1, %v1006_v17, 0.0  ;;  %2846 = vmatmul.mubr.msk.f32.vlgmr.msra.gmra.mxu0 %vm4713_vm10, %v1017_v21  ;;  %v1007_v2 = vld [vmem:[#allocation2 + $0x19] sm:$0xff]  ;;  %vm4718_vm9 = vmmov %vm4711_vm12 }
 0x32b   :  { %v969_v30 = vpop.permute.xlu1 %968  ;;  %v923_v35 = vpop.permute.xlu0 %922  ;;  %2848 = vmatprep.mubr.msk.f32.mxu0 %vm4715_vm13, %v1018_v57  ;;  %v1019_v39 = vsel %vm3581_vm2, %v1007_v2, 0.0  ;;  %vm4719_vm1 = vmmov %vm4704_vm8  ;;  %vm4720_vm8 = vnez %v4659_v10  ;;  %vm4723_vm2 = vnez %v4663_v26 }
 0x32c   :  { %998 = vst.msk [vmem:[#allocation2 + $0x30] sm:$0xff] %vm4714_vm11, %v969_v30  ;;  %vm4721_vm15 = vmmov %vm4717_vm0  ;;  %v2504_v30 = vld [vmem:[%s4557_s3 + $0x108] sm:$0xff] }
 0x32d   :  { %951 = vst.msk [vmem:[#allocation2 + $0x39] sm:$0xff] %vm4716_vm14, %v923_v35  ;;  %vm4722_vm12 = vmmov %vm4719_vm1  ;;  %2867 = vmatprep.subr.mxu1 %v2504_v30  ;;  %v2503_v35 = vld [vmem:[%s4557_s3 + $0x100] sm:$0xff] }
 0x32e   :  { %2849 = vmatmul.mubr.msk.f32.gmra.mxu0 %vm4717_vm0, %v1019_v39  ;;  %vm4724_vm10 = vmmov %vm4718_vm9  ;;  %2868 = vmatpush3.msra.mxu1 %v2504_v30 }
 0x32f   :  { %v925_v45 = vpop.permute.xlu1 %924  ;;  %v971_v60 = vpop.permute.xlu0 %970  ;;  %vm4725_vm11 = vmmov %vm4717_vm0  ;;  %vm4728_vm0 = vnez %v4665_v33  ;;  %2869 = vmatprep.subr.mxu1 %v2503_v35 }
 0x330   :  { %952 = vst.msk [vmem:[#allocation2 + $0x41] sm:$0xff] %vm4718_vm9, %v925_v45  ;;  %v1008_v28 = vld [vmem:[#allocation2 + $0x21] sm:$0xff]  ;;  %vm4726_vm13 = vmmov %vm4718_vm9  ;;  %2870 = vmatpush3.msra.mxu1 %v2503_v35 }
 0x331   :  { %999 = vst.msk [vmem:[#allocation2 + $0x38] sm:$0xff] %vm4719_vm1, %v971_v60  ;;  %v1020_v46 = vsel %vm4720_vm8, %v1008_v28, 0.0  ;;  %vm4727_vm14 = vmmov %vm4719_vm1  ;;  %vm4730_vm8 = vnez %v4673_v48  ;;  %v2502_v28 = vld [vmem:[%s4557_s3 + $0xf8] sm:$0xff] }
 0x332   :  { %2851 = vmatprep.mubr.msk.f32.mxu0 %vm4721_vm15, %v1020_v46  ;;  %vm4729_vm9 = vmmov %vm4725_vm11  ;;  %2871 = vmatprep.subr.mxu1 %v2502_v28 }
 0x333   :  { %v973_v47 = vpop.permute.xlu1 %972  ;;  %v1009_v8 = vld [vmem:[#allocation2 + $0x29] sm:$0xff]  ;;  %v927_v5 = vpop.permute.xlu0 %926  ;;  %vm4731_vm15 = vmmov %vm4724_vm10  ;;  %2872 = vmatpush3.msra.mxu1 %v2502_v28 }
 0x334   :  { %1000 = vst.msk [vmem:[#allocation2 + $0x40] sm:$0xff] %vm4722_vm12, %v973_v47  ;;  %v1021_v49 = vsel %vm4723_vm2, %v1009_v8, 0.0  ;;  %vm4732_vm12 = vmmov %vm4729_vm9 }
 0x335   :  { %953 = vst.msk [vmem:[#allocation2 + $0x49] sm:$0xff] %vm4724_vm10, %v927_v5  ;;  %2852 = vmatmul.mubr.msk.f32.gmra.mxu0 %vm4725_vm11, %v1021_v49  ;;  %vm4733_vm2 = vmmov %vm4719_vm1  ;;  %v2501_v5 = vld [vmem:[%s4557_s3 + $0xf0] sm:$0xff]  ;;  %v2500_v49 = vld [vmem:[%s4557_s3 + $0xe8] sm:$0xff] }
 0x336   :  { %vm4734_vm10 = vmmov %vm4729_vm9  ;;  %2873 = vmatprep.subr.mxu1 %v2501_v5 }
 0x337   :  { %v929_v23 = vpop.permute.xlu1 %928  ;;  %v975_v53 = vpop.permute.xlu0 %974  ;;  %vm4735_vm11 = vmmov %vm4729_vm9  ;;  %2874 = vmatpush3.msra.mxu1 %v2501_v5 }
 0x338   :  { %954 = vst.msk [vmem:[#allocation2 + $0x51] sm:$0xff] %vm4726_vm13, %v929_v23  ;;  %v1010_v10 = vld [vmem:[#allocation2 + $0x31] sm:$0xff]  ;;  %vm4736_vm13 = vmmov %vm4729_vm9  ;;  %2875 = vmatprep.subr.mxu1 %v2500_v49 }
 0x339   :  { %1001 = vst.msk [vmem:[#allocation2 + $0x48] sm:$0xff] %vm4727_vm14, %v975_v53  ;;  %v1022_v54 = vsel %vm4728_vm0, %v1010_v10, 0.0  ;;  %vm4737_vm14 = vmmov %vm4729_vm9  ;;  %2876 = vmatpush3.msra.mxu1 %v2500_v49 }
 0x33a   :  { %2854 = vmatprep.mubr.msk.f32.mxu0 %vm4729_vm9, %v1022_v54 }
 0x33b   :  { %v977_v55 = vpop.permute.xlu1 %976  ;;  %v1011_v32 = vld [vmem:[#allocation2 + $0x39] sm:$0xff]  ;;  %v931_v26 = vpop.permute.xlu0 %930 }
 0x33c   :  { %1002 = vst.msk [vmem:[#allocation2 + $0x50] sm:$0xff] %vm4719_vm1, %v977_v55  ;;  %v1023_v56 = vsel %vm4730_vm8, %v1011_v32, 0.0  ;;  %v2499_v32 = vld [vmem:[%s4557_s3 + $0xe0] sm:$0xff] }
 0x33d   :  { %955 = vst.msk [vmem:[#allocation2 + $0x59] sm:$0xff] %vm4731_vm15, %v931_v26  ;;  %2855 = vmatmul.mubr.msk.f32.gmra.mxu0 %vm4732_vm12, %v1023_v56  ;;  %2877 = vmatprep.subr.mxu1 %v2499_v32 }
 0x33e   :  { %2878 = vmatpush3.msra.mxu1 %v2499_v32 }
 0x33f   :  { %v979_v1 = vpop.permute.xlu1 %978 }
 0x340   :  { %1003 = vst.msk [vmem:[#allocation2 + $0x58] sm:$0xff] %vm4733_vm2, %v979_v1  ;;  %v1012_v44 = vld [vmem:[#allocation2 + $0x41] sm:$0xff] }
 0x341   :  { %v1024_v33 = vsel %vm3643_vm5, %v1012_v44, 0.0 }
 0x342   :  { %2857 = vmatprep.mubr.msk.f32.mxu0 %vm4734_vm10, %v1024_v33 }
 0x343   :  { %v1013_v59 = vld [vmem:[#allocation2 + $0x49] sm:$0xff] }
 0x344   :  { %v1025_v61 = vsel %vm3660_vm4, %v1013_v59, 0.0 }
 0x345   :  { %2858 = vmatmul.mubr.msk.f32.gmra.mxu0 %vm4735_vm11, %v1025_v61  ;;  %v2497_v61 = vld [vmem:[%s4557_s3 + $0xd0] sm:$0xff] }
 0x347   :  { %v1014_v48 = vld [vmem:[#allocation2 + $0x51] sm:$0xff]  ;;  %v1015_v36 = vld [vmem:[#allocation2 + $0x59] sm:$0xff] }
 0x348   :  { %v1026_v63 = vsel %vm3675_vm7, %v1014_v48, 0.0  ;;  %v1027_v0 = vsel %vm3681_vm6, %v1015_v36, 0.0  ;;  %vm4738_vm7 = vcmask 261120  }
 0x349   :  { %2860 = vmatprep.mubr.msk.f32.mxu0 %vm4736_vm13, %v1026_v63  ;;  %vm4739_vm0 = vmmov %vm4738_vm7 }
 0x34a   :  { %2861 = vmatmul.mubr.msk.f32.gmra.mxu0 %vm4737_vm14, %v1027_v0  ;;  %vm4740_vm9 = vmmov %vm4739_vm0 }
 0x34b   :  { %vm4741_vm8 = vmmov %vm4739_vm0 }
 0x34c   :  { %vm4742_vm2 = vmmov %vm4739_vm0 }
 0x34d   :  { %vm4743_vm10 = vmmov %vm4739_vm0 }
 0x34e   :  { %vm4744_vm11 = vmmov %vm4739_vm0 }
 0x3ea   :  { %v2847_v41 = vpop.f32.mrf.mxu0 }
 0x3eb   :  { %v1142_v4 = vadd.f32 %v2847_v41, %v3849_v58 }
 0x3ec   :  { %v1136_v42 = vpop.f32.mrf.mxu0 }
 0x3ed   :  { %v1196_v6 = vadd.f32 %v1142_v4, %v3393_v62  ;;  %v1137_v9 = vadd.f32 %v3849_v58, %v1136_v42 }
 0x3ee   :  { %v2850_v51 = vpop.f32.mrf.mxu0 }
 0x3ef   :  { %vm1208_vm5 = vcmp.gt.f32.partialorder %v1196_v6, 0.0  ;;  %v1220_v12 = vmul.f32 0.1, %v1196_v6  ;;  %v1195_v50 = vadd.f32 %v1137_v9, %v3402_v3  ;;  %v1152_v13 = vadd.f32 %v2850_v51, %v3849_v58 }
 0x3f0   :  { %v1146_v14 = vpop.f32.mrf.mxu0 }
 0x3f1   :  { %v1232_v17 = vsel %vm1208_vm5, %v1196_v6, %v1220_v12  ;;  %vm1207_vm4 = vcmp.gt.f32.partialorder %v1195_v50, 0.0  ;;  %v1219_v21 = vmul.f32 0.1, %v1195_v50  ;;  %v1198_v57 = vadd.f32 %v1152_v13, %v3423_v7  ;;  %vm4745_vm5 = vmmov %vm4739_vm0 }
 0x3f2   :  { %1244 = vst.msk [vmem:[#allocation3 + $0x8] sm:$0xff] %vm4738_vm7, %v1232_v17  ;;  %v1147_v62 = vadd.f32 %v3849_v58, %v1146_v14  ;;  %vm4747_vm7 = vmmov %vm4739_vm0 }
 0x3f3   :  { %v1231_v2 = vsel %vm1207_vm4, %v1195_v50, %v1219_v21  ;;  %vm1210_vm6 = vcmp.gt.f32.partialorder %v1198_v57, 0.0  ;;  %v1222_v3 = vmul.f32 0.1, %v1198_v57  ;;  %vm4746_vm4 = vmmov %vm4739_vm0 }
 0x3f4   :  { %1243 = vst.msk [vmem:[#allocation3] sm:$0xff] %vm4739_vm0, %v1231_v2  ;;  %v1197_v7 = vadd.f32 %v1147_v62, %v3429_v11 }
 0x3f5   :  { %v2853_v39 = vpop.f32.mrf.mxu0  ;;  %v1234_v45 = vsel %vm1210_vm6, %v1198_v57, %v1222_v3  ;;  %vm4748_vm6 = vmmov %vm4739_vm0 }
 0x3f6   :  { %v1162_v60 = vadd.f32 %v2853_v39, %v3849_v58  ;;  %1246 = vst.msk [vmem:[#allocation3 + $0x18] sm:$0xff] %vm4740_vm9, %v1234_v45  ;;  %vm1209_vm1 = vcmp.gt.f32.partialorder %v1197_v7, 0.0  ;;  %v1221_v46 = vmul.f32 0.1, %v1197_v7 }
 0x3f7   :  { %v1156_v47 = vpop.f32.mrf.mxu0 }
 0x3f8   :  { %v1200_v8 = vadd.f32 %v1162_v60, %v3448_v16  ;;  %v1157_v11 = vadd.f32 %v3849_v58, %v1156_v47  ;;  %v1233_v23 = vsel %vm1209_vm1, %v1197_v7, %v1221_v46  ;;  %vm4749_vm1 = vmmov %vm4742_vm2 }
 0x3f9   :  { %1245 = vst.msk [vmem:[#allocation3 + $0x10] sm:$0xff] %vm4741_vm8, %v1233_v23  ;;  %vm4750_vm8 = vmmov %vm4749_vm1 }
 0x3fa   :  { %vm1212_vm15 = vcmp.gt.f32.partialorder %v1200_v8, 0.0  ;;  %v1224_v53 = vmul.f32 0.1, %v1200_v8  ;;  %v1199_v10 = vadd.f32 %v1157_v11, %v3451_v20  ;;  %v2498_v20 = vld [vmem:[%s4557_s3 + $0xd8] sm:$0xff] }
 0x3fb   :  { %v1255_v55 = vld [vmem:[#allocation3] ss:$2 sm:$0xff]  ;;  %v1267_v56 = vld [vmem:[#allocation3 + $0x1] ss:$2 sm:$0xff]  ;;  %2879 = vmatprep.subr.mxu1 %v2498_v20 }
 0x3fc   :  { %v1236_v16 = vsel %vm1212_vm15, %v1200_v8, %v1224_v53  ;;  %vm1211_vm12 = vcmp.gt.f32.partialorder %v1199_v10, 0.0  ;;  %v1223_v54 = vmul.f32 0.1, %v1199_v10  ;;  %v3890_v33 = vmax.f32 %v1255_v55, %v1267_v56  ;;  %2880 = vmatpush3.msra.mxu1 %v2498_v20 }
 0x3fd   :  { %1248 = vst.msk [vmem:[#allocation3 + $0x28] sm:$0xff] %vm4742_vm2, %v1236_v16  ;;  %v2856_v26 = vpop.f32.mrf.mxu0  ;;  %2881 = vmatprep.subr.mxu1 %v2497_v61  ;;  %vm4751_vm2 = vmmov %vm4749_vm1  ;;  %v1285_v55 = vand.u32 7, %v3162_v18 }
 0x3fe   :  { %v1235_v1 = vsel %vm1211_vm12, %v1199_v10, %v1223_v54  ;;  %v1172_v44 = vadd.f32 %v2856_v26, %v3849_v58  ;;  %1377 = vrot.lane.b32.xlu1 %v3890_v33, %s3059_s11  ;;  %1341 = vst.msk [vmem:[#allocation2 + $0x2] sm:$0xff] %vm4744_vm11, %v3890_v33  ;;  %1353 = vrot.lane.b32.xlu0 %v3890_v33, %s3060_s12  ;;  %vm4753_vm11 = vmmov %vm4749_vm1  ;;  %v1284_v10 = vand.u32 7, %v3159_v15 }
 0x3ff   :  { %1247 = vst.msk [vmem:[#allocation3 + $0x20] sm:$0xff] %vm4743_vm10, %v1235_v1  ;;  %v1166_v59 = vpop.f32.mrf.mxu0  ;;  %2882 = vmatpush3.msra.mxu1 %v2497_v61  ;;  %vm4752_vm10 = vmmov %vm4749_vm1  ;;  %v4766_v1 = vmov 0 }
 0x400   :  { %v1202_v48 = vadd.f32 %v1172_v44, %v3464_v22  ;;  %v1167_v36 = vadd.f32 %v3849_v58, %v1166_v59  ;;  %v1257_v63 = vld [vmem:[#allocation3 + $0x10] ss:$2 sm:$0xff]  ;;  %v1269_v0 = vld [vmem:[#allocation3 + $0x11] ss:$2 sm:$0xff]  ;;  %v2496_v22 = vld [vmem:[%s4557_s3 + $0xc8] sm:$0xff]  ;;  %v1286_v59 = vand.u32 7, %v3178_v25 }
 0x401   :  { %v3905_v41 = vmax.f32 %v1257_v63, %v1269_v0  ;;  %2883 = vmatprep.subr.mxu1 %v2496_v22  ;;  %v1287_v0 = vand.u32 7, %v3186_v29 }
 0x402   :  { %vm1214_vm13 = vcmp.gt.f32.partialorder %v1202_v48, 0.0  ;;  %v1226_v52 = vmul.f32 0.1, %v1202_v48  ;;  %v1201_v24 = vadd.f32 %v1167_v36, %v3469_v27  ;;  %v2495_v27 = vld [vmem:[%s4557_s3 + $0xc0] sm:$0xff]  ;;  %2884 = vmatpush3.msra.mxu1 %v2496_v22  ;;  %v1288_v22 = vand.u32 7, %v3217_v37 }
 0x403   :  { %1355 = vrot.lane.b32.xlu1 %v3905_v41, %s3060_s12  ;;  %1342 = vst.msk [vmem:[#allocation2 + $0xa] sm:$0xff] %vm4745_vm5, %v3905_v41  ;;  %1379 = vrot.lane.b32.xlu0 %v3905_v41, %s3059_s11  ;;  %vm4756_vm5 = vcmask 523520   ;;  %v4783_v37 = vmov 0 }
 0x404   :  { %v1238_v4 = vsel %vm1214_vm13, %v1202_v48, %v1226_v52  ;;  %vm1213_vm14 = vcmp.gt.f32.partialorder %v1201_v24, 0.0  ;;  %v1225_v42 = vmul.f32 0.1, %v1201_v24  ;;  %2885 = vmatprep.subr.mxu1 %v2495_v27  ;;  %vm4754_vm13 = vmmov %vm4749_vm1  ;;  %v4769_v48 = vmov 0 }
 0x405   :  { %1250 = vst.msk [vmem:[#allocation3 + $0x38] sm:$0xff] %vm4746_vm4, %v1238_v4  ;;  %v2859_v6 = vpop.f32.mrf.mxu0  ;;  %2886 = vmatpush3.msra.mxu1 %v2495_v27  ;;  %vm1290_vm4 = vcmp.eq.s32.totalorder %v1284_v10, 0 }
 0x406   :  { %v1237_v9 = vsel %vm1213_vm14, %v1201_v24, %v1225_v42  ;;  %v1182_v51 = vadd.f32 %v2859_v6, %v3849_v58  ;;  %v1259_v12 = vld [vmem:[#allocation3 + $0x20] ss:$2 sm:$0xff]  ;;  %v1271_v50 = vld [vmem:[#allocation3 + $0x21] ss:$2 sm:$0xff]  ;;  %vm4755_vm14 = vmmov %vm4749_vm1  ;;  %v1289_v42 = vand.u32 7, %v3224_v43 }
 0x407   :  { %1249 = vst.msk [vmem:[#allocation3 + $0x30] sm:$0xff] %vm4747_vm7, %v1237_v9  ;;  %v1176_v13 = vpop.f32.mrf.mxu0  ;;  %v3922_v14 = vmax.f32 %v1259_v12, %v1271_v50  ;;  %vm4757_vm7 = vcmask 785920  }
 0x408   :  { %v1204_v17 = vadd.f32 %v1182_v51, %v3482_v31  ;;  %v1177_v21 = vadd.f32 %v3849_v58, %v1176_v13  ;;  %v3061_v13 = vmov 0.0  }
 0x409   :  { %1381 = vrot.lane.b32.xlu1 %v3922_v14, %s3059_s11  ;;  %1343 = vst.msk [vmem:[#allocation2 + $0x12] sm:$0xff] %vm4748_vm6, %v3922_v14  ;;  %1357 = vrot.lane.b32.xlu0 %v3922_v14, %s3060_s12  ;;  %vm1302_vm6 = vcmp.eq.s32.totalorder %v1284_v10, 7  ;;  %v2520_v10 = vld [vmem:[%s4557_s3 + $0x148] sm:$0xff] }
 0x40a   :  { %vm1216_vm0 = vcmp.gt.f32.partialorder %v1204_v17, 0.0  ;;  %v1228_v57 = vmul.f32 0.1, %v1204_v17  ;;  %v1203_v30 = vadd.f32 %v1177_v21, %v3487_v34  ;;  %v2862_v62 = vpop.f32.mrf.mxu0  ;;  %2929 = vmatprep.subr.mxu1 %v3061_v13 }
 0x40b   :  { %v1192_v2 = vadd.f32 %v2862_v62, %v3849_v58 }
 0x40c   :  { %v1240_v31 = vsel %vm1216_vm0, %v1204_v17, %v1228_v57  ;;  %vm1215_vm9 = vcmp.gt.f32.partialorder %v1203_v30, 0.0  ;;  %v1227_v3 = vmul.f32 0.1, %v1203_v30  ;;  %v1186_v35 = vpop.f32.mrf.mxu0  ;;  %vm4758_vm0 = vcmp.lt.s32.totalorder %v3166_v19, 32  ;;  %v2528_v57 = vld [vmem:[%s4559_s4 + $0x3] ss:$0 sm:$0xff] }
 0x40d   :  { %1252 = vst.msk [vmem:[#allocation3 + $0x48] sm:$0xff] %vm4749_vm1, %v1240_v31  ;;  %v1206_v7 = vadd.f32 %v1192_v2, %v3498_v38  ;;  %v1187_v39 = vadd.f32 %v3849_v58, %v1186_v35  ;;  %vm4759_vm1 = vmmov %vm4756_vm5  ;;  %v4076_v35 = vld [vmem:[%s4559_s4 + $0x2] ss:$0 sm:$0xff] }
 0x40e   :  { %v1239_v45 = vsel %vm1215_vm9, %v1203_v30, %v1227_v3  ;;  %v1261_v60 = vld [vmem:[#allocation3 + $0x30] ss:$2 sm:$0xff]  ;;  %v1273_v28 = vld [vmem:[#allocation3 + $0x31] ss:$2 sm:$0xff]  ;;  %vm1296_vm9 = vmand %vm4758_vm0, %vm1290_vm4 }
 0x40f   :  { %1251 = vst.msk [vmem:[#allocation3 + $0x40] sm:$0xff] %vm4750_vm8, %v1239_v45  ;;  %vm1218_vm15 = vcmp.gt.f32.partialorder %v1206_v7, 0.0  ;;  %v1230_v34 = vmul.f32 0.1, %v1206_v7  ;;  %v1205_v46 = vadd.f32 %v1187_v39, %v3503_v40  ;;  %v3939_v47 = vmax.f32 %v1261_v60, %v1273_v28  ;;  %v2525_v39 = vld [vmem:[%s4557_s3 + $0x170] sm:$0xff]  ;;  %v2524_v60 = vld [vmem:[%s4557_s3 + $0x168] sm:$0xff] }
 0x410   :  { %vm4760_vm8 = vcmp.ge.s32.totalorder %v3166_v19, 64 }
 0x411   :  { %v1242_v8 = vsel %vm1218_vm15, %v1206_v7, %v1230_v34  ;;  %vm1217_vm12 = vcmp.gt.f32.partialorder %v1205_v46, 0.0  ;;  %v1229_v11 = vmul.f32 0.1, %v1205_v46  ;;  %1359 = vrot.lane.b32.xlu0 %v3939_v47, %s3060_s12  ;;  %1344 = vst.msk [vmem:[#allocation2 + $0x1a] sm:$0xff] %vm4751_vm2, %v3939_v47  ;;  %vm1308_vm15 = vmand %vm4760_vm8, %vm1302_vm6  ;;  %vm1291_vm2 = vcmp.eq.s32.totalorder %v1285_v55, 0  ;;  %v2526_v7 = vld [vmem:[%s4557_s3 + $0x178] sm:$0xff] }
 0x412   :  { %1254 = vst.msk [vmem:[#allocation3 + $0x58] sm:$0xff] %vm4752_vm10, %v1242_v8  ;;  %vm1303_vm10 = vcmp.eq.s32.totalorder %v1285_v55, 7  ;;  %2896 = vmatprep.subr.mxu0 %v2526_v7 }
 0x413   :  { %v1241_v38 = vsel %vm1217_vm12, %v1205_v46, %v1229_v11  ;;  %vm4761_vm12 = vmmov %vm4757_vm7  ;;  %2897 = vmatpush3.msra.mxu0 %v2526_v7 }
 0x414   :  { %1253 = vst.msk [vmem:[#allocation3 + $0x50] sm:$0xff] %vm4753_vm11, %v1241_v38  ;;  %vm1314_vm11 = vmor %vm1296_vm9, %vm1308_vm15  ;;  %vm4768_vm9 = vcmask 785408   ;;  %vm1292_vm15 = vcmp.eq.s32.totalorder %v1286_v59, 0  ;;  %2898 = vmatprep.subr.mxu0 %v2525_v39 }
 0x415   :  { %1383 = vrot.lane.b32.xlu0 %v3939_v47, %s3059_s11  ;;  %2899 = vmatpush3.msra.mxu0 %v2525_v39 }
 0x416   :  { %v1263_v40 = vld [vmem:[#allocation3 + $0x40] ss:$2 sm:$0xff]  ;;  %v1275_v58 = vld [vmem:[#allocation3 + $0x41] ss:$2 sm:$0xff]  ;;  %2900 = vmatprep.subr.mxu0 %v2524_v60 }
 0x417   :  { %v3949_v5 = vmax.f32 %v1263_v40, %v1275_v58  ;;  %2901 = vmatpush3.msra.mxu0 %v2524_v60  ;;  %v2523_v58 = vld [vmem:[%s4557_s3 + $0x160] sm:$0xff] }
 0x418   :  { %2902 = vmatprep.subr.mxu0 %v2523_v58 }
 0x419   :  { %1361 = vrot.lane.b32.xlu1 %v3949_v5, %s3060_s12  ;;  %1345 = vst.msk [vmem:[#allocation2 + $0x22] sm:$0xff] %vm4754_vm13, %v3949_v5  ;;  %vm4762_vm13 = vmmov %vm4758_vm0  ;;  %2903 = vmatpush3.msra.mxu0 %v2523_v58 }
 0x41a   :  { %vm4765_vm0 = vmmov %vm4761_vm12 }
 0x41b   :  { %v1265_v49 = vld [vmem:[#allocation3 + $0x50] ss:$2 sm:$0xff]  ;;  %v1277_v23 = vld [vmem:[#allocation3 + $0x51] ss:$2 sm:$0xff] }
 0x41c   :  { %v3955_v53 = vmax.f32 %v1265_v49, %v1277_v23  ;;  %v2522_v49 = vld [vmem:[%s4557_s3 + $0x158] sm:$0xff]  ;;  %v2521_v23 = vld [vmem:[%s4557_s3 + $0x150] sm:$0xff] }
 0x41d   :  { %1385 = vrot.lane.b32.xlu1 %v3949_v5, %s3059_s11  ;;  %2904 = vmatprep.subr.mxu0 %v2522_v49 }
 0x41e   :  { %1363 = vrot.lane.b32.xlu0 %v3955_v53, %s3060_s12  ;;  %1346 = vst.msk [vmem:[#allocation2 + $0x2a] sm:$0xff] %vm4755_vm14, %v3955_v53  ;;  %vm1297_vm14 = vmand %vm4762_vm13, %vm1291_vm2  ;;  %vm1304_vm2 = vcmp.eq.s32.totalorder %v1286_v59, 7  ;;  %2905 = vmatpush3.msra.mxu0 %v2522_v49 }
 0x41f   :  { %2906 = vmatprep.subr.mxu0 %v2521_v23 }
 0x420   :  { %2907 = vmatpush3.msra.mxu0 %v2521_v23 }
 0x421   :  { %1387 = vrot.lane.b32.xlu1 %v3955_v53, %s3059_s11  ;;  %2908 = vmatprep.subr.mxu0 %v2520_v10 }
 0x422   :  { %2909 = vmatpush3.msra.mxu0 %v2520_v10 }
 0x470   :  { %v1378_v16 = vpop.permute.xlu1 %1377  ;;  %v1354_v54 = vpop.permute.xlu0 %1353 }
 0x471   :  { %1371 = vst.msk [vmem:[#allocation2 + $0x1] sm:$0xff] %vm4756_vm5, %v1354_v54  ;;  %vm4763_vm5 = vmmov %vm4759_vm1  ;;  %v2518_v54 = vld [vmem:[%s4557_s3 + $0x138] sm:$0xff] }
 0x472   :  { %1395 = vst.msk [vmem:[#allocation2] sm:$0xff] %vm4757_vm7, %v1378_v16  ;;  %vm4764_vm7 = vmmov %vm4760_vm8  ;;  %v2519_v16 = vld [vmem:[%s4557_s3 + $0x140] sm:$0xff] }
 0x473   :  { %vm1309_vm4 = vmand %vm4764_vm7, %vm1303_vm10  ;;  %2910 = vmatprep.subr.mxu0 %v2519_v16 }
 0x474   :  { %vm1315_vm6 = vmor %vm1297_vm14, %vm1309_vm4  ;;  %vm1293_vm4 = vcmp.eq.s32.totalorder %v1287_v0, 0  ;;  %2911 = vmatpush3.msra.mxu0 %v2519_v16 }
 0x475   :  { %v1356_v32 = vpop.permute.xlu1 %1355  ;;  %v1380_v26 = vpop.permute.xlu0 %1379  ;;  %vm3991_vm8 = vmxor %vm1315_vm6, %vm4623_vm3  ;;  %2912 = vmatprep.subr.mxu0 %v2518_v54 }
 0x476   :  { %1372 = vst.msk [vmem:[#allocation2 + $0x9] sm:$0xff] %vm4759_vm1, %v1356_v32  ;;  %vm3982_vm1 = vmxor %vm1314_vm11, %vm4623_vm3  ;;  %v4770_v48 = vsel %vm3991_vm8, 4294967295, %v4769_v48  ;;  %2913 = vmatpush3.msra.mxu0 %v2518_v54 }
 0x477   :  { %1396 = vst.msk [vmem:[#allocation2 + $0x8] sm:$0xff] %vm4761_vm12, %v1380_v26  ;;  %v4767_v1 = vsel %vm3982_vm1, 4294967295, %v4766_v1  ;;  %vm4771_vm12 = vmmov %vm4763_vm5  ;;  %v2517_v26 = vld [vmem:[%s4557_s3 + $0x130] sm:$0xff] }
 0x478   :  { %vm4772_vm10 = vmmov %vm4768_vm9  ;;  %2914 = vmatprep.subr.mxu0 %v2517_v26 }
 0x479   :  { %vm4773_vm11 = vmmov %vm4762_vm13  ;;  %2915 = vmatpush3.msra.mxu0 %v2517_v26 }
 0x47a   :  { %vm1298_vm13 = vmand %vm4773_vm11, %vm1292_vm15  ;;  %vm4779_vm15 = vcmask 523520  }
 0x47b   :  { %v1382_v56 = vpop.permute.xlu1 %1381  ;;  %v1358_v20 = vpop.permute.xlu0 %1357  ;;  %vm4774_vm14 = vmmov %vm4764_vm7 }
 0x47c   :  { %1373 = vst.msk [vmem:[#allocation2 + $0x11] sm:$0xff] %vm4763_vm5, %v1358_v20  ;;  %vm1310_vm5 = vmand %vm4774_vm14, %vm1304_vm2 }
 0x47d   :  { %1397 = vst.msk [vmem:[#allocation2 + $0x10] sm:$0xff] %vm4765_vm0, %v1382_v56  ;;  %vm4775_vm7 = vmmov %vm4765_vm0  ;;  %vm1305_vm0 = vcmp.eq.s32.totalorder %v1287_v0, 7  ;;  %v2516_v56 = vld [vmem:[%s4557_s3 + $0x128] sm:$0xff]  ;;  %v2515_v0 = vld [vmem:[%s4557_s3 + $0x120] sm:$0xff] }
 0x47e   :  { %v1401_v44 = vld [vmem:[#allocation2 + $0x1] sm:$0xff]  ;;  %vm1316_vm6 = vmor %vm1298_vm13, %vm1310_vm5  ;;  %vm1294_vm13 = vcmp.eq.s32.totalorder %v1288_v22, 0  ;;  %2916 = vmatprep.subr.mxu0 %v2516_v56 }
 0x47f   :  { %v1407_v61 = vsel %vm3982_vm1, %v1401_v44, 0.0  ;;  %vm4780_vm2 = vmmov %vm4774_vm14  ;;  %vm1306_vm14 = vcmp.eq.s32.totalorder %v1288_v22, 7  ;;  %2917 = vmatpush3.msra.mxu0 %v2516_v56 }
 0x480   :  { %2887 = vmatprep.mubr.msk.f32.mxu1 %vm4768_vm9, %v1407_v61  ;;  %vm4776_vm9 = vmmov %vm4773_vm11  ;;  %2918 = vmatprep.subr.mxu0 %v2515_v0 }
 0x481   :  { %vm4021_vm11 = vmxor %vm1316_vm6, %vm4623_vm3  ;;  %vm4793_vm3 = vcmask 785920   ;;  %2919 = vmatpush3.msra.mxu0 %v2515_v0 }
 0x482   :  { %v4784_v37 = vsel %vm4021_vm11, 4294967295, %v4783_v37  ;;  %2962 = vmatprep.subr.mxu0 %v3061_v13 }
 0x483   :  { %v1360_v36 = vpop.permute.xlu0 %1359 }
 0x484   :  { %1374 = vst.msk [vmem:[#allocation2 + $0x19] sm:$0xff] %vm4771_vm12, %v1360_v36  ;;  %v1402_v63 = vld [vmem:[#allocation2 + $0x9] sm:$0xff]  ;;  %vm4008_vm12 = vmand %vm4776_vm9, %vm1293_vm4  ;;  %vm4785_vm4 = vcmask 785920  }
 0x485   :  { %v1408_v52 = vsel %vm3991_vm8, %v1402_v63, 0.0 }
 0x486   :  { %2888 = vmatmul.mubr.msk.f32.vlgmr.msra.gmra.mxu1 %vm4772_vm10, %v1408_v52  ;;  %vm4016_vm10 = vmand %vm4780_vm2, %vm1305_vm0  ;;  %vm4789_vm2 = vcmask 785408  }
 0x487   :  { %v1384_v24 = vpop.permute.xlu0 %1383  ;;  %vm1317_vm5 = vmor %vm4008_vm12, %vm4016_vm10  ;;  %vm4790_vm12 = vcmp.ge.s32.totalorder %v3166_v19, 64 }
 0x488   :  { %1398 = vst.msk [vmem:[#allocation2 + $0x18] sm:$0xff] %vm4775_vm7, %v1384_v24  ;;  %vm1295_vm7 = vcmp.eq.s32.totalorder %v1289_v42, 0  ;;  %vm4786_vm0 = vmmov %vm4776_vm9  ;;  %vm1307_vm9 = vcmp.eq.s32.totalorder %v1289_v42, 7 }
 0x489   :  { %vm4034_vm6 = vmand %vm4786_vm0, %vm1294_vm13  ;;  %vm4794_vm13 = vmmov 1  }
 0x48a   :  { %vm1312_vm10 = vmand %vm4790_vm12, %vm1306_vm14 }
 0x48b   :  { %v1362_v29 = vpop.permute.xlu1 %1361 }
 0x48c   :  { %1375 = vst.msk [vmem:[#allocation2 + $0x21] sm:$0xff] %vm4779_vm15, %v1362_v29 }
 0x48f   :  { %v1386_v6 = vpop.permute.xlu1 %1385  ;;  %v1403_v9 = vld [vmem:[#allocation2 + $0x11] sm:$0xff] }
 0x490   :  { %1399 = vst.msk [vmem:[#allocation2 + $0x20] sm:$0xff] %vm4785_vm4, %v1386_v6  ;;  %v1364_v43 = vpop.permute.xlu0 %1363  ;;  %v1409_v51 = vsel %vm4021_vm11, %v1403_v9, 0.0  ;;  %vm4791_vm4 = vmmov %vm4786_vm0 }
 0x491   :  { %1376 = vst.msk [vmem:[#allocation2 + $0x29] sm:$0xff] %vm4779_vm15, %v1364_v43  ;;  %2890 = vmatprep.mubr.msk.f32.mxu1 %vm4789_vm2, %v1409_v51  ;;  %vm1301_vm8 = vmand %vm4791_vm4, %vm1295_vm7 }
 0x492   :  { %vm4792_vm11 = vmmov %vm4790_vm12 }
 0x493   :  { %v1388_v50 = vpop.permute.xlu1 %1387  ;;  %vm1313_vm1 = vmand %vm4792_vm11, %vm1307_vm9  ;;  %vm4799_vm11 = vcmask 785408  }
 0x494   :  { %1400 = vst.msk [vmem:[#allocation2 + $0x28] sm:$0xff] %vm4793_vm3, %v1388_v50  ;;  %vm4048_vm0 = vmxor %vm1317_vm5, %vm4794_vm13 }
 0x495   :  { %vm1318_vm15 = vmor %vm4034_vm6, %vm1312_vm10  ;;  %vm4804_vm6 = vcmask 261120  }
 0x496   :  { %vm1319_vm2 = vmor %vm1301_vm8, %vm1313_vm1 }
 0x497   :  { %v1404_v17 = vld [vmem:[#allocation2 + $0x19] sm:$0xff]  ;;  %vm4057_vm14 = vmxor %vm1318_vm15, %vm4794_vm13 }
 0x498   :  { %v1410_v21 = vsel %vm4048_vm0, %v1404_v17, 0.0  ;;  %vm4063_vm3 = vmxor %vm1319_vm2, %vm4794_vm13 }
 0x499   :  { %2891 = vmatmul.mubr.msk.f32.gmra.mxu1 %vm4799_vm11, %v1410_v21  ;;  %vm4802_vm1 = vmmov %vm4799_vm11 }
 0x49a   :  { %vm4803_vm8 = vmmov %vm4802_vm1 }
 0x49b   :  { %v1405_v62 = vld [vmem:[#allocation2 + $0x21] sm:$0xff]  ;;  %v1406_v2 = vld [vmem:[#allocation2 + $0x29] sm:$0xff]  ;;  %vm4805_vm9 = vmmov %vm4804_vm6 }
 0x49c   :  { %v1411_v31 = vsel %vm4057_vm14, %v1405_v62, 0.0  ;;  %v1412_v3 = vsel %vm4063_vm3, %v1406_v2, 0.0  ;;  %vm4806_vm4 = vmmov %vm4804_vm6 }
 0x49d   :  { %2893 = vmatprep.mubr.msk.f32.mxu1 %vm4802_vm1, %v1411_v31  ;;  %vm4807_vm15 = vmmov %vm4806_vm4 }
 0x49e   :  { %2894 = vmatmul.mubr.msk.f32.gmra.mxu1 %vm4803_vm8, %v1412_v3  ;;  %vm4808_vm1 = vmmov %vm4806_vm4 }
 0x49f   :  { %vm4809_vm8 = vmmov %vm4808_vm1 }
 0x546   :  { %v2889_v45 = vpop.f32.mrf.mxu1 }
 0x547   :  { %v1509_v28 = vadd.f32 %v2889_v45, %v4076_v35 }
 0x548   :  { %v1503_v34 = vpop.f32.mrf.mxu1 }
 0x549   :  { %v1539_v46 = vmul.f32 0.1, %v1509_v28  ;;  %v1504_v8 = vadd.f32 %v4076_v35, %v1503_v34  ;;  %vm1533_vm5 = vcmp.gt.f32.partialorder %v1509_v28, 0.0 }
 0x54b   :  { %v1538_v11 = vmul.f32 0.1, %v1504_v8  ;;  %v1545_v38 = vsel %vm1533_vm5, %v1509_v28, %v1539_v46  ;;  %vm1532_vm7 = vcmp.gt.f32.partialorder %v1504_v8, 0.0  ;;  %vm4810_vm5 = vcmask 523520  }
 0x54c   :  { %1603 = vrot.lane.b32.xlu0 %v1545_v38, %s3059_s11  ;;  %1566 = vst.msk [vmem:[#allocation2 + $0xa] sm:$0xff] %vm4804_vm6, %v1545_v38  ;;  %1579 = vrot.lane.b32.xlu1 %v1545_v38, %s3060_s12  ;;  %vm4812_vm6 = vcmask 785920  }
 0x54d   :  { %v1544_v40 = vsel %vm1532_vm7, %v1504_v8, %v1538_v11  ;;  %vm4811_vm7 = vmmov %vm4810_vm5 }
 0x54e   :  { %1565 = vst.msk [vmem:[#allocation2 + $0x2] sm:$0xff] %vm4805_vm9, %v1544_v40  ;;  %vm4813_vm9 = vmmov %vm4812_vm6 }
 0x550   :  { %1601 = vrot.lane.b32.xlu1 %v1544_v40, %s3059_s11  ;;  %1577 = vrot.lane.b32.xlu0 %v1544_v40, %s3060_s12  ;;  %v2545_v40 = vld [vmem:[%s4557_s3 + $0x1d0] sm:$0xff] }
 0x559   :  { %v2892_v55 = vpop.f32.mrf.mxu1 }
 0x55a   :  { %v1519_v32 = vadd.f32 %v2892_v55, %v4076_v35 }
 0x55b   :  { %v1513_v20 = vpop.f32.mrf.mxu1 }
 0x55c   :  { %v1541_v44 = vmul.f32 0.1, %v1519_v32  ;;  %v1514_v59 = vadd.f32 %v4076_v35, %v1513_v20  ;;  %vm1535_vm12 = vcmp.gt.f32.partialorder %v1519_v32, 0.0  ;;  %v2544_v20 = vld [vmem:[%s4557_s3 + $0x1c8] sm:$0xff] }
 0x55e   :  { %v1540_v61 = vmul.f32 0.1, %v1514_v59  ;;  %v2895_v36 = vpop.f32.mrf.mxu1  ;;  %v1547_v63 = vsel %vm1535_vm12, %v1519_v32, %v1541_v44  ;;  %vm1534_vm10 = vcmp.gt.f32.partialorder %v1514_v59, 0.0  ;;  %vm4814_vm12 = vnez %v4767_v1  ;;  %v2543_v44 = vld [vmem:[%s4557_s3 + $0x1c0] sm:$0xff] }
 0x55f   :  { %v1529_v52 = vadd.f32 %v2895_v36, %v4076_v35  ;;  %1568 = vst.msk [vmem:[#allocation2 + $0x1a] sm:$0xff] %vm4806_vm4, %v1547_v63  ;;  %1583 = vrot.lane.b32.xlu0 %v1547_v63, %s3060_s12  ;;  %vm4816_vm4 = vmmov %vm4810_vm5 }
 0x560   :  { %v1523_v24 = vpop.f32.mrf.mxu1  ;;  %v1546_v22 = vsel %vm1534_vm10, %v1514_v59, %v1540_v61  ;;  %vm4815_vm10 = vcmask 785408  }
 0x561   :  { %v1543_v29 = vmul.f32 0.1, %v1529_v52  ;;  %v1524_v4 = vadd.f32 %v4076_v35, %v1523_v24  ;;  %1567 = vst.msk [vmem:[#allocation2 + $0x12] sm:$0xff] %vm4807_vm15, %v1546_v22  ;;  %1605 = vrot.lane.b32.xlu1 %v1546_v22, %s3059_s11  ;;  %vm1537_vm2 = vcmp.gt.f32.partialorder %v1529_v52, 0.0  ;;  %vm4817_vm15 = vmmov %vm4816_vm4 }
 0x563   :  { %v1542_v42 = vmul.f32 0.1, %v1524_v4  ;;  %1581 = vrot.lane.b32.xlu0 %v1546_v22, %s3060_s12  ;;  %vm1536_vm11 = vcmp.gt.f32.partialorder %v1524_v4, 0.0  ;;  %v1549_v27 = vsel %vm1537_vm2, %v1529_v52, %v1543_v29  ;;  %vm4818_vm2 = vmmov %vm4812_vm6  ;;  %v2542_v52 = vld [vmem:[%s4557_s3 + $0x1b8] sm:$0xff] }
 0x564   :  { %1570 = vst.msk [vmem:[#allocation2 + $0x2a] sm:$0xff] %vm4808_vm1, %v1549_v27  ;;  %vm4820_vm1 = vmmov %vm4818_vm2 }
 0x565   :  { %v1548_v6 = vsel %vm1536_vm11, %v1524_v4, %v1542_v42  ;;  %vm4819_vm11 = vmmov %vm4816_vm4  ;;  %v2541_v4 = vld [vmem:[%s4557_s3 + $0x1b0] sm:$0xff] }
 0x566   :  { %1569 = vst.msk [vmem:[#allocation2 + $0x22] sm:$0xff] %vm4809_vm8, %v1548_v6  ;;  %1585 = vrot.lane.b32.xlu1 %v1548_v6, %s3060_s12  ;;  %vm4821_vm8 = vmmov %vm4820_vm1 }
 0x567   :  { %1607 = vrot.lane.b32.xlu0 %v1547_v63, %s3059_s11 }
 0x56a   :  { %1609 = vrot.lane.b32.xlu1 %v1548_v6, %s3059_s11 }
 0x56b   :  { %1587 = vrot.lane.b32.xlu0 %v1549_v27, %s3060_s12 }
 0x56e   :  { %1611 = vrot.lane.b32.xlu1 %v1549_v27, %s3059_s11 }
 0x5be   :  { %v1604_v9 = vpop.permute.xlu0 %1603  ;;  %v1580_v43 = vpop.permute.xlu1 %1579 }
 0x5bf   :  { %1596 = vst.msk [vmem:[#allocation2 + $0x9] sm:$0xff] %vm4810_vm5, %v1580_v43  ;;  %vm4822_vm5 = vmmov %vm4816_vm4 }
 0x5c2   :  { %v1602_v51 = vpop.permute.xlu1 %1601  ;;  %v1578_v12 = vpop.permute.xlu0 %1577 }
 0x5c3   :  { %1595 = vst.msk [vmem:[#allocation2 + $0x1] sm:$0xff] %vm4811_vm7, %v1578_v12  ;;  %vm4823_vm7 = vnez %v4770_v48 }
 0x5c4   :  { %1619 = vst.msk [vmem:[#allocation2] sm:$0xff] %vm4812_vm6, %v1602_v51  ;;  %vm4824_vm6 = vmmov %vm4815_vm10 }
 0x5c5   :  { %1620 = vst.msk [vmem:[#allocation2 + $0x8] sm:$0xff] %vm4813_vm9, %v1604_v9  ;;  %vm4825_vm9 = vmmov %vm4820_vm1 }
 0x5cc   :  { %v1625_v50 = vld [vmem:[#allocation2 + $0x1] sm:$0xff] }
 0x5cd   :  { %v1631_v17 = vsel %vm4814_vm12, %v1625_v50, 0.0  ;;  %vm4826_vm12 = vnez %v4784_v37  ;;  %v2546_v37 = vld [vmem:[%s4557_s3 + $0x1d8] sm:$0xff] }
 0x5ce   :  { %2920 = vmatprep.mubr.msk.f32.mxu0 %vm4815_vm10, %v1631_v17  ;;  %vm4827_vm10 = vmmov %vm4824_vm6  ;;  %2930 = vmatpush3.msra.mxu1 %v2546_v37 }
 0x5cf   :  { %2931 = vmatprep.subr.mxu1 %v3061_v13 }
 0x5d0   :  { %2932 = vmatpush3.msra.mxu1 %v2545_v40  ;;  %v1797_v40 = vand.u32 3, %v3178_v25 }
 0x5d1   :  { %v1584_v21 = vpop.permute.xlu0 %1583  ;;  %2933 = vmatprep.subr.mxu1 %v3061_v13 }
 0x5d2   :  { %1598 = vst.msk [vmem:[#allocation2 + $0x19] sm:$0xff] %vm4816_vm4, %v1584_v21  ;;  %vm4828_vm4 = vmmov %vm4824_vm6  ;;  %2934 = vmatpush3.msra.mxu1 %v2544_v20  ;;  %v2561_v20 = vld [vmem:[%s4557_s3 + $0x228] sm:$0xff] }
 0x5d3   :  { %v1606_v62 = vpop.permute.xlu1 %1605  ;;  %2935 = vmatprep.subr.mxu1 %v3061_v13 }
 0x5d4   :  { %2936 = vmatpush3.msra.mxu1 %v2543_v44  ;;  %v2560_v44 = vld [vmem:[%s4557_s3 + $0x220] sm:$0xff] }
 0x5d5   :  { %v1582_v2 = vpop.permute.xlu0 %1581  ;;  %2937 = vmatprep.subr.mxu1 %v3061_v13 }
 0x5d6   :  { %1597 = vst.msk [vmem:[#allocation2 + $0x11] sm:$0xff] %vm4817_vm15, %v1582_v2  ;;  %vm4829_vm15 = vmmov %vm4828_vm4  ;;  %2938 = vmatpush3.msra.mxu1 %v2542_v52  ;;  %v2537_v2 = vld [vmem:[%s4557_s3 + $0x190] sm:$0xff]  ;;  %v2555_v52 = vld [vmem:[%s4557_s3 + $0x1f8] sm:$0xff] }
 0x5d7   :  { %1621 = vst.msk [vmem:[#allocation2 + $0x10] sm:$0xff] %vm4818_vm2, %v1606_v62  ;;  %vm4830_vm2 = vmmov %vm4828_vm4  ;;  %2939 = vmatprep.subr.mxu1 %v3061_v13  ;;  %v2538_v62 = vld [vmem:[%s4557_s3 + $0x198] sm:$0xff] }
 0x5d8   :  { %v1586_v31 = vpop.permute.xlu1 %1585  ;;  %2940 = vmatpush3.msra.mxu1 %v2541_v4 }
 0x5d9   :  { %1599 = vst.msk [vmem:[#allocation2 + $0x21] sm:$0xff] %vm4819_vm11, %v1586_v31  ;;  %v1608_v3 = vpop.permute.xlu0 %1607  ;;  %2941 = vmatprep.subr.mxu1 %v3061_v13  ;;  %v2536_v31 = vld [vmem:[%s4557_s3 + $0x188] sm:$0xff] }
 0x5da   :  { %1622 = vst.msk [vmem:[#allocation2 + $0x18] sm:$0xff] %vm4820_vm1, %v1608_v3 }
 0x5dc   :  { %v1610_v35 = vpop.permute.xlu1 %1609 }
 0x5dd   :  { %1623 = vst.msk [vmem:[#allocation2 + $0x20] sm:$0xff] %vm4821_vm8, %v1610_v35  ;;  %v1588_v1 = vpop.permute.xlu0 %1587 }
 0x5de   :  { %1600 = vst.msk [vmem:[#allocation2 + $0x29] sm:$0xff] %vm4822_vm5, %v1588_v1  ;;  %v1626_v7 = vld [vmem:[#allocation2 + $0x9] sm:$0xff]  ;;  %v2535_v1 = vld [vmem:[%s4557_s3 + $0x180] sm:$0xff] }
 0x5df   :  { %v1632_v39 = vsel %vm4823_vm7, %v1626_v7, 0.0 }
 0x5e0   :  { %v1612_v45 = vpop.permute.xlu1 %1611  ;;  %2921 = vmatmul.mubr.msk.f32.vlgmr.msra.gmra.mxu0 %vm4824_vm6, %v1632_v39 }
 0x5e1   :  { %1624 = vst.msk [vmem:[#allocation2 + $0x28] sm:$0xff] %vm4825_vm9, %v1612_v45  ;;  %v1627_v60 = vld [vmem:[#allocation2 + $0x11] sm:$0xff] }
 0x5e2   :  { %v1633_v28 = vsel %vm4826_vm12, %v1627_v60, 0.0 }
 0x5e3   :  { %2923 = vmatprep.mubr.msk.f32.mxu0 %vm4827_vm10, %v1633_v28 }
 0x5e4   :  { %v1628_v34 = vld [vmem:[#allocation2 + $0x19] sm:$0xff] }
 0x5e5   :  { %v1634_v46 = vsel %vm4048_vm0, %v1628_v34, 0.0  ;;  %v1795_v34 = vand.u32 3, %v3159_v15 }
 0x5e6   :  { %2924 = vmatmul.mubr.msk.f32.gmra.mxu0 %vm4828_vm4, %v1634_v46 }
 0x5e8   :  { %v1629_v8 = vld [vmem:[#allocation2 + $0x21] sm:$0xff]  ;;  %v1630_v48 = vld [vmem:[#allocation2 + $0x29] sm:$0xff] }
 0x5e9   :  { %v1635_v11 = vsel %vm4057_vm14, %v1629_v8, 0.0  ;;  %v1636_v38 = vsel %vm4063_vm3, %v1630_v48, 0.0  ;;  %vm4831_vm3 = vcmask 261120   ;;  %v1796_v8 = vand.u32 3, %v3162_v18 }
 0x5ea   :  { %2926 = vmatprep.mubr.msk.f32.mxu0 %vm4829_vm15, %v1635_v11  ;;  %vm4832_vm11 = vmmov %vm4831_vm3  ;;  %vm4590_vm15 = vmmov 0   ;;  %v2578_v11 = vld [vmem:[%s4557_s3 + $0x288] sm:$0xff] }
 0x5eb   :  { %2927 = vmatmul.mubr.msk.f32.gmra.mxu0 %vm4830_vm2, %v1636_v38  ;;  %vm4833_vm5 = vmmov %vm4831_vm3  ;;  %2953 = vmatprep.mubr.msk.f32.mxu1 %vm4590_vm15, %v3061_v13 }
 0x5ec   :  { %vm4834_vm7 = vmmov %vm4831_vm3  ;;  %2986 = vmatprep.mubr.msk.f32.mxu0 %vm4590_vm15, %v3061_v13 }
 0x5ed   :  { %vm4835_vm12 = vmmov %vm4831_vm3 }
 0x5ee   :  { %vm4836_vm10 = vmmov %vm4831_vm3 }
 0x5ef   :  { %vm4837_vm4 = vmmov %vm4831_vm3 }
 0x5f0   :  { %vm4838_vm2 = vmmov %vm4831_vm3 }
 0x6a0   :  { %v2922_v30 = vpop.f32.mrf.mxu0 }
 0x6a1   :  { %v1733_v58 = vadd.f32 %v2922_v30, %v2528_v57 }
 0x6a2   :  { %v1727_v49 = vpop.f32.mrf.mxu0 }
 0x6a3   :  { %v1757_v23 = vadd.f32 %v1733_v58, %v3905_v41  ;;  %v1728_v10 = vadd.f32 %v2528_v57, %v1727_v49 }
 0x6a5   :  { %vm1763_vm0 = vcmp.gt.f32.partialorder %v1757_v23, 0.0  ;;  %v1769_v16 = vmul.f32 0.1, %v1757_v23  ;;  %v1756_v54 = vadd.f32 %v1728_v10, %v3890_v33 }
 0x6a6   :  { %v2925_v55 = vpop.f32.mrf.mxu0 }
 0x6a7   :  { %v1775_v32 = vsel %vm1763_vm0, %v1757_v23, %v1769_v16  ;;  %vm1762_vm14 = vcmp.gt.f32.partialorder %v1756_v54, 0.0  ;;  %v1768_v26 = vmul.f32 0.1, %v1756_v54  ;;  %v1743_v56 = vadd.f32 %v2925_v55, %v2528_v57  ;;  %vm4839_vm0 = vmmov %vm4838_vm2 }
 0x6a8   :  { %1781 = vst.msk [vmem:[#allocation3 + $0x8] sm:$0xff] %vm4831_vm3, %v1775_v32  ;;  %v1737_v41 = vpop.f32.mrf.mxu0  ;;  %vm1798_vm3 = vcmp.eq.s32.totalorder %v1795_v34, 0 }
 0x6a9   :  { %v1774_v59 = vsel %vm1762_vm14, %v1756_v54, %v1768_v26  ;;  %v1759_v33 = vadd.f32 %v1743_v56, %v3939_v47  ;;  %v1738_v61 = vadd.f32 %v2528_v57, %v1737_v41  ;;  %vm4840_vm14 = vcmask 523520   ;;  %v2563_v26 = vld [vmem:[%s4557_s3 + $0x238] sm:$0xff]  ;;  %v2562_v56 = vld [vmem:[%s4557_s3 + $0x230] sm:$0xff] }
 0x6aa   :  { %1780 = vst.msk [vmem:[#allocation3] sm:$0xff] %vm4832_vm11, %v1774_v59  ;;  %vm4841_vm11 = vcmask 785920   ;;  %2963 = vmatpush3.msra.mxu0 %v2563_v26  ;;  %v2559_v41 = vld [vmem:[%s4557_s3 + $0x218] sm:$0xff]  ;;  %v2558_v59 = vld [vmem:[%s4557_s3 + $0x210] sm:$0xff] }
 0x6ab   :  { %vm1765_vm1 = vcmp.gt.f32.partialorder %v1759_v33, 0.0  ;;  %v1771_v36 = vmul.f32 0.1, %v1759_v33  ;;  %v1758_v63 = vadd.f32 %v1738_v61, %v3922_v14  ;;  %v2928_v0 = vpop.f32.mrf.mxu0  ;;  %v2540_v14 = vld [vmem:[%s4557_s3 + $0x1a8] sm:$0xff]  ;;  %2964 = vmatprep.subr.mxu0 %v3061_v13  ;;  %v2548_v61 = vld [vmem:[%s4559_s4 + $0x4] ss:$0 sm:$0xff] }
 0x6ac   :  { %v1753_v24 = vadd.f32 %v2928_v0, %v2528_v57  ;;  %2942 = vmatpush3.msra.mxu1 %v2540_v14  ;;  %2965 = vmatpush3.msra.mxu0 %v2562_v56  ;;  %v2556_v0 = vld [vmem:[%s4557_s3 + $0x200] sm:$0xff]  ;;  %v2554_v14 = vld [vmem:[%s4557_s3 + $0x1f0] sm:$0xff] }
 0x6ad   :  { %v1777_v47 = vsel %vm1765_vm1, %v1759_v33, %v1771_v36  ;;  %vm1764_vm8 = vcmp.gt.f32.partialorder %v1758_v63, 0.0  ;;  %v1770_v22 = vmul.f32 0.1, %v1758_v63  ;;  %v1747_v29 = vpop.f32.mrf.mxu0  ;;  %2943 = vmatprep.subr.mxu1 %v3061_v13  ;;  %vm1804_vm1 = vcmp.eq.s32.totalorder %v1795_v34, 3  ;;  %2966 = vmatprep.subr.mxu0 %v3061_v13  ;;  %v2557_v33 = vld [vmem:[%s4557_s3 + $0x208] sm:$0xff] }
 0x6ae   :  { %1783 = vst.msk [vmem:[#allocation3 + $0x18] sm:$0xff] %vm4833_vm5, %v1777_v47  ;;  %v1761_v42 = vadd.f32 %v1753_v24, %v3955_v53  ;;  %v1748_v27 = vadd.f32 %v2528_v57, %v1747_v29  ;;  %v2539_v53 = vld [vmem:[%s4557_s3 + $0x1a0] sm:$0xff]  ;;  %vm4843_vm5 = vcmp.lt.s32.totalorder %v3166_v19, 32  ;;  %2967 = vmatpush3.msra.mxu0 %v2561_v20 }
 0x6af   :  { %v1776_v6 = vsel %vm1764_vm8, %v1758_v63, %v1770_v22  ;;  %2944 = vmatpush3.msra.mxu1 %v2539_v53  ;;  %vm4842_vm8 = vmmov %vm4840_vm14  ;;  %2968 = vmatprep.subr.mxu0 %v3061_v13 }
 0x6b0   :  { %1782 = vst.msk [vmem:[#allocation3 + $0x10] sm:$0xff] %vm4834_vm7, %v1776_v6  ;;  %vm1767_vm6 = vcmp.gt.f32.partialorder %v1761_v42, 0.0  ;;  %v1773_v9 = vmul.f32 0.1, %v1761_v42  ;;  %v1760_v43 = vadd.f32 %v1748_v27, %v3949_v5  ;;  %2945 = vmatprep.subr.mxu1 %v3061_v13  ;;  %vm4267_vm7 = vmand %vm4843_vm5, %vm1798_vm3  ;;  %2969 = vmatpush3.msra.mxu0 %v2560_v44  ;;  %v2575_v44 = vld [vmem:[%s4557_s3 + $0x270] sm:$0xff] }
 0x6b1   :  { %v1786_v51 = vld [vmem:[#allocation3] ss:$2 sm:$0xff]  ;;  %v1789_v12 = vld [vmem:[#allocation3 + $0x1] ss:$2 sm:$0xff]  ;;  %2946 = vmatpush3.msra.mxu1 %v2538_v62  ;;  %2970 = vmatprep.subr.mxu0 %v3061_v13 }
 0x6b2   :  { %v1779_v50 = vsel %vm1767_vm6, %v1761_v42, %v1773_v9  ;;  %vm1766_vm9 = vcmp.gt.f32.partialorder %v1760_v43, 0.0  ;;  %v1772_v17 = vmul.f32 0.1, %v1760_v43  ;;  %v4214_v21 = vmax.f32 %v1786_v51, %v1789_v12  ;;  %2947 = vmatprep.subr.mxu1 %v3061_v13  ;;  %2971 = vmatpush3.msra.mxu0 %v2559_v41  ;;  %v2553_v42 = vld [vmem:[%s4557_s3 + $0x1e8] sm:$0xff] }
 0x6b3   :  { %1785 = vst.msk [vmem:[#allocation3 + $0x28] sm:$0xff] %vm4835_vm12, %v1779_v50  ;;  %2948 = vmatpush3.msra.mxu1 %v2537_v2  ;;  %vm4846_vm6 = vcmp.ge.s32.totalorder %v3166_v19, 64  ;;  %vm1799_vm12 = vcmp.eq.s32.totalorder %v1796_v8, 0  ;;  %2972 = vmatprep.subr.mxu0 %v3061_v13  ;;  %v2574_v41 = vld [vmem:[%s4557_s3 + $0x268] sm:$0xff] }
 0x6b4   :  { %v1778_v5 = vsel %vm1766_vm9, %v1760_v43, %v1772_v17  ;;  %1837 = vrot.lane.b32.xlu0 %v4214_v21, %s3060_s12  ;;  %1831 = vst.msk [vmem:[#allocation2 + $0x2] sm:$0xff] %vm4836_vm10, %v4214_v21  ;;  %2949 = vmatprep.subr.mxu1 %v3061_v13  ;;  %vm4273_vm9 = vmand %vm4846_vm6, %vm1804_vm1  ;;  %vm1805_vm10 = vcmp.eq.s32.totalorder %v1796_v8, 3  ;;  %v2552_v43 = vld [vmem:[%s4557_s3 + $0x1e0] sm:$0xff]  ;;  %v2580_v8 = vld [vmem:[%s4557_s3 + $0x298] sm:$0xff] }
 0x6b5   :  { %1784 = vst.msk [vmem:[#allocation3 + $0x20] sm:$0xff] %vm4837_vm4, %v1778_v5  ;;  %2950 = vmatpush3.msra.mxu1 %v2536_v31  ;;  %vm4849_vm4 = vmmov %vm4841_vm11  ;;  %2973 = vmatpush3.msra.mxu0 %v2558_v59 }
 0x6b6   :  { %2951 = vmatprep.subr.mxu1 %v3061_v13  ;;  %2974 = vmatprep.subr.mxu0 %v3061_v13 }
 0x6b7   :  { %v1787_v3 = vld [vmem:[#allocation3 + $0x10] ss:$2 sm:$0xff]  ;;  %v1790_v35 = vld [vmem:[#allocation3 + $0x11] ss:$2 sm:$0xff]  ;;  %2952 = vmatpush3.msra.mxu1 %v2535_v1  ;;  %2975 = vmatpush3.msra.mxu0 %v2557_v33 }
 0x6b8   :  { %1849 = vrot.lane.b32.xlu0 %v4214_v21, %s3059_s11  ;;  %v4243_v7 = vmax.f32 %v1787_v3, %v1790_v35  ;;  %2976 = vmatprep.subr.mxu0 %v3061_v13  ;;  %v2572_v33 = vld [vmem:[%s4557_s3 + $0x258] sm:$0xff] }
 0x6b9   :  { %2977 = vmatpush3.msra.mxu0 %v2556_v0  ;;  %2995 = vmatprep.subr.mxu1 %v2580_v8 }
 0x6ba   :  { %1839 = vrot.lane.b32.xlu1 %v4243_v7, %s3060_s12  ;;  %1832 = vst.msk [vmem:[#allocation2 + $0xa] sm:$0xff] %vm4838_vm2, %v4243_v7  ;;  %vm1810_vm2 = vmor %vm4267_vm7, %vm4273_vm9  ;;  %2978 = vmatprep.subr.mxu0 %v3061_v13 }
 0x6bb   :  { %2979 = vmatpush3.msra.mxu0 %v2555_v52  ;;  %v2570_v52 = vld [vmem:[%s4557_s3 + $0x248] sm:$0xff] }
 0x6bc   :  { %v1788_v39 = vld [vmem:[#allocation3 + $0x20] ss:$2 sm:$0xff]  ;;  %v1791_v45 = vld [vmem:[#allocation3 + $0x21] ss:$2 sm:$0xff]  ;;  %2980 = vmatprep.subr.mxu0 %v3061_v13 }
 0x6bd   :  { %v4250_v60 = vmax.f32 %v1788_v39, %v1791_v45  ;;  %2981 = vmatpush3.msra.mxu0 %v2554_v14 }
 0x6be   :  { %1851 = vrot.lane.b32.xlu1 %v4243_v7, %s3059_s11  ;;  %2982 = vmatprep.subr.mxu0 %v3061_v13 }
 0x6bf   :  { %1841 = vrot.lane.b32.xlu0 %v4250_v60, %s3060_s12  ;;  %1833 = vst.msk [vmem:[#allocation2 + $0x12] sm:$0xff] %vm4839_vm0, %v4250_v60  ;;  %vm4850_vm0 = vmmov %vm4842_vm8  ;;  %2983 = vmatpush3.msra.mxu0 %v2553_v42  ;;  %v2139_v42 = vand.u32 1, %v3162_v18 }
 0x6c0   :  { %2984 = vmatprep.subr.mxu0 %v3061_v13 }
 0x6c1   :  { %2985 = vmatpush3.msra.mxu0 %v2552_v43 }
 0x6c2   :  { %1853 = vrot.lane.b32.xlu1 %v4250_v60, %s3059_s11 }
 0x726   :  { %v1838_v28 = vpop.permute.xlu0 %1837 }
 0x727   :  { %1846 = vst.msk [vmem:[#allocation2 + $0x1] sm:$0xff] %vm4840_vm14, %v1838_v28  ;;  %vm4851_vm14 = vmmov %vm4843_vm5 }
 0x728   :  { %vm1802_vm3 = vmand %vm4851_vm14, %vm1799_vm12 }
 0x729   :  { %vm4853_vm5 = vmmov %vm4849_vm4 }
 0x72a   :  { %v1850_v46 = vpop.permute.xlu0 %1849  ;;  %vm4856_vm7 = vmmov %vm4851_vm14 }
 0x72b   :  { %1858 = vst.msk [vmem:[#allocation2] sm:$0xff] %vm4841_vm11, %v1850_v46  ;;  %vm4852_vm11 = vmmov %vm4846_vm6 }
 0x72c   :  { %v1840_v48 = vpop.permute.xlu1 %1839  ;;  %vm1808_vm1 = vmand %vm4852_vm11, %vm1805_vm10  ;;  %vm4858_vm10 = vcmask 785408  }
 0x72d   :  { %1847 = vst.msk [vmem:[#allocation2 + $0x9] sm:$0xff] %vm4842_vm8, %v1840_v48  ;;  %vm1800_vm8 = vcmp.eq.s32.totalorder %v1797_v40, 0  ;;  %vm4290_vm6 = vmxor %vm1810_vm2, %vm4794_vm13  ;;  %vm4861_vm2 = vmmov 0   ;;  %v2579_v48 = vld [vmem:[%s4557_s3 + $0x290] sm:$0xff] }
 0x72e   :  { %vm1811_vm15 = vmor %vm1802_vm3, %vm1808_vm1 }
 0x72f   :  { %vm1803_vm9 = vmand %vm4856_vm7, %vm1800_vm8 }
 0x730   :  { %v1852_v37 = vpop.permute.xlu1 %1851  ;;  %vm4857_vm12 = vmmov %vm4852_vm11 }
 0x731   :  { %1859 = vst.msk [vmem:[#allocation2 + $0x8] sm:$0xff] %vm4849_vm4, %v1852_v37  ;;  %v1842_v57 = vpop.permute.xlu0 %1841  ;;  %vm1806_vm4 = vcmp.eq.s32.totalorder %v1797_v40, 3  ;;  %vm4302_vm14 = vmxor %vm1811_vm15, %vm4794_vm13 }
 0x732   :  { %1848 = vst.msk [vmem:[#allocation2 + $0x11] sm:$0xff] %vm4850_vm0, %v1842_v57  ;;  %vm1809_vm0 = vmand %vm4857_vm12, %vm1806_vm4 }
 0x733   :  { %vm1812_vm3 = vmor %vm1803_vm9, %vm1809_vm0  ;;  %vm4869_vm0 = vcmask 523520  }
 0x734   :  { %v1854_v30 = vpop.permute.xlu1 %1853  ;;  %vm4862_vm11 = vmmov %vm4858_vm10 }
 0x735   :  { %1860 = vst.msk [vmem:[#allocation2 + $0x10] sm:$0xff] %vm4853_vm5, %v1854_v30  ;;  %vm4312_vm1 = vmxor %vm1812_vm3, %vm4794_vm13  ;;  %vm4866_vm5 = vcmask 261120  }
 0x736   :  { %vm4865_vm15 = vmmov %vm4858_vm10 }
 0x737   :  { %vm4867_vm7 = vmmov %vm4866_vm5 }
 0x738   :  { %v1861_v58 = vld [vmem:[#allocation2 + $0x1] sm:$0xff]  ;;  %vm4868_vm12 = vmmov %vm4866_vm5 }
 0x739   :  { %v1864_v49 = vsel %vm4290_vm6, %v1861_v58, 0.0  ;;  %vm4871_vm3 = vmmov %vm4869_vm0 }
 0x73a   :  { %2954 = vmatmul.mubr.msk.f32.vlgmr.msra.gmra.mxu1 %vm4858_vm10, %v1864_v49  ;;  %vm4870_vm10 = vcmask 785920  }
 0x73b   :  { %2956 = vmatprep.mubr.msk.f32.mxu1 %vm4861_vm2, %v3061_v13  ;;  %2996 = vmatpush3.msra.mxu1 %v2580_v8 }
 0x73c   :  { %v1862_v10 = vld [vmem:[#allocation2 + $0x9] sm:$0xff]  ;;  %v1863_v55 = vld [vmem:[#allocation2 + $0x11] sm:$0xff]  ;;  %2997 = vmatprep.subr.mxu1 %v2579_v48 }
 0x73d   :  { %v1865_v16 = vsel %vm4302_vm14, %v1862_v10, 0.0  ;;  %v1866_v32 = vsel %vm4312_vm1, %v1863_v55, 0.0  ;;  %2998 = vmatpush3.msra.mxu1 %v2579_v48  ;;  %v2586_v48 = vld [vmem:[%s4557_s3 + $0x2a8] sm:$0xff] }
 0x73e   :  { %2957 = vmatmul.mubr.msk.f32.gmra.mxu1 %vm4862_vm11, %v1865_v16  ;;  %vm4872_vm11 = vmmov %vm4870_vm10  ;;  %2999 = vmatprep.subr.mxu1 %v2578_v11 }
 0x73f   :  { %2959 = vmatprep.mubr.msk.f32.mxu1 %vm4861_vm2, %v3061_v13  ;;  %3000 = vmatpush3.msra.mxu1 %v2578_v11 }
 0x742   :  { %2960 = vmatmul.mubr.msk.f32.gmra.mxu1 %vm4865_vm15, %v1866_v32  ;;  %vm4873_vm15 = vmmov %vm4869_vm0  ;;  %v2577_v32 = vld [vmem:[%s4557_s3 + $0x280] sm:$0xff] }
 0x743   :  { %3001 = vmatprep.subr.mxu1 %v2577_v32 }
 0x744   :  { %3002 = vmatpush3.msra.mxu1 %v2577_v32 }
 0x7fa   :  { %v1948_v36 = vpop.f32.mrf.mxu1 }
 0x7fb   :  { %v1949_v63 = vadd.f32 %v2548_v61, %v1948_v36 }
 0x7fc   :  { %v2955_v24 = vpop.f32.mrf.mxu1 }
 0x7fd   :  { %vm1962_vm8 = vcmp.gt.f32.partialorder %v1949_v63, 0.0  ;;  %v1965_v47 = vmul.f32 0.1, %v1949_v63 }
 0x7fe   :  { %v1953_v22 = vpop.f32.mrf.mxu1 }
 0x7ff   :  { %v1954_v29 = vadd.f32 %v2548_v61, %v1953_v22  ;;  %v1968_v4 = vsel %vm1962_vm8, %v1949_v63, %v1965_v47  ;;  %vm4874_vm8 = vmmov %vm4870_vm10  ;;  %v2571_v63 = vld [vmem:[%s4557_s3 + $0x250] sm:$0xff] }
 0x800   :  { %1992 = vrot.lane.b32.xlu0 %v1968_v4, %s3060_s12  ;;  %1986 = vst.msk [vmem:[#allocation2 + $0x2] sm:$0xff] %vm4866_vm5, %v1968_v4  ;;  %v2958_v27 = vpop.f32.mrf.mxu1  ;;  %vm4875_vm5 = vcmask 785408  }
 0x801   :  { %vm1963_vm4 = vcmp.gt.f32.partialorder %v1954_v29, 0.0  ;;  %v1966_v6 = vmul.f32 0.1, %v1954_v29 }
 0x802   :  { %v1958_v9 = vpop.f32.mrf.mxu1 }
 0x803   :  { %v1959_v51 = vadd.f32 %v2548_v61, %v1958_v9  ;;  %v1969_v12 = vsel %vm1963_vm4, %v1954_v29, %v1966_v6  ;;  %vm4876_vm4 = vmmov %vm4875_vm5  ;;  %v2569_v29 = vld [vmem:[%s4557_s3 + $0x240] sm:$0xff] }
 0x804   :  { %2004 = vrot.lane.b32.xlu0 %v1968_v4, %s3059_s11  ;;  %1994 = vrot.lane.b32.xlu1 %v1969_v12, %s3060_s12  ;;  %1987 = vst.msk [vmem:[#allocation2 + $0xa] sm:$0xff] %vm4867_vm7, %v1969_v12  ;;  %v2961_v53 = vpop.f32.mrf.mxu1  ;;  %vm4877_vm7 = vmmov %vm4876_vm4  ;;  %v2138_v4 = vand.u32 1, %v3159_v15 }
 0x805   :  { %vm1964_vm9 = vcmp.gt.f32.partialorder %v1959_v51, 0.0  ;;  %v1967_v50 = vmul.f32 0.1, %v1959_v51  ;;  %v2596_v53 = vld [vmem:[%s4557_s3 + $0x2f8] sm:$0xff] }
 0x806   :  { %3022 = vmatprep.subr.mxu0 %v2596_v53 }
 0x807   :  { %v1970_v17 = vsel %vm1964_vm9, %v1959_v51, %v1967_v50  ;;  %v2595_v50 = vld [vmem:[%s4557_s3 + $0x2f0] sm:$0xff] }
 0x808   :  { %2006 = vrot.lane.b32.xlu1 %v1969_v12, %s3059_s11  ;;  %1996 = vrot.lane.b32.xlu0 %v1970_v17, %s3060_s12  ;;  %1988 = vst.msk [vmem:[#allocation2 + $0x12] sm:$0xff] %vm4868_vm12, %v1970_v17 }
 0x80c   :  { %2008 = vrot.lane.b32.xlu1 %v1970_v17, %s3059_s11  ;;  %v2594_v17 = vld [vmem:[%s4557_s3 + $0x2e8] sm:$0xff] }
 0x872   :  { %v1993_v62 = vpop.permute.xlu0 %1992 }
 0x873   :  { %2001 = vst.msk [vmem:[#allocation2 + $0x1] sm:$0xff] %vm4869_vm0, %v1993_v62  ;;  %v2593_v62 = vld [vmem:[%s4557_s3 + $0x2e0] sm:$0xff] }
 0x876   :  { %v2005_v5 = vpop.permute.xlu0 %2004  ;;  %v1995_v2 = vpop.permute.xlu1 %1994 }
 0x877   :  { %2013 = vst.msk [vmem:[#allocation2] sm:$0xff] %vm4870_vm10, %v2005_v5  ;;  %vm4592_vm10 = vcmask 257024   ;;  %v2592_v5 = vld [vmem:[%s4557_s3 + $0x2d8] sm:$0xff] }
 0x878   :  { %2002 = vst.msk [vmem:[#allocation2 + $0x9] sm:$0xff] %vm4871_vm3, %v1995_v2  ;;  %v2591_v2 = vld [vmem:[%s4557_s3 + $0x2d0] sm:$0xff] }
 0x87a   :  { %v2007_v31 = vpop.permute.xlu1 %2006  ;;  %v1997_v3 = vpop.permute.xlu0 %1996 }
 0x87b   :  { %2014 = vst.msk [vmem:[#allocation2 + $0x8] sm:$0xff] %vm4872_vm11, %v2007_v31  ;;  %vm4594_vm11 = vcmask 519424   ;;  %v2590_v31 = vld [vmem:[%s4557_s3 + $0x2c8] sm:$0xff] }
 0x87c   :  { %2003 = vst.msk [vmem:[#allocation2 + $0x11] sm:$0xff] %vm4873_vm15, %v1997_v3  ;;  %vm2140_vm15 = vcmp.eq.s32.totalorder %v2138_v4, 0  ;;  %v2582_v3 = vld [vmem:[%s4559_s4 + $0x6] ss:$0 sm:$0xff] }
 0x87e   :  { %v2009_v35 = vpop.permute.xlu1 %2008 }
 0x87f   :  { %2015 = vst.msk [vmem:[#allocation2 + $0x10] sm:$0xff] %vm4874_vm8, %v2009_v35  ;;  %vm2144_vm8 = vcmp.eq.s32.totalorder %v2138_v4, 1  ;;  %v2589_v35 = vld [vmem:[%s4557_s3 + $0x2c0] sm:$0xff] }
 0x882   :  { %v2016_v1 = vld [vmem:[#allocation2 + $0x1] sm:$0xff] }
 0x883   :  { %v2019_v39 = vsel %vm4290_vm6, %v2016_v1, 0.0  ;;  %v2588_v1 = vld [vmem:[%s4557_s3 + $0x2b8] sm:$0xff] }
 0x884   :  { %2987 = vmatmul.mubr.msk.f32.vlgmr.msra.gmra.mxu0 %vm4875_vm5, %v2019_v39  ;;  %vm2141_vm5 = vcmp.eq.s32.totalorder %v2139_v42, 0 }
 0x885   :  { %2989 = vmatprep.mubr.msk.f32.mxu0 %vm4861_vm2, %v3061_v13  ;;  %3023 = vmatpush3.msra.mxu0 %v2596_v53 }
 0x886   :  { %v2017_v45 = vld [vmem:[#allocation2 + $0x9] sm:$0xff]  ;;  %v2018_v34 = vld [vmem:[#allocation2 + $0x11] sm:$0xff]  ;;  %3024 = vmatprep.subr.mxu0 %v2595_v50 }
 0x887   :  { %v2020_v28 = vsel %vm4302_vm14, %v2017_v45, 0.0  ;;  %v2021_v46 = vsel %vm4312_vm1, %v2018_v34, 0.0  ;;  %vm4878_vm14 = vmmov %vm4868_vm12  ;;  %3025 = vmatpush3.msra.mxu0 %v2595_v50 }
 0x888   :  { %2990 = vmatmul.mubr.msk.f32.gmra.mxu0 %vm4876_vm4, %v2020_v28  ;;  %vm4879_vm1 = vmmov %vm4868_vm12  ;;  %vm4882_vm4 = vcmask 785920   ;;  %3026 = vmatprep.subr.mxu0 %v2594_v17  ;;  %v2587_v28 = vld [vmem:[%s4557_s3 + $0x2b0] sm:$0xff] }
 0x889   :  { %2992 = vmatprep.mubr.msk.f32.mxu0 %vm4861_vm2, %v3061_v13  ;;  %v2565_v13 = vld [vmem:[%s4559_s4 + $0x5] ss:$0 sm:$0xff]  ;;  %vm4880_vm12 = vmmov %vm4879_vm1  ;;  %3027 = vmatpush3.msra.mxu0 %v2594_v17 }
 0x88a   :  { %vm4881_vm0 = vmmov %vm4879_vm1  ;;  %3028 = vmatprep.subr.mxu0 %v2593_v62 }
 0x88b   :  { %3029 = vmatpush3.msra.mxu0 %v2593_v62 }
 0x88c   :  { %2993 = vmatmul.mubr.msk.f32.gmra.mxu0 %vm4877_vm7, %v2021_v46  ;;  %vm4883_vm7 = vcmp.lt.s32.totalorder %v3166_v19, 32  ;;  %3030 = vmatprep.subr.mxu0 %v2592_v5 }
 0x88d   :  { %3031 = vmatpush3.msra.mxu0 %v2592_v5 }
 0x88e   :  { %3032 = vmatprep.subr.mxu0 %v2591_v2 }
 0x88f   :  { %3033 = vmatpush3.msra.mxu0 %v2591_v2 }
 0x890   :  { %3034 = vmatprep.subr.mxu0 %v2590_v31 }
 0x891   :  { %3035 = vmatpush3.msra.mxu0 %v2590_v31 }
 0x892   :  { %3036 = vmatprep.subr.mxu0 %v2589_v35 }
 0x893   :  { %3037 = vmatpush3.msra.mxu0 %v2589_v35 }
 0x894   :  { %3038 = vmatprep.subr.mxu0 %v2588_v1 }
 0x895   :  { %3039 = vmatpush3.msra.mxu0 %v2588_v1 }
 0x896   :  { %3040 = vmatprep.subr.mxu0 %v2587_v28 }
 0x897   :  { %3041 = vmatpush3.msra.mxu0 %v2587_v28 }
 0x898   :  { %3042 = vmatprep.subr.mxu0 %v2586_v48 }
 0x899   :  { %3043 = vmatpush3.msra.mxu0 %v2586_v48 }
 0x944   :  { %v2103_v38 = vpop.f32.mrf.mxu0 }
 0x945   :  { %v2104_v37 = vadd.f32 %v2565_v13, %v2103_v38  ;;  %v2585_v38 = vld [vmem:[%s4557_s3 + $0x2a0] sm:$0xff] }
 0x946   :  { %v2988_v40 = vpop.f32.mrf.mxu0  ;;  %3044 = vmatprep.subr.mxu0 %v2585_v38 }
 0x947   :  { %v2117_v57 = vadd.f32 %v2104_v37, %v4214_v21  ;;  %v2576_v21 = vld [vmem:[%s4557_s3 + $0x278] sm:$0xff]  ;;  %3045 = vmatpush3.msra.mxu0 %v2585_v38 }
 0x948   :  { %v2108_v30 = vpop.f32.mrf.mxu0  ;;  %3003 = vmatprep.subr.mxu1 %v2576_v21 }
 0x949   :  { %vm2120_vm6 = vcmp.gt.f32.partialorder %v2117_v57, 0.0  ;;  %v2123_v25 = vmul.f32 0.1, %v2117_v57  ;;  %v2109_v58 = vadd.f32 %v2565_v13, %v2108_v30  ;;  %3004 = vmatpush3.msra.mxu1 %v2576_v21 }
 0x94a   :  { %v2991_v49 = vpop.f32.mrf.mxu0  ;;  %3005 = vmatprep.subr.mxu1 %v2575_v44 }
 0x94b   :  { %v2126_v23 = vsel %vm2120_vm6, %v2117_v57, %v2123_v25  ;;  %v2118_v10 = vadd.f32 %v2109_v58, %v4243_v7  ;;  %3006 = vmatpush3.msra.mxu1 %v2575_v44  ;;  %vm2142_vm6 = vmand %vm4883_vm7, %vm2140_vm15 }
 0x94c   :  { %2129 = vst.msk [vmem:[#allocation3] sm:$0xff] %vm4878_vm14, %v2126_v23  ;;  %v2113_v16 = vpop.f32.mrf.mxu0  ;;  %3007 = vmatprep.subr.mxu1 %v2574_v41  ;;  %vm2145_vm14 = vcmp.eq.s32.totalorder %v2139_v42, 1 }
 0x94d   :  { %vm2121_vm2 = vcmp.gt.f32.partialorder %v2118_v10, 0.0  ;;  %v2124_v54 = vmul.f32 0.1, %v2118_v10  ;;  %v2114_v55 = vadd.f32 %v2565_v13, %v2113_v16  ;;  %3008 = vmatpush3.msra.mxu1 %v2574_v41  ;;  %v2598_v16 = vld [vmem:[%s4559_s4 + $0x7] ss:$0 sm:$0xff] }
 0x94e   :  { %v2994_v26 = vpop.f32.mrf.mxu0 }
 0x94f   :  { %v2127_v56 = vsel %vm2121_vm2, %v2118_v10, %v2124_v54  ;;  %v2119_v20 = vadd.f32 %v2114_v55, %v4250_v60  ;;  %v2573_v60 = vld [vmem:[%s4557_s3 + $0x260] sm:$0xff]  ;;  %vm2188_vm2 = vcmask 781824  }
 0x950   :  { %2130 = vst.msk [vmem:[#allocation3 + $0x8] sm:$0xff] %vm4879_vm1, %v2127_v56  ;;  %3009 = vmatprep.subr.mxu1 %v2573_v60  ;;  %vm4884_vm1 = vcmp.ge.s32.totalorder %v3166_v19, 64 }
 0x951   :  { %vm2122_vm9 = vcmp.gt.f32.partialorder %v2119_v20, 0.0  ;;  %v2125_v7 = vmul.f32 0.1, %v2119_v20  ;;  %3010 = vmatpush3.msra.mxu1 %v2573_v60 }
 0x952   :  { %3011 = vmatprep.subr.mxu1 %v2572_v33 }
 0x953   :  { %v2128_v59 = vsel %vm2122_vm9, %v2119_v20, %v2125_v7  ;;  %3012 = vmatpush3.msra.mxu1 %v2572_v33  ;;  %vm2146_vm9 = vmand %vm4884_vm1, %vm2144_vm8  ;;  %vm4892_vm8 = vcmask 785408  }
 0x954   :  { %2131 = vst.msk [vmem:[#allocation3 + $0x10] sm:$0xff] %vm4880_vm12, %v2128_v59  ;;  %3013 = vmatprep.subr.mxu1 %v2571_v63  ;;  %vm4885_vm12 = vmmov %vm4883_vm7 }
 0x955   :  { %3014 = vmatpush3.msra.mxu1 %v2571_v63 }
 0x956   :  { %3015 = vmatprep.subr.mxu1 %v2570_v52 }
 0x957   :  { %v2132_v61 = vld [vmem:[#allocation3] ss:$2 sm:$0xff]  ;;  %v2134_v36 = vld [vmem:[#allocation3 + $0x1] ss:$2 sm:$0xff]  ;;  %3016 = vmatpush3.msra.mxu1 %v2570_v52 }
 0x958   :  { %v4438_v0 = vmax.f32 %v2132_v61, %v2134_v36  ;;  %3017 = vmatprep.subr.mxu1 %v2569_v29 }
 0x959   :  { %3018 = vmatpush3.msra.mxu1 %v2569_v29 }
 0x95a   :  { %2172 = vrot.lane.b32.xlu0 %v4438_v0, %s3060_s12  ;;  %2167 = vst.msk [vmem:[#allocation2 + $0x2] sm:$0xff] %vm4881_vm0, %v4438_v0  ;;  %vm2143_vm0 = vmand %vm4885_vm12, %vm2141_vm5  ;;  %vm4894_vm5 = vcmask 257024  }
 0x95b   :  { %v2133_v24 = vld [vmem:[#allocation3 + $0x10] ss:$2 sm:$0xf]  ;;  %v2135_v47 = vld [vmem:[#allocation3 + $0x11] ss:$2 sm:$0xf]  ;;  %vm4899_vm12 = vmmov %vm4892_vm8 }
 0x95c   :  { %v4447_v22 = vmax.f32 %v2133_v24, %v2135_v47 }
 0x95e   :  { %2181 = vrot.lane.b32.xlu0 %v4438_v0, %s3059_s11  ;;  %2174 = vrot.lane.b32.xlu1 %v4447_v22, %s3060_s12  ;;  %2169 = vst.msk [vmem:[#allocation2 + $0xa] sm:$0xf] %vm4592_vm10, %v4447_v22 }
 0x962   :  { %2183 = vrot.lane.b32.xlu1 %v4447_v22, %s3059_s11 }
 0x9cc   :  { %v2173_v14 = vpop.permute.xlu0 %2172 }
 0x9cd   :  { %2178 = vst.msk [vmem:[#allocation2 + $0x1] sm:$0xff] %vm4871_vm3, %v2173_v14  ;;  %vm4886_vm3 = vmmov %vm4884_vm1  ;;  %vm4897_vm1 = vcmask 523520  }
 0x9ce   :  { %vm2147_vm10 = vmand %vm4886_vm3, %vm2145_vm14  ;;  %vm4896_vm14 = vcmask 519424  }
 0x9cf   :  { %vm2149_vm13 = vmor %vm2143_vm0, %vm2147_vm10 }
 0x9d0   :  { %v2182_v27 = vpop.permute.xlu0 %2181  ;;  %v2175_v6 = vpop.permute.xlu1 %2174  ;;  %vm4893_vm10 = vmmov %vm4892_vm8 }
 0x9d1   :  { %2187 = vst.msk [vmem:[#allocation2] sm:$0xff] %vm4882_vm4, %v2182_v27  ;;  %vm2148_vm4 = vmor %vm2142_vm6, %vm2146_vm9  ;;  %vm4895_vm6 = vcmask 261120   ;;  %vm4898_vm9 = vcmask 785920  }
 0x9d2   :  { %2180 = vst.msk [vmem:[#allocation2 + $0x9] sm:$0xf] %vm4594_vm11, %v2175_v6  ;;  %vm4887_vm11 = vmmov 1   ;;  %vm4900_vm0 = vmmov %vm4892_vm8 }
 0x9d3   :  { %vm4475_vm7 = vmxor %vm2148_vm4, %vm4887_vm11 }
 0x9d4   :  { %v2184_v15 = vpop.permute.xlu1 %2183  ;;  %vm4480_vm15 = vmxor %vm2149_vm13, %vm4887_vm11 }
 0x9d5   :  { %2189 = vst.msk [vmem:[#allocation2 + $0x8] sm:$0xf] %vm2188_vm2, %v2184_v15  ;;  %vm4901_vm4 = vmmov %vm4894_vm5 }
 0x9dc   :  { %v2190_v43 = vld [vmem:[#allocation2 + $0x1] sm:$0xff]  ;;  %v2191_v51 = vld [vmem:[#allocation2 + $0x9] sm:$0xf] }
 0x9dd   :  { %v2192_v19 = vsel %vm4475_vm7, %v2190_v43, 0.0  ;;  %v2193_v12 = vsel %vm4480_vm15, %v2191_v51, 0.0 }
 0x9de   :  { %3019 = vmatprep.mubr.msk.f32.mxu1 %vm4892_vm8, %v2192_v19  ;;  %vm2436_vm8 = vcmask 253952  }
 0x9df   :  { %3020 = vmatmul.mubr.msk.f32.vlgmr.msra.gmra.mxu1 %vm4893_vm10, %v2193_v12 }
 0xa9f   :  { %v3021_v39 = vpop.f32.mrf.mxu1 }
 0xaa0   :  { %v2278_v45 = vadd.f32 %v3021_v39, %v2582_v3 }
 0xaa1   :  { %v2272_v34 = vpop.f32.mrf.mxu1 }
 0xaa2   :  { %vm2282_vm13 = vcmp.gt.f32.partialorder %v2278_v45, 0.0  ;;  %v2284_v46 = vmul.f32 0.1, %v2278_v45  ;;  %v2273_v8 = vadd.f32 %v2582_v3, %v2272_v34 }
 0xaa4   :  { %vm2281_vm11 = vcmp.gt.f32.partialorder %v2273_v8, 0.0  ;;  %v2283_v11 = vmul.f32 0.1, %v2273_v8  ;;  %v2286_v13 = vsel %vm2282_vm13, %v2278_v45, %v2284_v46 }
 0xaa5   :  { %2308 = vrot.lane.b32.xlu1 %v2286_v13, %s3060_s12  ;;  %2303 = vst.msk [vmem:[#allocation2 + $0xa] sm:$0xf] %vm4894_vm5, %v2286_v13 }
 0xaa6   :  { %v2285_v37 = vsel %vm2281_vm11, %v2273_v8, %v2283_v11 }
 0xaa7   :  { %2306 = vrot.lane.b32.xlu0 %v2285_v37, %s3060_s12  ;;  %2302 = vst.msk [vmem:[#allocation2 + $0x2] sm:$0xff] %vm4895_vm6, %v2285_v37 }
 0xaa9   :  { %2316 = vrot.lane.b32.xlu1 %v2286_v13, %s3059_s11 }
 0xaab   :  { %2314 = vrot.lane.b32.xlu0 %v2285_v37, %s3059_s11 }
 0xb17   :  { %v2309_v40 = vpop.permute.xlu1 %2308 }
 0xb18   :  { %2313 = vst.msk [vmem:[#allocation2 + $0x9] sm:$0xf] %vm4896_vm14, %v2309_v40 }
 0xb19   :  { %v2307_v57 = vpop.permute.xlu0 %2306 }
 0xb1a   :  { %2312 = vst.msk [vmem:[#allocation2 + $0x1] sm:$0xff] %vm4897_vm1, %v2307_v57 }
 0xb1b   :  { %v2317_v30 = vpop.permute.xlu1 %2316 }
 0xb1c   :  { %2321 = vst.msk [vmem:[#allocation2 + $0x8] sm:$0xf] %vm2188_vm2, %v2317_v30 }
 0xb1d   :  { %v2315_v25 = vpop.permute.xlu0 %2314 }
 0xb1e   :  { %2320 = vst.msk [vmem:[#allocation2] sm:$0xff] %vm4898_vm9, %v2315_v25 }
 0xb23   :  { %v2323_v58 = vld [vmem:[#allocation2 + $0x9] sm:$0xf] }
 0xb24   :  { %v2325_v10 = vsel %vm4480_vm15, %v2323_v58, 0.0  ;;  %vm2426_vm15 = vcmask 259072  }
 0xb25   :  { %v2322_v49 = vld [vmem:[#allocation2 + $0x1] sm:$0xff] }
 0xb26   :  { %v2324_v23 = vsel %vm4475_vm7, %v2322_v49, 0.0  ;;  %vm4902_vm7 = vmmov %vm4895_vm6 }
 0xb27   :  { %3046 = vmatprep.mubr.msk.f32.mxu0 %vm4899_vm12, %v2324_v23 }
 0xb28   :  { %3047 = vmatmul.mubr.msk.f32.vlgmr.msra.gmra.mxu0 %vm4900_vm0, %v2325_v10 }
 0xbe8   :  { %v3048_v54 = vpop.f32.mrf.mxu0 }
 0xbe9   :  { %v2410_v55 = vadd.f32 %v3048_v54, %v2598_v16 }
 0xbea   :  { %v2404_v32 = vpop.f32.mrf.mxu0 }
 0xbeb   :  { %v2414_v21 = vadd.f32 %v2410_v55, %v4447_v22  ;;  %v2405_v26 = vadd.f32 %v2598_v16, %v2404_v32 }
 0xbed   :  { %vm2416_vm2 = vcmp.gt.f32.partialorder %v2414_v21, 0.0  ;;  %v2418_v56 = vmul.f32 0.1, %v2414_v21  ;;  %v2413_v20 = vadd.f32 %v2405_v26, %v4438_v0 }
 0xbef   :  { %v2420_v7 = vsel %vm2416_vm2, %v2414_v21, %v2418_v56  ;;  %vm2415_vm3 = vcmp.gt.f32.partialorder %v2413_v20, 0.0  ;;  %v2417_v44 = vmul.f32 0.1, %v2413_v20 }
 0xbf0   :  { %2422 = vst.msk [vmem:[#allocation3 + $0x8] sm:$0xf] %vm4901_vm4, %v2420_v7 }
 0xbf1   :  { %v2419_v41 = vsel %vm2415_vm3, %v2413_v20, %v2417_v44 }
 0xbf2   :  { %2421 = vst.msk [vmem:[#allocation3] sm:$0xff] %vm4902_vm7, %v2419_v41 }
 0xbf9   :  { %v2423_v59 = vld [vmem:[#allocation3] ss:$2 sm:$0x3f]  ;;  %v2424_v60 = vld [vmem:[#allocation3 + $0x1] ss:$2 sm:$0x3f] }
 0xbfa   :  { %v2425_v33 = vmax.f32 %v2423_v59, %v2424_v60 }
 0xbfc   :  { %v2427_v61 = vsel %vm2426_vm15, %v2425_v33, 0.0 }
 0xbfd   :  { %v2428_v36 = vrot.slane %v2427_v61, 4 }
 0xbff   :  { %v2429_v63 = vadd.f32 %v2428_v36, %v2427_v61 }
 0xc01   :  { %v2430_v52 = vrot.slane %v2429_v63, 2 }
 0xc03   :  { %v2431_v24 = vadd.f32 %v2430_v52, %v2429_v63 }
 0xc05   :  { %v2432_v47 = vrot.slane %v2431_v24, 1 }
 0xc07   :  { %v2433_v22 = vadd.f32 %v2432_v47, %v2431_v24 }
 0xc09   :  { %v2435_v0 = vmul.f32 0.16666667, %v2433_v22 }
 0xc0b   :  { %2437 = vst.msk [vmem:[%s4560_s5] sm:$0x1] %vm2436_vm8, %v2435_v0 }

</bundles_post_ra>
